<compile_context>
chip_gen: v6e
topology: v6e:2x2x1
jax: 0.10.0
libtpu: 0.0.40
codegen_flags: <defaults>
</compile_context>

<pallas_src>
import math
import jax
import jax.numpy as jnp
from jax import lax
from jax.experimental import pallas as pl
from jax.experimental.pallas import tpu as pltpu

# ------------------------- scaled-down config ------------------------------
IMG = 16            # input spatial size        (ViT-H-14: 224)
PATCH = 8           # conv1 kernel = stride     (ViT-H-14: 14)
IN_CH = 3
WIDTH = 64          # transformer width         (ViT-H-14: 1280)
HEADS = 4
HEAD_DIM = WIDTH // HEADS
DEPTH = 2           # resblocks                 (ViT-H-14: 32)
PROJ_DIM = 32       # backbone.proj out dim  == nn.Linear in_features
EMBED = 32          # CFG.embed
NUM_CLASSES = 16    # CFG.num_classes
ARC_S, ARC_M = 30.0, 0.5
LN_EPS = 1e-5
BN_EPS = 1e-5

GRID_H = IMG // PATCH
N_PATCH = GRID_H * GRID_H
T = N_PATCH + 1                     # tokens (cls + patches)
PATCH_K = IN_CH * PATCH * PATCH     # 192


# ------------------------------ helpers -------------------------------------
def _bf(x):
    return x.astype(jnp.bfloat16)


def _ln(x, g, b, eps=LN_EPS):
    mu = jnp.mean(x, axis=-1, keepdims=True)
    d = x - mu
    var = jnp.mean(d * d, axis=-1, keepdims=True)
    return d * lax.rsqrt(var + eps) * g + b


# --------------------------- fully fused kernel ------------------------------
def _fused_kernel(patch_ref, convw_ref, clsp_ref, posp_ref, lnpre_g, lnpre_b,
                  ln1_g, ln1_b, qkv_w, qkv_b, out_w, out_b,
                  ln2_g, ln2_b, mlp_w1, mlp_b1, mlp_w2, mlp_b2,
                  lnpost_g, lnpost_b, proj_ref, lin_w, lin_b,
                  bn_m, bn_v, bn_g, bn_b, arc_w, lab_ref,
                  o_ref, tok_scr, cls_scr):
    B = lab_ref.shape[0]

    # ---- conv1 (stride == kernel) as ONE batched matmul + pos embed + ln_pre ----
    pt = jnp.dot(_bf(patch_ref[...]), convw_ref[...],
                 preferred_element_type=jnp.float32)                # (B*N_PATCH, WIDTH)
    pos = posp_ref[...]                                             # (N_PATCH, WIDTH)
    for b in range(B):                                              # static (B=2)
        r0 = b * T
        tok_scr[r0:r0 + 1, :] = clsp_ref[...]                       # cls token + pos[0]
        tok_scr[r0 + 1:r0 + T, :] = pt[b * N_PATCH:(b + 1) * N_PATCH, :] + pos
    h = _ln(tok_scr[...], lnpre_g[...], lnpre_b[...])               # (B*T, WIDTH) f32

    # ---- transformer resblocks (weights resident in VMEM, leading DEPTH axis) ----
    for d in range(DEPTH):                                          # static unroll (2)
        # pre-LN multi-head attention
        xn = _ln(h, ln1_g[d], ln1_b[d])
        qkv = jnp.dot(_bf(xn), qkv_w[d],
                      preferred_element_type=jnp.float32) + qkv_b[d]        # (B*T, 3*WIDTH)
        for b in range(B):
            r0 = b * T
            for hh in range(HEADS):                                 # static unroll (4)
                lo = hh * HEAD_DIM
                q = qkv[r0:r0 + T, lo:lo + HEAD_DIM]                # scale folded into Wq
                k = qkv[r0:r0 + T, WIDTH + lo:WIDTH + lo + HEAD_DIM]
                v = qkv[r0:r0 + T, 2 * WIDTH + lo:2 * WIDTH + lo + HEAD_DIM]
                s = lax.dot_general(_bf(q), _bf(k), (((1,), (1,)), ((), ())),
                                    preferred_element_type=jnp.float32)     # (T, T)
                s = s - jnp.max(s, axis=-1, keepdims=True)
                e = jnp.exp(s)
                pr = e * pl.reciprocal(jnp.sum(e, axis=-1, keepdims=True), approx=True)
                a = jnp.dot(_bf(pr), _bf(v), preferred_element_type=jnp.float32)
                # stage head output at static offsets -> single out-projection matmul
                tok_scr[r0:r0 + T, lo:lo + HEAD_DIM] = a
        attn = tok_scr[...]                                         # (B*T, WIDTH)
        h = h + jnp.dot(_bf(attn), out_w[d],
                        preferred_element_type=jnp.float32) + out_b[d]
        # pre-LN MLP
        x2 = _ln(h, ln2_g[d], ln2_b[d])
        m = jnp.dot(_bf(x2), mlp_w1[d],
                    preferred_element_type=jnp.float32) + mlp_b1[d]
        # TODO(synk): torch nn.GELU default is exact erf; tanh approximation used for robust lowering.
        m = jax.nn.gelu(m, approximate=True)
        h = h + jnp.dot(_bf(m), mlp_w2[d],
                        preferred_element_type=jnp.float32) + mlp_b2[d]

    # ---- classifier tail: ln_post -> proj -> (dropout=id) -> linear -> BN(eval) -> ArcMargin ----
    for b in range(B):                                              # gather cls rows
        cls_scr[b:b + 1, :] = h[b * T:b * T + 1, :]
    xc = _ln(cls_scr[...], lnpost_g[...], lnpost_b[...])            # (B, WIDTH)
    feat = jnp.dot(_bf(xc), proj_ref[...], preferred_element_type=jnp.float32)
    feat = jnp.dot(_bf(feat), lin_w[...], preferred_element_type=jnp.float32) + lin_b[...]
    feat = (feat - bn_m[...]) * lax.rsqrt(bn_v[...] + BN_EPS) * bn_g[...] + bn_b[...]
    # ArcMargin (f32 throughout for the cosine geometry)
    fn = feat * lax.rsqrt(jnp.sum(feat * feat, axis=-1, keepdims=True) + 1e-12)
    w = arc_w[...]                                                  # (C, E)
    wn = w * lax.rsqrt(jnp.sum(w * w, axis=-1, keepdims=True) + 1e-12)
    cos = lax.dot_general(fn, wn, (((1,), (1,)), ((), ())),
                          preferred_element_type=jnp.float32)       # (B, C)
    sin = jnp.sqrt(jnp.clip(1.0 - cos * cos, 0.0, 1.0))
    cos_m, sin_m = math.cos(ARC_M), math.sin(ARC_M)
    th = math.cos(math.pi - ARC_M)
    mm = math.sin(math.pi - ARC_M) * ARC_M
    phi = jnp.where(cos > th, cos * cos_m - sin * sin_m, cos - mm)
    col = lax.broadcasted_iota(jnp.int32, cos.shape, 1)
    o_ref[...] = jnp.where(col == lab_ref[...], phi, cos) * ARC_S


# --------------------------- parameter init ---------------------------------
def init_params(key):
    ks = iter(jax.random.split(key, 32))

    def nrm(shape, std):
        return jax.random.normal(next(ks), shape, jnp.float32) * std

    p = {}
    conv_w = nrm((WIDTH, IN_CH, PATCH, PATCH), math.sqrt(2.0 / (PATCH_K + WIDTH)))
    p["conv_w"] = conv_w.reshape(WIDTH, PATCH_K).T.astype(jnp.bfloat16)     # (PATCH_K, WIDTH)
    cls = nrm((WIDTH,), WIDTH ** -0.5)
    pos = nrm((T, WIDTH), WIDTH ** -0.5)
    p["cls_pos0"] = (cls + pos[0]).reshape(1, WIDTH)                        # cls token + pos[0]
    p["pos_patch"] = pos[1:]                                                # (N_PATCH, WIDTH)
    p["ln_pre_g"] = jnp.ones((1, WIDTH)); p["ln_pre_b"] = jnp.zeros((1, WIDTH))

    scale = 1.0 / math.sqrt(HEAD_DIM)
    # fold the 1/sqrt(head_dim) attention scale into the q projection columns
    qscale = jnp.concatenate([jnp.full((WIDTH,), scale, jnp.float32),
                              jnp.ones((2 * WIDTH,), jnp.float32)])
    blk = {k: [] for k in ["ln1_g", "ln1_b", "qkv_w", "qkv_b", "out_w", "out_b",
                           "ln2_g", "ln2_b", "mlp_w1", "mlp_b1", "mlp_w2", "mlp_b2"]}
    for _ in range(DEPTH):
        qkv_w = nrm((WIDTH, 3 * WIDTH), WIDTH ** -0.5) * qscale[None, :]
        blk["ln1_g"].append(jnp.ones((1, WIDTH)))
        blk["ln1_b"].append(jnp.zeros((1, WIDTH)))
        blk["qkv_w"].append(qkv_w.astype(jnp.bfloat16))
        blk["qkv_b"].append(jnp.zeros((1, 3 * WIDTH)))
        blk["out_w"].append(nrm((WIDTH, WIDTH), WIDTH ** -0.5).astype(jnp.bfloat16))
        blk["out_b"].append(jnp.zeros((1, WIDTH)))
        blk["ln2_g"].append(jnp.ones((1, WIDTH)))
        blk["ln2_b"].append(jnp.zeros((1, WIDTH)))
        blk["mlp_w1"].append(nrm((WIDTH, 4 * WIDTH), WIDTH ** -0.5).astype(jnp.bfloat16))
        blk["mlp_b1"].append(jnp.zeros((1, 4 * WIDTH)))
        blk["mlp_w2"].append(nrm((4 * WIDTH, WIDTH), (4 * WIDTH) ** -0.5).astype(jnp.bfloat16))
        blk["mlp_b2"].append(jnp.zeros((1, WIDTH)))
    for k, v in blk.items():
        p[k] = jnp.stack(v, axis=0)                                 # leading DEPTH axis

    p["ln_post_g"] = jnp.ones((1, WIDTH)); p["ln_post_b"] = jnp.zeros((1, WIDTH))
    p["proj"] = nrm((WIDTH, PROJ_DIM), WIDTH ** -0.5).astype(jnp.bfloat16)
    # head: nn.Linear(1000->embed) scaled to (PROJ_DIM->EMBED), xavier_normal weight, zero bias
    p["lin_w"] = nrm((PROJ_DIM, EMBED),
                     math.sqrt(2.0 / (PROJ_DIM + EMBED))).astype(jnp.bfloat16)
    p["lin_b"] = jnp.zeros((1, EMBED))
    p["bn_g"] = jnp.ones((1, EMBED)); p["bn_b"] = jnp.zeros((1, EMBED))
    p["bn_mean"] = jnp.zeros((1, EMBED)); p["bn_var"] = jnp.ones((1, EMBED))
    # ArcMarginProduct weight [num_classes, embed]
    p["arc_w"] = nrm((NUM_CLASSES, EMBED), math.sqrt(2.0 / (NUM_CLASSES + EMBED)))
    return p


# ------------------------------- forward -------------------------------------
def forward(params, x, label):
    """x: [B, 3, IMG, IMG] float32 (NCHW),  label: [B] int  ->  [B, NUM_CLASSES]."""
    B = x.shape[0]
    # conv1 (stride == kernel, no bias) == patchify (plain-JAX layout glue); the matmul
    # itself happens inside the fused kernel.
    patches = x.reshape(B, IN_CH, GRID_H, PATCH, GRID_H, PATCH)
    patches = patches.transpose(0, 2, 4, 1, 3, 5).reshape(B * N_PATCH, PATCH_K)
    lab = label.astype(jnp.int32).reshape(B, 1)

    vm = pl.BlockSpec(memory_space=pltpu.MemorySpace.VMEM)
    return pl.pallas_call(
        _fused_kernel,
        out_shape=jax.ShapeDtypeStruct((B, NUM_CLASSES), jnp.float32),
        in_specs=[vm] * 29,
        out_specs=vm,
        scratch_shapes=[
            pltpu.VMEM((B * T, WIDTH), jnp.float32),   # token build + per-head attn staging
            pltpu.VMEM((B, WIDTH), jnp.float32),       # gathered cls rows
        ],
    )(patches, params["conv_w"], params["cls_pos0"], params["pos_patch"],
      params["ln_pre_g"], params["ln_pre_b"],
      params["ln1_g"], params["ln1_b"], params["qkv_w"], params["qkv_b"],
      params["out_w"], params["out_b"], params["ln2_g"], params["ln2_b"],
      params["mlp_w1"], params["mlp_b1"], params["mlp_w2"], params["mlp_b2"],
      params["ln_post_g"], params["ln_post_b"], params["proj"],
      params["lin_w"], params["lin_b"],
      params["bn_mean"], params["bn_var"], params["bn_g"], params["bn_b"],
      params["arc_w"], lab)


# --------------------------------- main ---------------------------------------
if __name__ == "__main__":
    key = jax.random.PRNGKey(0)
    kp, kx, kl = jax.random.split(key, 3)
    params = init_params(kp)

    B = 2
    x = jax.random.normal(kx, (B, IN_CH, IMG, IMG), jnp.float32)
    label = jax.random.randint(kl, (B,), 0, NUM_CLASSES, jnp.int32)

    out = jax.jit(forward)(params, x, label)
    out = jax.block_until_ready(out)
    assert out.shape == (B, NUM_CLASSES), out.shape
    assert bool(jnp.all(jnp.isfinite(out))), "non-finite output"
    print("KERNEL_OK")
</pallas_src>

<mosaic_0001>
module attributes {stable_mosaic.version = 11 : i64} {
  func.func @_fused_kernel(%arg0: memref<8x192xf32, #tpu.memory_space<vmem>>, %arg1: memref<192x64xbf16, #tpu.memory_space<vmem>>, %arg2: memref<1x64xf32, #tpu.memory_space<vmem>>, %arg3: memref<4x64xf32, #tpu.memory_space<vmem>>, %arg4: memref<1x64xf32, #tpu.memory_space<vmem>>, %arg5: memref<1x64xf32, #tpu.memory_space<vmem>>, %arg6: memref<2x1x64xf32, #tpu.memory_space<vmem>>, %arg7: memref<2x1x64xf32, #tpu.memory_space<vmem>>, %arg8: memref<2x64x192xbf16, #tpu.memory_space<vmem>>, %arg9: memref<2x1x192xf32, #tpu.memory_space<vmem>>, %arg10: memref<2x64x64xbf16, #tpu.memory_space<vmem>>, %arg11: memref<2x1x64xf32, #tpu.memory_space<vmem>>, %arg12: memref<2x1x64xf32, #tpu.memory_space<vmem>>, %arg13: memref<2x1x64xf32, #tpu.memory_space<vmem>>, %arg14: memref<2x64x256xbf16, #tpu.memory_space<vmem>>, %arg15: memref<2x1x256xf32, #tpu.memory_space<vmem>>, %arg16: memref<2x256x64xbf16, #tpu.memory_space<vmem>>, %arg17: memref<2x1x64xf32, #tpu.memory_space<vmem>>, %arg18: memref<1x64xf32, #tpu.memory_space<vmem>>, %arg19: memref<1x64xf32, #tpu.memory_space<vmem>>, %arg20: memref<64x32xbf16, #tpu.memory_space<vmem>>, %arg21: memref<32x32xbf16, #tpu.memory_space<vmem>>, %arg22: memref<1x32xf32, #tpu.memory_space<vmem>>, %arg23: memref<1x32xf32, #tpu.memory_space<vmem>>, %arg24: memref<1x32xf32, #tpu.memory_space<vmem>>, %arg25: memref<1x32xf32, #tpu.memory_space<vmem>>, %arg26: memref<1x32xf32, #tpu.memory_space<vmem>>, %arg27: memref<16x32xf32, #tpu.memory_space<vmem>>, %arg28: memref<2x1xi32, #tpu.memory_space<vmem>>, %arg29: memref<2x16xf32, #tpu.memory_space<vmem>>, %arg30: memref<10x64xf32, #tpu.memory_space<vmem>>, %arg31: memref<2x64xf32, #tpu.memory_space<vmem>>) attributes {dimension_semantics = [], scalar_prefetch = 0 : i64, scratch_operands = 2 : i64, tpu.core_type = #tpu.core_type<tc>} {
    %c0 = arith.constant 0 : index
    %c0_0 = arith.constant 0 : index
    %0 = vector.load %arg0[%c0, %c0_0] : memref<8x192xf32, #tpu.memory_space<vmem>>, vector<8x192xf32>
    %1 = arith.truncf %0 : vector<8x192xf32> to vector<8x192xbf16>
    %c0_1 = arith.constant 0 : index
    %c0_2 = arith.constant 0 : index
    %2 = vector.load %arg1[%c0_1, %c0_2] : memref<192x64xbf16, #tpu.memory_space<vmem>>, vector<192x64xbf16>
    %cst = arith.constant dense<0.000000e+00> : vector<8x64xf32>
    %3 = tpu.matmul %1, %2, %cst {dimension_numbers = #tpu.dot_dimension_numbers<[1], [0], [0], [1], [0, 0, 1, 1], [], []>} : vector<8x192xbf16>, vector<192x64xbf16>, vector<8x64xf32> -> vector<8x64xf32>
    %c0_3 = arith.constant 0 : index
    %c0_4 = arith.constant 0 : index
    %4 = vector.load %arg3[%c0_3, %c0_4] : memref<4x64xf32, #tpu.memory_space<vmem>>, vector<4x64xf32>
    %c0_5 = arith.constant 0 : index
    %c0_6 = arith.constant 0 : index
    %5 = vector.load %arg2[%c0_5, %c0_6] : memref<1x64xf32, #tpu.memory_space<vmem>>, vector<1x64xf32>
    %c0_7 = arith.constant 0 : index
    %c0_8 = arith.constant 0 : index
    %6 = vector.load %arg30[%c0_7, %c0_8] : memref<10x64xf32, #tpu.memory_space<vmem>>, vector<1x64xf32>
    tpu.vector_store %arg30[%c0_7, %c0_8], %5 {strides = array<i32>} : memref<10x64xf32, #tpu.memory_space<vmem>>, vector<1x64xf32>,
    %7 = vector.extract_strided_slice %3 {offsets = [0, 0], sizes = [4, 64], strides = [1, 1]} : vector<8x64xf32> to vector<4x64xf32>
    %8 = arith.addf %7, %4 : vector<4x64xf32>
    %c1 = arith.constant 1 : index
    %c0_9 = arith.constant 0 : index
    %9 = vector.load %arg30[%c1, %c0_9] : memref<10x64xf32, #tpu.memory_space<vmem>>, vector<4x64xf32>
    tpu.vector_store %arg30[%c1, %c0_9], %8 {strides = array<i32>} : memref<10x64xf32, #tpu.memory_space<vmem>>, vector<4x64xf32>,
    %c0_10 = arith.constant 0 : index
    %c0_11 = arith.constant 0 : index
    %10 = vector.load %arg2[%c0_10, %c0_11] : memref<1x64xf32, #tpu.memory_space<vmem>>, vector<1x64xf32>
    %c5 = arith.constant 5 : index
    %c0_12 = arith.constant 0 : index
    %11 = vector.load %arg30[%c5, %c0_12] : memref<10x64xf32, #tpu.memory_space<vmem>>, vector<1x64xf32>
    tpu.vector_store %arg30[%c5, %c0_12], %10 {strides = array<i32>} : memref<10x64xf32, #tpu.memory_space<vmem>>, vector<1x64xf32>,
    %12 = vector.extract_strided_slice %3 {offsets = [4, 0], sizes = [4, 64], strides = [1, 1]} : vector<8x64xf32> to vector<4x64xf32>
    %13 = arith.addf %12, %4 : vector<4x64xf32>
    %c6 = arith.constant 6 : index
    %c0_13 = arith.constant 0 : index
    %14 = vector.load %arg30[%c6, %c0_13] : memref<10x64xf32, #tpu.memory_space<vmem>>, vector<4x64xf32>
    tpu.vector_store %arg30[%c6, %c0_13], %13 {strides = array<i32>} : memref<10x64xf32, #tpu.memory_space<vmem>>, vector<4x64xf32>,
    %c0_14 = arith.constant 0 : index
    %c0_15 = arith.constant 0 : index
    %15 = vector.load %arg30[%c0_14, %c0_15] : memref<10x64xf32, #tpu.memory_space<vmem>>, vector<10x64xf32>
    %c0_16 = arith.constant 0 : index
    %c0_17 = arith.constant 0 : index
    %16 = vector.load %arg4[%c0_16, %c0_17] : memref<1x64xf32, #tpu.memory_space<vmem>>, vector<1x64xf32>
    %c0_18 = arith.constant 0 : index
    %c0_19 = arith.constant 0 : index
    %17 = vector.load %arg5[%c0_18, %c0_19] : memref<1x64xf32, #tpu.memory_space<vmem>>, vector<1x64xf32>
    %cst_20 = arith.constant dense<0.000000e+00> : vector<10xf32>
    %18 = vector.multi_reduction <add>, %15, %cst_20 [1] : vector<10x64xf32> to vector<10xf32>
    %19 = vector.shape_cast %18 : vector<10xf32> to vector<10x1xf32>
    %cst_21 = arith.constant 6.400000e+01 : f32
    %20 = vector.broadcast %cst_21 : f32 to vector<10x1xf32>
    %21 = arith.divf %19, %20 : vector<10x1xf32>
    %22 = vector.broadcast %21 : vector<10x1xf32> to vector<10x64xf32>
    %23 = arith.subf %15, %22 : vector<10x64xf32>
    %24 = arith.mulf %23, %23 : vector<10x64xf32>
    %cst_22 = arith.constant dense<0.000000e+00> : vector<10xf32>
    %25 = vector.multi_reduction <add>, %24, %cst_22 [1] : vector<10x64xf32> to vector<10xf32>
    %26 = vector.shape_cast %25 : vector<10xf32> to vector<10x1xf32>
    %cst_23 = arith.constant 6.400000e+01 : f32
    %27 = vector.broadcast %cst_23 : f32 to vector<10x1xf32>
    %28 = arith.divf %26, %27 : vector<10x1xf32>
    %cst_24 = arith.constant 9.99999974E-6 : f32
    %29 = vector.broadcast %cst_24 : f32 to vector<10x1xf32>
    %30 = arith.addf %28, %29 : vector<10x1xf32>
    %31 = math.rsqrt %30 : vector<10x1xf32>
    %32 = vector.broadcast %31 : vector<10x1xf32> to vector<10x64xf32>
    %33 = arith.mulf %23, %32 : vector<10x64xf32>
    %34 = vector.broadcast %16 : vector<1x64xf32> to vector<10x64xf32>
    %35 = arith.mulf %33, %34 : vector<10x64xf32>
    %36 = vector.broadcast %17 : vector<1x64xf32> to vector<10x64xf32>
    %37 = arith.addf %35, %36 : vector<10x64xf32>
    %c0_25 = arith.constant 0 : index
    %c0_26 = arith.constant 0 : index
    %c0_27 = arith.constant 0 : index
    %38 = vector.load %arg6[%c0_25, %c0_26, %c0_27] : memref<2x1x64xf32, #tpu.memory_space<vmem>>, vector<1x1x64xf32>
    %39 = vector.shape_cast %38 : vector<1x1x64xf32> to vector<1x64xf32>
    %c0_28 = arith.constant 0 : index
    %c0_29 = arith.constant 0 : index
    %c0_30 = arith.constant 0 : index
    %40 = vector.load %arg7[%c0_28, %c0_29, %c0_30] : memref<2x1x64xf32, #tpu.memory_space<vmem>>, vector<1x1x64xf32>
    %41 = vector.shape_cast %40 : vector<1x1x64xf32> to vector<1x64xf32>
    %cst_31 = arith.constant dense<0.000000e+00> : vector<10xf32>
    %42 = vector.multi_reduction <add>, %37, %cst_31 [1] : vector<10x64xf32> to vector<10xf32>
    %43 = vector.shape_cast %42 : vector<10xf32> to vector<10x1xf32>
    %cst_32 = arith.constant 6.400000e+01 : f32
    %44 = vector.broadcast %cst_32 : f32 to vector<10x1xf32>
    %45 = arith.divf %43, %44 : vector<10x1xf32>
    %46 = vector.broadcast %45 : vector<10x1xf32> to vector<10x64xf32>
    %47 = arith.subf %37, %46 : vector<10x64xf32>
    %48 = arith.mulf %47, %47 : vector<10x64xf32>
    %cst_33 = arith.constant dense<0.000000e+00> : vector<10xf32>
    %49 = vector.multi_reduction <add>, %48, %cst_33 [1] : vector<10x64xf32> to vector<10xf32>
    %50 = vector.shape_cast %49 : vector<10xf32> to vector<10x1xf32>
    %cst_34 = arith.constant 6.400000e+01 : f32
    %51 = vector.broadcast %cst_34 : f32 to vector<10x1xf32>
    %52 = arith.divf %50, %51 : vector<10x1xf32>
    %cst_35 = arith.constant 9.99999974E-6 : f32
    %53 = vector.broadcast %cst_35 : f32 to vector<10x1xf32>
    %54 = arith.addf %52, %53 : vector<10x1xf32>
    %55 = math.rsqrt %54 : vector<10x1xf32>
    %56 = vector.broadcast %55 : vector<10x1xf32> to vector<10x64xf32>
    %57 = arith.mulf %47, %56 : vector<10x64xf32>
    %58 = vector.broadcast %39 : vector<1x64xf32> to vector<10x64xf32>
    %59 = arith.mulf %57, %58 : vector<10x64xf32>
    %60 = vector.broadcast %41 : vector<1x64xf32> to vector<10x64xf32>
    %61 = arith.addf %59, %60 : vector<10x64xf32>
    %62 = arith.truncf %61 : vector<10x64xf32> to vector<10x64xbf16>
    %c0_36 = arith.constant 0 : index
    %c0_37 = arith.constant 0 : index
    %c0_38 = arith.constant 0 : index
    %63 = vector.load %arg8[%c0_36, %c0_37, %c0_38] : memref<2x64x192xbf16, #tpu.memory_space<vmem>>, vector<1x64x192xbf16>
    %64 = vector.shape_cast %63 : vector<1x64x192xbf16> to vector<64x192xbf16>
    %cst_39 = arith.constant dense<0.000000e+00> : vector<10x192xf32>
    %65 = tpu.matmul %62, %64, %cst_39 {dimension_numbers = #tpu.dot_dimension_numbers<[1], [0], [0], [1], [0, 0, 1, 1], [], []>} : vector<10x64xbf16>, vector<64x192xbf16>, vector<10x192xf32> -> vector<10x192xf32>
    %c0_40 = arith.constant 0 : index
    %c0_41 = arith.constant 0 : index
    %c0_42 = arith.constant 0 : index
    %66 = vector.load %arg9[%c0_40, %c0_41, %c0_42] : memref<2x1x192xf32, #tpu.memory_space<vmem>>, vector<1x1x192xf32>
    %67 = vector.shape_cast %66 : vector<1x1x192xf32> to vector<1x192xf32>
    %68 = vector.broadcast %67 : vector<1x192xf32> to vector<10x192xf32>
    %69 = arith.addf %65, %68 : vector<10x192xf32>
    %70 = vector.extract_strided_slice %69 {offsets = [0, 0], sizes = [5, 16], strides = [1, 1]} : vector<10x192xf32> to vector<5x16xf32>
    %71 = vector.extract_strided_slice %69 {offsets = [0, 64], sizes = [5, 16], strides = [1, 1]} : vector<10x192xf32> to vector<5x16xf32>
    %72 = vector.extract_strided_slice %69 {offsets = [0, 128], sizes = [5, 16], strides = [1, 1]} : vector<10x192xf32> to vector<5x16xf32>
    %73 = arith.truncf %70 : vector<5x16xf32> to vector<5x16xbf16>
    %74 = arith.truncf %71 : vector<5x16xf32> to vector<5x16xbf16>
    %cst_43 = arith.constant dense<0.000000e+00> : vector<5x5xf32>
    %75 = tpu.matmul %73, %74, %cst_43 {dimension_numbers = #tpu.dot_dimension_numbers<[1], [1], [0], [0], [0, 0, 1, 0], [], []>} : vector<5x16xbf16>, vector<5x16xbf16>, vector<5x5xf32> -> vector<5x5xf32>
    %cst_44 = arith.constant dense<0xFF800000> : vector<5xf32>
    %76 = vector.multi_reduction <maximumf>, %75, %cst_44 [1] : vector<5x5xf32> to vector<5xf32>
    %77 = vector.shape_cast %76 : vector<5xf32> to vector<5x1xf32>
    %78 = vector.broadcast %77 : vector<5x1xf32> to vector<5x5xf32>
    %79 = arith.subf %75, %78 : vector<5x5xf32>
    %80 = math.exp %79 : vector<5x5xf32>
    %cst_45 = arith.constant dense<0.000000e+00> : vector<5xf32>
    %81 = vector.multi_reduction <add>, %80, %cst_45 [1] : vector<5x5xf32> to vector<5xf32>
    %82 = vector.shape_cast %81 : vector<5xf32> to vector<5x1xf32>
    %83 = tpu.reciprocal %82 {approx = true} : vector<5x1xf32> -> vector<5x1xf32>
    %84 = vector.broadcast %83 : vector<5x1xf32> to vector<5x5xf32>
    %85 = arith.mulf %80, %84 : vector<5x5xf32>
    %86 = arith.truncf %85 : vector<5x5xf32> to vector<5x5xbf16>
    %87 = arith.truncf %72 : vector<5x16xf32> to vector<5x16xbf16>
    %cst_46 = arith.constant dense<0.000000e+00> : vector<5x16xf32>
    %88 = tpu.matmul %86, %87, %cst_46 {dimension_numbers = #tpu.dot_dimension_numbers<[1], [0], [0], [1], [0, 0, 1, 1], [], []>} : vector<5x5xbf16>, vector<5x16xbf16>, vector<5x16xf32> -> vector<5x16xf32>
    %c0_47 = arith.constant 0 : index
    %c0_48 = arith.constant 0 : index
    %89 = vector.load %arg30[%c0_47, %c0_48] : memref<10x64xf32, #tpu.memory_space<vmem>>, vector<5x16xf32>
    tpu.vector_store %arg30[%c0_47, %c0_48], %88 {strides = array<i32>} : memref<10x64xf32, #tpu.memory_space<vmem>>, vector<5x16xf32>,
    %90 = vector.extract_strided_slice %69 {offsets = [0, 16], sizes = [5, 16], strides = [1, 1]} : vector<10x192xf32> to vector<5x16xf32>
    %91 = vector.extract_strided_slice %69 {offsets = [0, 80], sizes = [5, 16], strides = [1, 1]} : vector<10x192xf32> to vector<5x16xf32>
    %92 = vector.extract_strided_slice %69 {offsets = [0, 144], sizes = [5, 16], strides = [1, 1]} : vector<10x192xf32> to vector<5x16xf32>
    %93 = arith.truncf %90 : vector<5x16xf32> to vector<5x16xbf16>
    %94 = arith.truncf %91 : vector<5x16xf32> to vector<5x16xbf16>
    %cst_49 = arith.constant dense<0.000000e+00> : vector<5x5xf32>
    %95 = tpu.matmul %93, %94, %cst_49 {dimension_numbers = #tpu.dot_dimension_numbers<[1], [1], [0], [0], [0, 0, 1, 0], [], []>} : vector<5x16xbf16>, vector<5x16xbf16>, vector<5x5xf32> -> vector<5x5xf32>
    %cst_50 = arith.constant dense<0xFF800000> : vector<5xf32>
    %96 = vector.multi_reduction <maximumf>, %95, %cst_50 [1] : vector<5x5xf32> to vector<5xf32>
    %97 = vector.shape_cast %96 : vector<5xf32> to vector<5x1xf32>
    %98 = vector.broadcast %97 : vector<5x1xf32> to vector<5x5xf32>
    %99 = arith.subf %95, %98 : vector<5x5xf32>
    %100 = math.exp %99 : vector<5x5xf32>
    %cst_51 = arith.constant dense<0.000000e+00> : vector<5xf32>
    %101 = vector.multi_reduction <add>, %100, %cst_51 [1] : vector<5x5xf32> to vector<5xf32>
    %102 = vector.shape_cast %101 : vector<5xf32> to vector<5x1xf32>
    %103 = tpu.reciprocal %102 {approx = true} : vector<5x1xf32> -> vector<5x1xf32>
    %104 = vector.broadcast %103 : vector<5x1xf32> to vector<5x5xf32>
    %105 = arith.mulf %100, %104 : vector<5x5xf32>
    %106 = arith.truncf %105 : vector<5x5xf32> to vector<5x5xbf16>
    %107 = arith.truncf %92 : vector<5x16xf32> to vector<5x16xbf16>
    %cst_52 = arith.constant dense<0.000000e+00> : vector<5x16xf32>
    %108 = tpu.matmul %106, %107, %cst_52 {dimension_numbers = #tpu.dot_dimension_numbers<[1], [0], [0], [1], [0, 0, 1, 1], [], []>} : vector<5x5xbf16>, vector<5x16xbf16>, vector<5x16xf32> -> vector<5x16xf32>
    %c0_53 = arith.constant 0 : index
    %c16 = arith.constant 16 : index
    %109 = vector.load %arg30[%c0_53, %c16] : memref<10x64xf32, #tpu.memory_space<vmem>>, vector<5x16xf32>
    tpu.vector_store %arg30[%c0_53, %c16], %108 {strides = array<i32>} : memref<10x64xf32, #tpu.memory_space<vmem>>, vector<5x16xf32>,
    %110 = vector.extract_strided_slice %69 {offsets = [0, 32], sizes = [5, 16], strides = [1, 1]} : vector<10x192xf32> to vector<5x16xf32>
    %111 = vector.extract_strided_slice %69 {offsets = [0, 96], sizes = [5, 16], strides = [1, 1]} : vector<10x192xf32> to vector<5x16xf32>
    %112 = vector.extract_strided_slice %69 {offsets = [0, 160], sizes = [5, 16], strides = [1, 1]} : vector<10x192xf32> to vector<5x16xf32>
    %113 = arith.truncf %110 : vector<5x16xf32> to vector<5x16xbf16>
    %114 = arith.truncf %111 : vector<5x16xf32> to vector<5x16xbf16>
    %cst_54 = arith.constant dense<0.000000e+00> : vector<5x5xf32>
    %115 = tpu.matmul %113, %114, %cst_54 {dimension_numbers = #tpu.dot_dimension_numbers<[1], [1], [0], [0], [0, 0, 1, 0], [], []>} : vector<5x16xbf16>, vector<5x16xbf16>, vector<5x5xf32> -> vector<5x5xf32>
    %cst_55 = arith.constant dense<0xFF800000> : vector<5xf32>
    %116 = vector.multi_reduction <maximumf>, %115, %cst_55 [1] : vector<5x5xf32> to vector<5xf32>
    %117 = vector.shape_cast %116 : vector<5xf32> to vector<5x1xf32>
    %118 = vector.broadcast %117 : vector<5x1xf32> to vector<5x5xf32>
    %119 = arith.subf %115, %118 : vector<5x5xf32>
    %120 = math.exp %119 : vector<5x5xf32>
    %cst_56 = arith.constant dense<0.000000e+00> : vector<5xf32>
    %121 = vector.multi_reduction <add>, %120, %cst_56 [1] : vector<5x5xf32> to vector<5xf32>
    %122 = vector.shape_cast %121 : vector<5xf32> to vector<5x1xf32>
    %123 = tpu.reciprocal %122 {approx = true} : vector<5x1xf32> -> vector<5x1xf32>
    %124 = vector.broadcast %123 : vector<5x1xf32> to vector<5x5xf32>
    %125 = arith.mulf %120, %124 : vector<5x5xf32>
    %126 = arith.truncf %125 : vector<5x5xf32> to vector<5x5xbf16>
    %127 = arith.truncf %112 : vector<5x16xf32> to vector<5x16xbf16>
    %cst_57 = arith.constant dense<0.000000e+00> : vector<5x16xf32>
    %128 = tpu.matmul %126, %127, %cst_57 {dimension_numbers = #tpu.dot_dimension_numbers<[1], [0], [0], [1], [0, 0, 1, 1], [], []>} : vector<5x5xbf16>, vector<5x16xbf16>, vector<5x16xf32> -> vector<5x16xf32>
    %c0_58 = arith.constant 0 : index
    %c32 = arith.constant 32 : index
    %129 = vector.load %arg30[%c0_58, %c32] : memref<10x64xf32, #tpu.memory_space<vmem>>, vector<5x16xf32>
    tpu.vector_store %arg30[%c0_58, %c32], %128 {strides = array<i32>} : memref<10x64xf32, #tpu.memory_space<vmem>>, vector<5x16xf32>,
    %130 = vector.extract_strided_slice %69 {offsets = [0, 48], sizes = [5, 16], strides = [1, 1]} : vector<10x192xf32> to vector<5x16xf32>
    %131 = vector.extract_strided_slice %69 {offsets = [0, 112], sizes = [5, 16], strides = [1, 1]} : vector<10x192xf32> to vector<5x16xf32>
    %132 = vector.extract_strided_slice %69 {offsets = [0, 176], sizes = [5, 16], strides = [1, 1]} : vector<10x192xf32> to vector<5x16xf32>
    %133 = arith.truncf %130 : vector<5x16xf32> to vector<5x16xbf16>
    %134 = arith.truncf %131 : vector<5x16xf32> to vector<5x16xbf16>
    %cst_59 = arith.constant dense<0.000000e+00> : vector<5x5xf32>
    %135 = tpu.matmul %133, %134, %cst_59 {dimension_numbers = #tpu.dot_dimension_numbers<[1], [1], [0], [0], [0, 0, 1, 0], [], []>} : vector<5x16xbf16>, vector<5x16xbf16>, vector<5x5xf32> -> vector<5x5xf32>
    %cst_60 = arith.constant dense<0xFF800000> : vector<5xf32>
    %136 = vector.multi_reduction <maximumf>, %135, %cst_60 [1] : vector<5x5xf32> to vector<5xf32>
    %137 = vector.shape_cast %136 : vector<5xf32> to vector<5x1xf32>
    %138 = vector.broadcast %137 : vector<5x1xf32> to vector<5x5xf32>
    %139 = arith.subf %135, %138 : vector<5x5xf32>
    %140 = math.exp %139 : vector<5x5xf32>
    %cst_61 = arith.constant dense<0.000000e+00> : vector<5xf32>
    %141 = vector.multi_reduction <add>, %140, %cst_61 [1] : vector<5x5xf32> to vector<5xf32>
    %142 = vector.shape_cast %141 : vector<5xf32> to vector<5x1xf32>
    %143 = tpu.reciprocal %142 {approx = true} : vector<5x1xf32> -> vector<5x1xf32>
    %144 = vector.broadcast %143 : vector<5x1xf32> to vector<5x5xf32>
    %145 = arith.mulf %140, %144 : vector<5x5xf32>
    %146 = arith.truncf %145 : vector<5x5xf32> to vector<5x5xbf16>
    %147 = arith.truncf %132 : vector<5x16xf32> to vector<5x16xbf16>
    %cst_62 = arith.constant dense<0.000000e+00> : vector<5x16xf32>
    %148 = tpu.matmul %146, %147, %cst_62 {dimension_numbers = #tpu.dot_dimension_numbers<[1], [0], [0], [1], [0, 0, 1, 1], [], []>} : vector<5x5xbf16>, vector<5x16xbf16>, vector<5x16xf32> -> vector<5x16xf32>
    %c0_63 = arith.constant 0 : index
    %c48 = arith.constant 48 : index
    %149 = vector.load %arg30[%c0_63, %c48] : memref<10x64xf32, #tpu.memory_space<vmem>>, vector<5x16xf32>
    tpu.vector_store %arg30[%c0_63, %c48], %148 {strides = array<i32>} : memref<10x64xf32, #tpu.memory_space<vmem>>, vector<5x16xf32>,
    %150 = vector.extract_strided_slice %69 {offsets = [5, 0], sizes = [5, 16], strides = [1, 1]} : vector<10x192xf32> to vector<5x16xf32>
    %151 = vector.extract_strided_slice %69 {offsets = [5, 64], sizes = [5, 16], strides = [1, 1]} : vector<10x192xf32> to vector<5x16xf32>
    %152 = vector.extract_strided_slice %69 {offsets = [5, 128], sizes = [5, 16], strides = [1, 1]} : vector<10x192xf32> to vector<5x16xf32>
    %153 = arith.truncf %150 : vector<5x16xf32> to vector<5x16xbf16>
    %154 = arith.truncf %151 : vector<5x16xf32> to vector<5x16xbf16>
    %cst_64 = arith.constant dense<0.000000e+00> : vector<5x5xf32>
    %155 = tpu.matmul %153, %154, %cst_64 {dimension_numbers = #tpu.dot_dimension_numbers<[1], [1], [0], [0], [0, 0, 1, 0], [], []>} : vector<5x16xbf16>, vector<5x16xbf16>, vector<5x5xf32> -> vector<5x5xf32>
    %cst_65 = arith.constant dense<0xFF800000> : vector<5xf32>
    %156 = vector.multi_reduction <maximumf>, %155, %cst_65 [1] : vector<5x5xf32> to vector<5xf32>
    %157 = vector.shape_cast %156 : vector<5xf32> to vector<5x1xf32>
    %158 = vector.broadcast %157 : vector<5x1xf32> to vector<5x5xf32>
    %159 = arith.subf %155, %158 : vector<5x5xf32>
    %160 = math.exp %159 : vector<5x5xf32>
    %cst_66 = arith.constant dense<0.000000e+00> : vector<5xf32>
    %161 = vector.multi_reduction <add>, %160, %cst_66 [1] : vector<5x5xf32> to vector<5xf32>
    %162 = vector.shape_cast %161 : vector<5xf32> to vector<5x1xf32>
    %163 = tpu.reciprocal %162 {approx = true} : vector<5x1xf32> -> vector<5x1xf32>
    %164 = vector.broadcast %163 : vector<5x1xf32> to vector<5x5xf32>
    %165 = arith.mulf %160, %164 : vector<5x5xf32>
    %166 = arith.truncf %165 : vector<5x5xf32> to vector<5x5xbf16>
    %167 = arith.truncf %152 : vector<5x16xf32> to vector<5x16xbf16>
    %cst_67 = arith.constant dense<0.000000e+00> : vector<5x16xf32>
    %168 = tpu.matmul %166, %167, %cst_67 {dimension_numbers = #tpu.dot_dimension_numbers<[1], [0], [0], [1], [0, 0, 1, 1], [], []>} : vector<5x5xbf16>, vector<5x16xbf16>, vector<5x16xf32> -> vector<5x16xf32>
    %c5_68 = arith.constant 5 : index
    %c0_69 = arith.constant 0 : index
    %169 = vector.load %arg30[%c5_68, %c0_69] : memref<10x64xf32, #tpu.memory_space<vmem>>, vector<5x16xf32>
    tpu.vector_store %arg30[%c5_68, %c0_69], %168 {strides = array<i32>} : memref<10x64xf32, #tpu.memory_space<vmem>>, vector<5x16xf32>,
    %170 = vector.extract_strided_slice %69 {offsets = [5, 16], sizes = [5, 16], strides = [1, 1]} : vector<10x192xf32> to vector<5x16xf32>
    %171 = vector.extract_strided_slice %69 {offsets = [5, 80], sizes = [5, 16], strides = [1, 1]} : vector<10x192xf32> to vector<5x16xf32>
    %172 = vector.extract_strided_slice %69 {offsets = [5, 144], sizes = [5, 16], strides = [1, 1]} : vector<10x192xf32> to vector<5x16xf32>
    %173 = arith.truncf %170 : vector<5x16xf32> to vector<5x16xbf16>
    %174 = arith.truncf %171 : vector<5x16xf32> to vector<5x16xbf16>
    %cst_70 = arith.constant dense<0.000000e+00> : vector<5x5xf32>
    %175 = tpu.matmul %173, %174, %cst_70 {dimension_numbers = #tpu.dot_dimension_numbers<[1], [1], [0], [0], [0, 0, 1, 0], [], []>} : vector<5x16xbf16>, vector<5x16xbf16>, vector<5x5xf32> -> vector<5x5xf32>
    %cst_71 = arith.constant dense<0xFF800000> : vector<5xf32>
    %176 = vector.multi_reduction <maximumf>, %175, %cst_71 [1] : vector<5x5xf32> to vector<5xf32>
    %177 = vector.shape_cast %176 : vector<5xf32> to vector<5x1xf32>
    %178 = vector.broadcast %177 : vector<5x1xf32> to vector<5x5xf32>
    %179 = arith.subf %175, %178 : vector<5x5xf32>
    %180 = math.exp %179 : vector<5x5xf32>
    %cst_72 = arith.constant dense<0.000000e+00> : vector<5xf32>
    %181 = vector.multi_reduction <add>, %180, %cst_72 [1] : vector<5x5xf32> to vector<5xf32>
    %182 = vector.shape_cast %181 : vector<5xf32> to vector<5x1xf32>
    %183 = tpu.reciprocal %182 {approx = true} : vector<5x1xf32> -> vector<5x1xf32>
    %184 = vector.broadcast %183 : vector<5x1xf32> to vector<5x5xf32>
    %185 = arith.mulf %180, %184 : vector<5x5xf32>
    %186 = arith.truncf %185 : vector<5x5xf32> to vector<5x5xbf16>
    %187 = arith.truncf %172 : vector<5x16xf32> to vector<5x16xbf16>
    %cst_73 = arith.constant dense<0.000000e+00> : vector<5x16xf32>
    %188 = tpu.matmul %186, %187, %cst_73 {dimension_numbers = #tpu.dot_dimension_numbers<[1], [0], [0], [1], [0, 0, 1, 1], [], []>} : vector<5x5xbf16>, vector<5x16xbf16>, vector<5x16xf32> -> vector<5x16xf32>
    %c5_74 = arith.constant 5 : index
    %c16_75 = arith.constant 16 : index
    %189 = vector.load %arg30[%c5_74, %c16_75] : memref<10x64xf32, #tpu.memory_space<vmem>>, vector<5x16xf32>
    tpu.vector_store %arg30[%c5_74, %c16_75], %188 {strides = array<i32>} : memref<10x64xf32, #tpu.memory_space<vmem>>, vector<5x16xf32>,
    %190 = vector.extract_strided_slice %69 {offsets = [5, 32], sizes = [5, 16], strides = [1, 1]} : vector<10x192xf32> to vector<5x16xf32>
    %191 = vector.extract_strided_slice %69 {offsets = [5, 96], sizes = [5, 16], strides = [1, 1]} : vector<10x192xf32> to vector<5x16xf32>
    %192 = vector.extract_strided_slice %69 {offsets = [5, 160], sizes = [5, 16], strides = [1, 1]} : vector<10x192xf32> to vector<5x16xf32>
    %193 = arith.truncf %190 : vector<5x16xf32> to vector<5x16xbf16>
    %194 = arith.truncf %191 : vector<5x16xf32> to vector<5x16xbf16>
    %cst_76 = arith.constant dense<0.000000e+00> : vector<5x5xf32>
    %195 = tpu.matmul %193, %194, %cst_76 {dimension_numbers = #tpu.dot_dimension_numbers<[1], [1], [0], [0], [0, 0, 1, 0], [], []>} : vector<5x16xbf16>, vector<5x16xbf16>, vector<5x5xf32> -> vector<5x5xf32>
    %cst_77 = arith.constant dense<0xFF800000> : vector<5xf32>
    %196 = vector.multi_reduction <maximumf>, %195, %cst_77 [1] : vector<5x5xf32> to vector<5xf32>
    %197 = vector.shape_cast %196 : vector<5xf32> to vector<5x1xf32>
    %198 = vector.broadcast %197 : vector<5x1xf32> to vector<5x5xf32>
    %199 = arith.subf %195, %198 : vector<5x5xf32>
    %200 = math.exp %199 : vector<5x5xf32>
    %cst_78 = arith.constant dense<0.000000e+00> : vector<5xf32>
    %201 = vector.multi_reduction <add>, %200, %cst_78 [1] : vector<5x5xf32> to vector<5xf32>
    %202 = vector.shape_cast %201 : vector<5xf32> to vector<5x1xf32>
    %203 = tpu.reciprocal %202 {approx = true} : vector<5x1xf32> -> vector<5x1xf32>
    %204 = vector.broadcast %203 : vector<5x1xf32> to vector<5x5xf32>
    %205 = arith.mulf %200, %204 : vector<5x5xf32>
    %206 = arith.truncf %205 : vector<5x5xf32> to vector<5x5xbf16>
    %207 = arith.truncf %192 : vector<5x16xf32> to vector<5x16xbf16>
    %cst_79 = arith.constant dense<0.000000e+00> : vector<5x16xf32>
    %208 = tpu.matmul %206, %207, %cst_79 {dimension_numbers = #tpu.dot_dimension_numbers<[1], [0], [0], [1], [0, 0, 1, 1], [], []>} : vector<5x5xbf16>, vector<5x16xbf16>, vector<5x16xf32> -> vector<5x16xf32>
    %c5_80 = arith.constant 5 : index
    %c32_81 = arith.constant 32 : index
    %209 = vector.load %arg30[%c5_80, %c32_81] : memref<10x64xf32, #tpu.memory_space<vmem>>, vector<5x16xf32>
    tpu.vector_store %arg30[%c5_80, %c32_81], %208 {strides = array<i32>} : memref<10x64xf32, #tpu.memory_space<vmem>>, vector<5x16xf32>,
    %210 = vector.extract_strided_slice %69 {offsets = [5, 48], sizes = [5, 16], strides = [1, 1]} : vector<10x192xf32> to vector<5x16xf32>
    %211 = vector.extract_strided_slice %69 {offsets = [5, 112], sizes = [5, 16], strides = [1, 1]} : vector<10x192xf32> to vector<5x16xf32>
    %212 = vector.extract_strided_slice %69 {offsets = [5, 176], sizes = [5, 16], strides = [1, 1]} : vector<10x192xf32> to vector<5x16xf32>
    %213 = arith.truncf %210 : vector<5x16xf32> to vector<5x16xbf16>
    %214 = arith.truncf %211 : vector<5x16xf32> to vector<5x16xbf16>
    %cst_82 = arith.constant dense<0.000000e+00> : vector<5x5xf32>
    %215 = tpu.matmul %213, %214, %cst_82 {dimension_numbers = #tpu.dot_dimension_numbers<[1], [1], [0], [0], [0, 0, 1, 0], [], []>} : vector<5x16xbf16>, vector<5x16xbf16>, vector<5x5xf32> -> vector<5x5xf32>
    %cst_83 = arith.constant dense<0xFF800000> : vector<5xf32>
    %216 = vector.multi_reduction <maximumf>, %215, %cst_83 [1] : vector<5x5xf32> to vector<5xf32>
    %217 = vector.shape_cast %216 : vector<5xf32> to vector<5x1xf32>
    %218 = vector.broadcast %217 : vector<5x1xf32> to vector<5x5xf32>
    %219 = arith.subf %215, %218 : vector<5x5xf32>
    %220 = math.exp %219 : vector<5x5xf32>
    %cst_84 = arith.constant dense<0.000000e+00> : vector<5xf32>
    %221 = vector.multi_reduction <add>, %220, %cst_84 [1] : vector<5x5xf32> to vector<5xf32>
    %222 = vector.shape_cast %221 : vector<5xf32> to vector<5x1xf32>
    %223 = tpu.reciprocal %222 {approx = true} : vector<5x1xf32> -> vector<5x1xf32>
    %224 = vector.broadcast %223 : vector<5x1xf32> to vector<5x5xf32>
    %225 = arith.mulf %220, %224 : vector<5x5xf32>
    %226 = arith.truncf %225 : vector<5x5xf32> to vector<5x5xbf16>
    %227 = arith.truncf %212 : vector<5x16xf32> to vector<5x16xbf16>
    %cst_85 = arith.constant dense<0.000000e+00> : vector<5x16xf32>
    %228 = tpu.matmul %226, %227, %cst_85 {dimension_numbers = #tpu.dot_dimension_numbers<[1], [0], [0], [1], [0, 0, 1, 1], [], []>} : vector<5x5xbf16>, vector<5x16xbf16>, vector<5x16xf32> -> vector<5x16xf32>
    %c5_86 = arith.constant 5 : index
    %c48_87 = arith.constant 48 : index
    %229 = vector.load %arg30[%c5_86, %c48_87] : memref<10x64xf32, #tpu.memory_space<vmem>>, vector<5x16xf32>
    tpu.vector_store %arg30[%c5_86, %c48_87], %228 {strides = array<i32>} : memref<10x64xf32, #tpu.memory_space<vmem>>, vector<5x16xf32>,
    %c0_88 = arith.constant 0 : index
    %c0_89 = arith.constant 0 : index
    %230 = vector.load %arg30[%c0_88, %c0_89] : memref<10x64xf32, #tpu.memory_space<vmem>>, vector<10x64xf32>
    %231 = arith.truncf %230 : vector<10x64xf32> to vector<10x64xbf16>
    %c0_90 = arith.constant 0 : index
    %c0_91 = arith.constant 0 : index
    %c0_92 = arith.constant 0 : index
    %232 = vector.load %arg10[%c0_90, %c0_91, %c0_92] : memref<2x64x64xbf16, #tpu.memory_space<vmem>>, vector<1x64x64xbf16>
    %233 = vector.shape_cast %232 : vector<1x64x64xbf16> to vector<64x64xbf16>
    %cst_93 = arith.constant dense<0.000000e+00> : vector<10x64xf32>
    %234 = tpu.matmul %231, %233, %cst_93 {dimension_numbers = #tpu.dot_dimension_numbers<[1], [0], [0], [1], [0, 0, 1, 1], [], []>} : vector<10x64xbf16>, vector<64x64xbf16>, vector<10x64xf32> -> vector<10x64xf32>
    %235 = arith.addf %37, %234 : vector<10x64xf32>
    %c0_94 = arith.constant 0 : index
    %c0_95 = arith.constant 0 : index
    %c0_96 = arith.constant 0 : index
    %236 = vector.load %arg11[%c0_94, %c0_95, %c0_96] : memref<2x1x64xf32, #tpu.memory_space<vmem>>, vector<1x1x64xf32>
    %237 = vector.shape_cast %236 : vector<1x1x64xf32> to vector<1x64xf32>
    %238 = vector.broadcast %237 : vector<1x64xf32> to vector<10x64xf32>
    %239 = arith.addf %235, %238 : vector<10x64xf32>
    %c0_97 = arith.constant 0 : index
    %c0_98 = arith.constant 0 : index
    %c0_99 = arith.constant 0 : index
    %240 = vector.load %arg12[%c0_97, %c0_98, %c0_99] : memref<2x1x64xf32, #tpu.memory_space<vmem>>, vector<1x1x64xf32>
    %241 = vector.shape_cast %240 : vector<1x1x64xf32> to vector<1x64xf32>
    %c0_100 = arith.constant 0 : index
    %c0_101 = arith.constant 0 : index
    %c0_102 = arith.constant 0 : index
    %242 = vector.load %arg13[%c0_100, %c0_101, %c0_102] : memref<2x1x64xf32, #tpu.memory_space<vmem>>, vector<1x1x64xf32>
    %243 = vector.shape_cast %242 : vector<1x1x64xf32> to vector<1x64xf32>
    %cst_103 = arith.constant dense<0.000000e+00> : vector<10xf32>
    %244 = vector.multi_reduction <add>, %239, %cst_103 [1] : vector<10x64xf32> to vector<10xf32>
    %245 = vector.shape_cast %244 : vector<10xf32> to vector<10x1xf32>
    %cst_104 = arith.constant 6.400000e+01 : f32
    %246 = vector.broadcast %cst_104 : f32 to vector<10x1xf32>
    %247 = arith.divf %245, %246 : vector<10x1xf32>
    %248 = vector.broadcast %247 : vector<10x1xf32> to vector<10x64xf32>
    %249 = arith.subf %239, %248 : vector<10x64xf32>
    %250 = arith.mulf %249, %249 : vector<10x64xf32>
    %cst_105 = arith.constant dense<0.000000e+00> : vector<10xf32>
    %251 = vector.multi_reduction <add>, %250, %cst_105 [1] : vector<10x64xf32> to vector<10xf32>
    %252 = vector.shape_cast %251 : vector<10xf32> to vector<10x1xf32>
    %cst_106 = arith.constant 6.400000e+01 : f32
    %253 = vector.broadcast %cst_106 : f32 to vector<10x1xf32>
    %254 = arith.divf %252, %253 : vector<10x1xf32>
    %cst_107 = arith.constant 9.99999974E-6 : f32
    %255 = vector.broadcast %cst_107 : f32 to vector<10x1xf32>
    %256 = arith.addf %254, %255 : vector<10x1xf32>
    %257 = math.rsqrt %256 : vector<10x1xf32>
    %258 = vector.broadcast %257 : vector<10x1xf32> to vector<10x64xf32>
    %259 = arith.mulf %249, %258 : vector<10x64xf32>
    %260 = vector.broadcast %241 : vector<1x64xf32> to vector<10x64xf32>
    %261 = arith.mulf %259, %260 : vector<10x64xf32>
    %262 = vector.broadcast %243 : vector<1x64xf32> to vector<10x64xf32>
    %263 = arith.addf %261, %262 : vector<10x64xf32>
    %264 = arith.truncf %263 : vector<10x64xf32> to vector<10x64xbf16>
    %c0_108 = arith.constant 0 : index
    %c0_109 = arith.constant 0 : index
    %c0_110 = arith.constant 0 : index
    %265 = vector.load %arg14[%c0_108, %c0_109, %c0_110] : memref<2x64x256xbf16, #tpu.memory_space<vmem>>, vector<1x64x256xbf16>
    %266 = vector.shape_cast %265 : vector<1x64x256xbf16> to vector<64x256xbf16>
    %cst_111 = arith.constant dense<0.000000e+00> : vector<10x256xf32>
    %267 = tpu.matmul %264, %266, %cst_111 {dimension_numbers = #tpu.dot_dimension_numbers<[1], [0], [0], [1], [0, 0, 1, 1], [], []>} : vector<10x64xbf16>, vector<64x256xbf16>, vector<10x256xf32> -> vector<10x256xf32>
    %c0_112 = arith.constant 0 : index
    %c0_113 = arith.constant 0 : index
    %c0_114 = arith.constant 0 : index
    %268 = vector.load %arg15[%c0_112, %c0_113, %c0_114] : memref<2x1x256xf32, #tpu.memory_space<vmem>>, vector<1x1x256xf32>
    %269 = vector.shape_cast %268 : vector<1x1x256xf32> to vector<1x256xf32>
    %270 = vector.broadcast %269 : vector<1x256xf32> to vector<10x256xf32>
    %271 = arith.addf %267, %270 : vector<10x256xf32>
    %272 = arith.mulf %271, %271 : vector<10x256xf32>
    %273 = arith.mulf %271, %272 : vector<10x256xf32>
    %cst_115 = arith.constant 4.471500e-02 : f32
    %274 = vector.broadcast %cst_115 : f32 to vector<10x256xf32>
    %275 = arith.mulf %274, %273 : vector<10x256xf32>
    %276 = arith.addf %271, %275 : vector<10x256xf32>
    %cst_116 = arith.constant 0.797884583 : f32
    %277 = vector.broadcast %cst_116 : f32 to vector<10x256xf32>
    %278 = arith.mulf %277, %276 : vector<10x256xf32>
    %279 = math.tanh %278 : vector<10x256xf32>
    %cst_117 = arith.constant 1.000000e+00 : f32
    %280 = vector.broadcast %cst_117 : f32 to vector<10x256xf32>
    %281 = arith.addf %280, %279 : vector<10x256xf32>
    %cst_118 = arith.constant 5.000000e-01 : f32
    %282 = vector.broadcast %cst_118 : f32 to vector<10x256xf32>
    %283 = arith.mulf %282, %281 : vector<10x256xf32>
    %284 = arith.mulf %271, %283 : vector<10x256xf32>
    %285 = arith.truncf %284 : vector<10x256xf32> to vector<10x256xbf16>
    %c0_119 = arith.constant 0 : index
    %c0_120 = arith.constant 0 : index
    %c0_121 = arith.constant 0 : index
    %286 = vector.load %arg16[%c0_119, %c0_120, %c0_121] : memref<2x256x64xbf16, #tpu.memory_space<vmem>>, vector<1x256x64xbf16>
    %287 = vector.shape_cast %286 : vector<1x256x64xbf16> to vector<256x64xbf16>
    %cst_122 = arith.constant dense<0.000000e+00> : vector<10x64xf32>
    %288 = tpu.matmul %285, %287, %cst_122 {dimension_numbers = #tpu.dot_dimension_numbers<[1], [0], [0], [1], [0, 0, 1, 1], [], []>} : vector<10x256xbf16>, vector<256x64xbf16>, vector<10x64xf32> -> vector<10x64xf32>
    %289 = arith.addf %239, %288 : vector<10x64xf32>
    %c0_123 = arith.constant 0 : index
    %c0_124 = arith.constant 0 : index
    %c0_125 = arith.constant 0 : index
    %290 = vector.load %arg17[%c0_123, %c0_124, %c0_125] : memref<2x1x64xf32, #tpu.memory_space<vmem>>, vector<1x1x64xf32>
    %291 = vector.shape_cast %290 : vector<1x1x64xf32> to vector<1x64xf32>
    %292 = vector.broadcast %291 : vector<1x64xf32> to vector<10x64xf32>
    %293 = arith.addf %289, %292 : vector<10x64xf32>
    %c1_126 = arith.constant 1 : index
    %c0_127 = arith.constant 0 : index
    %c0_128 = arith.constant 0 : index
    %294 = vector.load %arg6[%c1_126, %c0_127, %c0_128] : memref<2x1x64xf32, #tpu.memory_space<vmem>>, vector<1x1x64xf32>
    %295 = vector.shape_cast %294 : vector<1x1x64xf32> to vector<1x64xf32>
    %c1_129 = arith.constant 1 : index
    %c0_130 = arith.constant 0 : index
    %c0_131 = arith.constant 0 : index
    %296 = vector.load %arg7[%c1_129, %c0_130, %c0_131] : memref<2x1x64xf32, #tpu.memory_space<vmem>>, vector<1x1x64xf32>
    %297 = vector.shape_cast %296 : vector<1x1x64xf32> to vector<1x64xf32>
    %cst_132 = arith.constant dense<0.000000e+00> : vector<10xf32>
    %298 = vector.multi_reduction <add>, %293, %cst_132 [1] : vector<10x64xf32> to vector<10xf32>
    %299 = vector.shape_cast %298 : vector<10xf32> to vector<10x1xf32>
    %cst_133 = arith.constant 6.400000e+01 : f32
    %300 = vector.broadcast %cst_133 : f32 to vector<10x1xf32>
    %301 = arith.divf %299, %300 : vector<10x1xf32>
    %302 = vector.broadcast %301 : vector<10x1xf32> to vector<10x64xf32>
    %303 = arith.subf %293, %302 : vector<10x64xf32>
    %304 = arith.mulf %303, %303 : vector<10x64xf32>
    %cst_134 = arith.constant dense<0.000000e+00> : vector<10xf32>
    %305 = vector.multi_reduction <add>, %304, %cst_134 [1] : vector<10x64xf32> to vector<10xf32>
    %306 = vector.shape_cast %305 : vector<10xf32> to vector<10x1xf32>
    %cst_135 = arith.constant 6.400000e+01 : f32
    %307 = vector.broadcast %cst_135 : f32 to vector<10x1xf32>
    %308 = arith.divf %306, %307 : vector<10x1xf32>
    %cst_136 = arith.constant 9.99999974E-6 : f32
    %309 = vector.broadcast %cst_136 : f32 to vector<10x1xf32>
    %310 = arith.addf %308, %309 : vector<10x1xf32>
    %311 = math.rsqrt %310 : vector<10x1xf32>
    %312 = vector.broadcast %311 : vector<10x1xf32> to vector<10x64xf32>
    %313 = arith.mulf %303, %312 : vector<10x64xf32>
    %314 = vector.broadcast %295 : vector<1x64xf32> to vector<10x64xf32>
    %315 = arith.mulf %313, %314 : vector<10x64xf32>
    %316 = vector.broadcast %297 : vector<1x64xf32> to vector<10x64xf32>
    %317 = arith.addf %315, %316 : vector<10x64xf32>
    %318 = arith.truncf %317 : vector<10x64xf32> to vector<10x64xbf16>
    %c1_137 = arith.constant 1 : index
    %c0_138 = arith.constant 0 : index
    %c0_139 = arith.constant 0 : index
    %319 = vector.load %arg8[%c1_137, %c0_138, %c0_139] : memref<2x64x192xbf16, #tpu.memory_space<vmem>>, vector<1x64x192xbf16>
    %320 = vector.shape_cast %319 : vector<1x64x192xbf16> to vector<64x192xbf16>
    %cst_140 = arith.constant dense<0.000000e+00> : vector<10x192xf32>
    %321 = tpu.matmul %318, %320, %cst_140 {dimension_numbers = #tpu.dot_dimension_numbers<[1], [0], [0], [1], [0, 0, 1, 1], [], []>} : vector<10x64xbf16>, vector<64x192xbf16>, vector<10x192xf32> -> vector<10x192xf32>
    %c1_141 = arith.constant 1 : index
    %c0_142 = arith.constant 0 : index
    %c0_143 = arith.constant 0 : index
    %322 = vector.load %arg9[%c1_141, %c0_142, %c0_143] : memref<2x1x192xf32, #tpu.memory_space<vmem>>, vector<1x1x192xf32>
    %323 = vector.shape_cast %322 : vector<1x1x192xf32> to vector<1x192xf32>
    %324 = vector.broadcast %323 : vector<1x192xf32> to vector<10x192xf32>
    %325 = arith.addf %321, %324 : vector<10x192xf32>
    %326 = vector.extract_strided_slice %325 {offsets = [0, 0], sizes = [5, 16], strides = [1, 1]} : vector<10x192xf32> to vector<5x16xf32>
    %327 = vector.extract_strided_slice %325 {offsets = [0, 64], sizes = [5, 16], strides = [1, 1]} : vector<10x192xf32> to vector<5x16xf32>
    %328 = vector.extract_strided_slice %325 {offsets = [0, 128], sizes = [5, 16], strides = [1, 1]} : vector<10x192xf32> to vector<5x16xf32>
    %329 = arith.truncf %326 : vector<5x16xf32> to vector<5x16xbf16>
    %330 = arith.truncf %327 : vector<5x16xf32> to vector<5x16xbf16>
    %cst_144 = arith.constant dense<0.000000e+00> : vector<5x5xf32>
    %331 = tpu.matmul %329, %330, %cst_144 {dimension_numbers = #tpu.dot_dimension_numbers<[1], [1], [0], [0], [0, 0, 1, 0], [], []>} : vector<5x16xbf16>, vector<5x16xbf16>, vector<5x5xf32> -> vector<5x5xf32>
    %cst_145 = arith.constant dense<0xFF800000> : vector<5xf32>
    %332 = vector.multi_reduction <maximumf>, %331, %cst_145 [1] : vector<5x5xf32> to vector<5xf32>
    %333 = vector.shape_cast %332 : vector<5xf32> to vector<5x1xf32>
    %334 = vector.broadcast %333 : vector<5x1xf32> to vector<5x5xf32>
    %335 = arith.subf %331, %334 : vector<5x5xf32>
    %336 = math.exp %335 : vector<5x5xf32>
    %cst_146 = arith.constant dense<0.000000e+00> : vector<5xf32>
    %337 = vector.multi_reduction <add>, %336, %cst_146 [1] : vector<5x5xf32> to vector<5xf32>
    %338 = vector.shape_cast %337 : vector<5xf32> to vector<5x1xf32>
    %339 = tpu.reciprocal %338 {approx = true} : vector<5x1xf32> -> vector<5x1xf32>
    %340 = vector.broadcast %339 : vector<5x1xf32> to vector<5x5xf32>
    %341 = arith.mulf %336, %340 : vector<5x5xf32>
    %342 = arith.truncf %341 : vector<5x5xf32> to vector<5x5xbf16>
    %343 = arith.truncf %328 : vector<5x16xf32> to vector<5x16xbf16>
    %cst_147 = arith.constant dense<0.000000e+00> : vector<5x16xf32>
    %344 = tpu.matmul %342, %343, %cst_147 {dimension_numbers = #tpu.dot_dimension_numbers<[1], [0], [0], [1], [0, 0, 1, 1], [], []>} : vector<5x5xbf16>, vector<5x16xbf16>, vector<5x16xf32> -> vector<5x16xf32>
    %c0_148 = arith.constant 0 : index
    %c0_149 = arith.constant 0 : index
    %345 = vector.load %arg30[%c0_148, %c0_149] : memref<10x64xf32, #tpu.memory_space<vmem>>, vector<5x16xf32>
    tpu.vector_store %arg30[%c0_148, %c0_149], %344 {strides = array<i32>} : memref<10x64xf32, #tpu.memory_space<vmem>>, vector<5x16xf32>,
    %346 = vector.extract_strided_slice %325 {offsets = [0, 16], sizes = [5, 16], strides = [1, 1]} : vector<10x192xf32> to vector<5x16xf32>
    %347 = vector.extract_strided_slice %325 {offsets = [0, 80], sizes = [5, 16], strides = [1, 1]} : vector<10x192xf32> to vector<5x16xf32>
    %348 = vector.extract_strided_slice %325 {offsets = [0, 144], sizes = [5, 16], strides = [1, 1]} : vector<10x192xf32> to vector<5x16xf32>
    %349 = arith.truncf %346 : vector<5x16xf32> to vector<5x16xbf16>
    %350 = arith.truncf %347 : vector<5x16xf32> to vector<5x16xbf16>
    %cst_150 = arith.constant dense<0.000000e+00> : vector<5x5xf32>
    %351 = tpu.matmul %349, %350, %cst_150 {dimension_numbers = #tpu.dot_dimension_numbers<[1], [1], [0], [0], [0, 0, 1, 0], [], []>} : vector<5x16xbf16>, vector<5x16xbf16>, vector<5x5xf32> -> vector<5x5xf32>
    %cst_151 = arith.constant dense<0xFF800000> : vector<5xf32>
    %352 = vector.multi_reduction <maximumf>, %351, %cst_151 [1] : vector<5x5xf32> to vector<5xf32>
    %353 = vector.shape_cast %352 : vector<5xf32> to vector<5x1xf32>
    %354 = vector.broadcast %353 : vector<5x1xf32> to vector<5x5xf32>
    %355 = arith.subf %351, %354 : vector<5x5xf32>
    %356 = math.exp %355 : vector<5x5xf32>
    %cst_152 = arith.constant dense<0.000000e+00> : vector<5xf32>
    %357 = vector.multi_reduction <add>, %356, %cst_152 [1] : vector<5x5xf32> to vector<5xf32>
    %358 = vector.shape_cast %357 : vector<5xf32> to vector<5x1xf32>
    %359 = tpu.reciprocal %358 {approx = true} : vector<5x1xf32> -> vector<5x1xf32>
    %360 = vector.broadcast %359 : vector<5x1xf32> to vector<5x5xf32>
    %361 = arith.mulf %356, %360 : vector<5x5xf32>
    %362 = arith.truncf %361 : vector<5x5xf32> to vector<5x5xbf16>
    %363 = arith.truncf %348 : vector<5x16xf32> to vector<5x16xbf16>
    %cst_153 = arith.constant dense<0.000000e+00> : vector<5x16xf32>
    %364 = tpu.matmul %362, %363, %cst_153 {dimension_numbers = #tpu.dot_dimension_numbers<[1], [0], [0], [1], [0, 0, 1, 1], [], []>} : vector<5x5xbf16>, vector<5x16xbf16>, vector<5x16xf32> -> vector<5x16xf32>
    %c0_154 = arith.constant 0 : index
    %c16_155 = arith.constant 16 : index
    %365 = vector.load %arg30[%c0_154, %c16_155] : memref<10x64xf32, #tpu.memory_space<vmem>>, vector<5x16xf32>
    tpu.vector_store %arg30[%c0_154, %c16_155], %364 {strides = array<i32>} : memref<10x64xf32, #tpu.memory_space<vmem>>, vector<5x16xf32>,
    %366 = vector.extract_strided_slice %325 {offsets = [0, 32], sizes = [5, 16], strides = [1, 1]} : vector<10x192xf32> to vector<5x16xf32>
    %367 = vector.extract_strided_slice %325 {offsets = [0, 96], sizes = [5, 16], strides = [1, 1]} : vector<10x192xf32> to vector<5x16xf32>
    %368 = vector.extract_strided_slice %325 {offsets = [0, 160], sizes = [5, 16], strides = [1, 1]} : vector<10x192xf32> to vector<5x16xf32>
    %369 = arith.truncf %366 : vector<5x16xf32> to vector<5x16xbf16>
    %370 = arith.truncf %367 : vector<5x16xf32> to vector<5x16xbf16>
    %cst_156 = arith.constant dense<0.000000e+00> : vector<5x5xf32>
    %371 = tpu.matmul %369, %370, %cst_156 {dimension_numbers = #tpu.dot_dimension_numbers<[1], [1], [0], [0], [0, 0, 1, 0], [], []>} : vector<5x16xbf16>, vector<5x16xbf16>, vector<5x5xf32> -> vector<5x5xf32>
    %cst_157 = arith.constant dense<0xFF800000> : vector<5xf32>
    %372 = vector.multi_reduction <maximumf>, %371, %cst_157 [1] : vector<5x5xf32> to vector<5xf32>
    %373 = vector.shape_cast %372 : vector<5xf32> to vector<5x1xf32>
    %374 = vector.broadcast %373 : vector<5x1xf32> to vector<5x5xf32>
    %375 = arith.subf %371, %374 : vector<5x5xf32>
    %376 = math.exp %375 : vector<5x5xf32>
    %cst_158 = arith.constant dense<0.000000e+00> : vector<5xf32>
    %377 = vector.multi_reduction <add>, %376, %cst_158 [1] : vector<5x5xf32> to vector<5xf32>
    %378 = vector.shape_cast %377 : vector<5xf32> to vector<5x1xf32>
    %379 = tpu.reciprocal %378 {approx = true} : vector<5x1xf32> -> vector<5x1xf32>
    %380 = vector.broadcast %379 : vector<5x1xf32> to vector<5x5xf32>
    %381 = arith.mulf %376, %380 : vector<5x5xf32>
    %382 = arith.truncf %381 : vector<5x5xf32> to vector<5x5xbf16>
    %383 = arith.truncf %368 : vector<5x16xf32> to vector<5x16xbf16>
    %cst_159 = arith.constant dense<0.000000e+00> : vector<5x16xf32>
    %384 = tpu.matmul %382, %383, %cst_159 {dimension_numbers = #tpu.dot_dimension_numbers<[1], [0], [0], [1], [0, 0, 1, 1], [], []>} : vector<5x5xbf16>, vector<5x16xbf16>, vector<5x16xf32> -> vector<5x16xf32>
    %c0_160 = arith.constant 0 : index
    %c32_161 = arith.constant 32 : index
    %385 = vector.load %arg30[%c0_160, %c32_161] : memref<10x64xf32, #tpu.memory_space<vmem>>, vector<5x16xf32>
    tpu.vector_store %arg30[%c0_160, %c32_161], %384 {strides = array<i32>} : memref<10x64xf32, #tpu.memory_space<vmem>>, vector<5x16xf32>,
    %386 = vector.extract_strided_slice %325 {offsets = [0, 48], sizes = [5, 16], strides = [1, 1]} : vector<10x192xf32> to vector<5x16xf32>
    %387 = vector.extract_strided_slice %325 {offsets = [0, 112], sizes = [5, 16], strides = [1, 1]} : vector<10x192xf32> to vector<5x16xf32>
    %388 = vector.extract_strided_slice %325 {offsets = [0, 176], sizes = [5, 16], strides = [1, 1]} : vector<10x192xf32> to vector<5x16xf32>
    %389 = arith.truncf %386 : vector<5x16xf32> to vector<5x16xbf16>
    %390 = arith.truncf %387 : vector<5x16xf32> to vector<5x16xbf16>
    %cst_162 = arith.constant dense<0.000000e+00> : vector<5x5xf32>
    %391 = tpu.matmul %389, %390, %cst_162 {dimension_numbers = #tpu.dot_dimension_numbers<[1], [1], [0], [0], [0, 0, 1, 0], [], []>} : vector<5x16xbf16>, vector<5x16xbf16>, vector<5x5xf32> -> vector<5x5xf32>
    %cst_163 = arith.constant dense<0xFF800000> : vector<5xf32>
    %392 = vector.multi_reduction <maximumf>, %391, %cst_163 [1] : vector<5x5xf32> to vector<5xf32>
    %393 = vector.shape_cast %392 : vector<5xf32> to vector<5x1xf32>
    %394 = vector.broadcast %393 : vector<5x1xf32> to vector<5x5xf32>
    %395 = arith.subf %391, %394 : vector<5x5xf32>
    %396 = math.exp %395 : vector<5x5xf32>
    %cst_164 = arith.constant dense<0.000000e+00> : vector<5xf32>
    %397 = vector.multi_reduction <add>, %396, %cst_164 [1] : vector<5x5xf32> to vector<5xf32>
    %398 = vector.shape_cast %397 : vector<5xf32> to vector<5x1xf32>
    %399 = tpu.reciprocal %398 {approx = true} : vector<5x1xf32> -> vector<5x1xf32>
    %400 = vector.broadcast %399 : vector<5x1xf32> to vector<5x5xf32>
    %401 = arith.mulf %396, %400 : vector<5x5xf32>
    %402 = arith.truncf %401 : vector<5x5xf32> to vector<5x5xbf16>
    %403 = arith.truncf %388 : vector<5x16xf32> to vector<5x16xbf16>
    %cst_165 = arith.constant dense<0.000000e+00> : vector<5x16xf32>
    %404 = tpu.matmul %402, %403, %cst_165 {dimension_numbers = #tpu.dot_dimension_numbers<[1], [0], [0], [1], [0, 0, 1, 1], [], []>} : vector<5x5xbf16>, vector<5x16xbf16>, vector<5x16xf32> -> vector<5x16xf32>
    %c0_166 = arith.constant 0 : index
    %c48_167 = arith.constant 48 : index
    %405 = vector.load %arg30[%c0_166, %c48_167] : memref<10x64xf32, #tpu.memory_space<vmem>>, vector<5x16xf32>
    tpu.vector_store %arg30[%c0_166, %c48_167], %404 {strides = array<i32>} : memref<10x64xf32, #tpu.memory_space<vmem>>, vector<5x16xf32>,
    %406 = vector.extract_strided_slice %325 {offsets = [5, 0], sizes = [5, 16], strides = [1, 1]} : vector<10x192xf32> to vector<5x16xf32>
    %407 = vector.extract_strided_slice %325 {offsets = [5, 64], sizes = [5, 16], strides = [1, 1]} : vector<10x192xf32> to vector<5x16xf32>
    %408 = vector.extract_strided_slice %325 {offsets = [5, 128], sizes = [5, 16], strides = [1, 1]} : vector<10x192xf32> to vector<5x16xf32>
    %409 = arith.truncf %406 : vector<5x16xf32> to vector<5x16xbf16>
    %410 = arith.truncf %407 : vector<5x16xf32> to vector<5x16xbf16>
    %cst_168 = arith.constant dense<0.000000e+00> : vector<5x5xf32>
    %411 = tpu.matmul %409, %410, %cst_168 {dimension_numbers = #tpu.dot_dimension_numbers<[1], [1], [0], [0], [0, 0, 1, 0], [], []>} : vector<5x16xbf16>, vector<5x16xbf16>, vector<5x5xf32> -> vector<5x5xf32>
    %cst_169 = arith.constant dense<0xFF800000> : vector<5xf32>
    %412 = vector.multi_reduction <maximumf>, %411, %cst_169 [1] : vector<5x5xf32> to vector<5xf32>
    %413 = vector.shape_cast %412 : vector<5xf32> to vector<5x1xf32>
    %414 = vector.broadcast %413 : vector<5x1xf32> to vector<5x5xf32>
    %415 = arith.subf %411, %414 : vector<5x5xf32>
    %416 = math.exp %415 : vector<5x5xf32>
    %cst_170 = arith.constant dense<0.000000e+00> : vector<5xf32>
    %417 = vector.multi_reduction <add>, %416, %cst_170 [1] : vector<5x5xf32> to vector<5xf32>
    %418 = vector.shape_cast %417 : vector<5xf32> to vector<5x1xf32>
    %419 = tpu.reciprocal %418 {approx = true} : vector<5x1xf32> -> vector<5x1xf32>
    %420 = vector.broadcast %419 : vector<5x1xf32> to vector<5x5xf32>
    %421 = arith.mulf %416, %420 : vector<5x5xf32>
    %422 = arith.truncf %421 : vector<5x5xf32> to vector<5x5xbf16>
    %423 = arith.truncf %408 : vector<5x16xf32> to vector<5x16xbf16>
    %cst_171 = arith.constant dense<0.000000e+00> : vector<5x16xf32>
    %424 = tpu.matmul %422, %423, %cst_171 {dimension_numbers = #tpu.dot_dimension_numbers<[1], [0], [0], [1], [0, 0, 1, 1], [], []>} : vector<5x5xbf16>, vector<5x16xbf16>, vector<5x16xf32> -> vector<5x16xf32>
    %c5_172 = arith.constant 5 : index
    %c0_173 = arith.constant 0 : index
    %425 = vector.load %arg30[%c5_172, %c0_173] : memref<10x64xf32, #tpu.memory_space<vmem>>, vector<5x16xf32>
    tpu.vector_store %arg30[%c5_172, %c0_173], %424 {strides = array<i32>} : memref<10x64xf32, #tpu.memory_space<vmem>>, vector<5x16xf32>,
    %426 = vector.extract_strided_slice %325 {offsets = [5, 16], sizes = [5, 16], strides = [1, 1]} : vector<10x192xf32> to vector<5x16xf32>
    %427 = vector.extract_strided_slice %325 {offsets = [5, 80], sizes = [5, 16], strides = [1, 1]} : vector<10x192xf32> to vector<5x16xf32>
    %428 = vector.extract_strided_slice %325 {offsets = [5, 144], sizes = [5, 16], strides = [1, 1]} : vector<10x192xf32> to vector<5x16xf32>
    %429 = arith.truncf %426 : vector<5x16xf32> to vector<5x16xbf16>
    %430 = arith.truncf %427 : vector<5x16xf32> to vector<5x16xbf16>
    %cst_174 = arith.constant dense<0.000000e+00> : vector<5x5xf32>
    %431 = tpu.matmul %429, %430, %cst_174 {dimension_numbers = #tpu.dot_dimension_numbers<[1], [1], [0], [0], [0, 0, 1, 0], [], []>} : vector<5x16xbf16>, vector<5x16xbf16>, vector<5x5xf32> -> vector<5x5xf32>
    %cst_175 = arith.constant dense<0xFF800000> : vector<5xf32>
    %432 = vector.multi_reduction <maximumf>, %431, %cst_175 [1] : vector<5x5xf32> to vector<5xf32>
    %433 = vector.shape_cast %432 : vector<5xf32> to vector<5x1xf32>
    %434 = vector.broadcast %433 : vector<5x1xf32> to vector<5x5xf32>
    %435 = arith.subf %431, %434 : vector<5x5xf32>
    %436 = math.exp %435 : vector<5x5xf32>
    %cst_176 = arith.constant dense<0.000000e+00> : vector<5xf32>
    %437 = vector.multi_reduction <add>, %436, %cst_176 [1] : vector<5x5xf32> to vector<5xf32>
    %438 = vector.shape_cast %437 : vector<5xf32> to vector<5x1xf32>
    %439 = tpu.reciprocal %438 {approx = true} : vector<5x1xf32> -> vector<5x1xf32>
    %440 = vector.broadcast %439 : vector<5x1xf32> to vector<5x5xf32>
    %441 = arith.mulf %436, %440 : vector<5x5xf32>
    %442 = arith.truncf %441 : vector<5x5xf32> to vector<5x5xbf16>
    %443 = arith.truncf %428 : vector<5x16xf32> to vector<5x16xbf16>
    %cst_177 = arith.constant dense<0.000000e+00> : vector<5x16xf32>
    %444 = tpu.matmul %442, %443, %cst_177 {dimension_numbers = #tpu.dot_dimension_numbers<[1], [0], [0], [1], [0, 0, 1, 1], [], []>} : vector<5x5xbf16>, vector<5x16xbf16>, vector<5x16xf32> -> vector<5x16xf32>
    %c5_178 = arith.constant 5 : index
    %c16_179 = arith.constant 16 : index
    %445 = vector.load %arg30[%c5_178, %c16_179] : memref<10x64xf32, #tpu.memory_space<vmem>>, vector<5x16xf32>
    tpu.vector_store %arg30[%c5_178, %c16_179], %444 {strides = array<i32>} : memref<10x64xf32, #tpu.memory_space<vmem>>, vector<5x16xf32>,
    %446 = vector.extract_strided_slice %325 {offsets = [5, 32], sizes = [5, 16], strides = [1, 1]} : vector<10x192xf32> to vector<5x16xf32>
    %447 = vector.extract_strided_slice %325 {offsets = [5, 96], sizes = [5, 16], strides = [1, 1]} : vector<10x192xf32> to vector<5x16xf32>
    %448 = vector.extract_strided_slice %325 {offsets = [5, 160], sizes = [5, 16], strides = [1, 1]} : vector<10x192xf32> to vector<5x16xf32>
    %449 = arith.truncf %446 : vector<5x16xf32> to vector<5x16xbf16>
    %450 = arith.truncf %447 : vector<5x16xf32> to vector<5x16xbf16>
    %cst_180 = arith.constant dense<0.000000e+00> : vector<5x5xf32>
    %451 = tpu.matmul %449, %450, %cst_180 {dimension_numbers = #tpu.dot_dimension_numbers<[1], [1], [0], [0], [0, 0, 1, 0], [], []>} : vector<5x16xbf16>, vector<5x16xbf16>, vector<5x5xf32> -> vector<5x5xf32>
    %cst_181 = arith.constant dense<0xFF800000> : vector<5xf32>
    %452 = vector.multi_reduction <maximumf>, %451, %cst_181 [1] : vector<5x5xf32> to vector<5xf32>
    %453 = vector.shape_cast %452 : vector<5xf32> to vector<5x1xf32>
    %454 = vector.broadcast %453 : vector<5x1xf32> to vector<5x5xf32>
    %455 = arith.subf %451, %454 : vector<5x5xf32>
    %456 = math.exp %455 : vector<5x5xf32>
    %cst_182 = arith.constant dense<0.000000e+00> : vector<5xf32>
    %457 = vector.multi_reduction <add>, %456, %cst_182 [1] : vector<5x5xf32> to vector<5xf32>
    %458 = vector.shape_cast %457 : vector<5xf32> to vector<5x1xf32>
    %459 = tpu.reciprocal %458 {approx = true} : vector<5x1xf32> -> vector<5x1xf32>
    %460 = vector.broadcast %459 : vector<5x1xf32> to vector<5x5xf32>
    %461 = arith.mulf %456, %460 : vector<5x5xf32>
    %462 = arith.truncf %461 : vector<5x5xf32> to vector<5x5xbf16>
    %463 = arith.truncf %448 : vector<5x16xf32> to vector<5x16xbf16>
    %cst_183 = arith.constant dense<0.000000e+00> : vector<5x16xf32>
    %464 = tpu.matmul %462, %463, %cst_183 {dimension_numbers = #tpu.dot_dimension_numbers<[1], [0], [0], [1], [0, 0, 1, 1], [], []>} : vector<5x5xbf16>, vector<5x16xbf16>, vector<5x16xf32> -> vector<5x16xf32>
    %c5_184 = arith.constant 5 : index
    %c32_185 = arith.constant 32 : index
    %465 = vector.load %arg30[%c5_184, %c32_185] : memref<10x64xf32, #tpu.memory_space<vmem>>, vector<5x16xf32>
    tpu.vector_store %arg30[%c5_184, %c32_185], %464 {strides = array<i32>} : memref<10x64xf32, #tpu.memory_space<vmem>>, vector<5x16xf32>,
    %466 = vector.extract_strided_slice %325 {offsets = [5, 48], sizes = [5, 16], strides = [1, 1]} : vector<10x192xf32> to vector<5x16xf32>
    %467 = vector.extract_strided_slice %325 {offsets = [5, 112], sizes = [5, 16], strides = [1, 1]} : vector<10x192xf32> to vector<5x16xf32>
    %468 = vector.extract_strided_slice %325 {offsets = [5, 176], sizes = [5, 16], strides = [1, 1]} : vector<10x192xf32> to vector<5x16xf32>
    %469 = arith.truncf %466 : vector<5x16xf32> to vector<5x16xbf16>
    %470 = arith.truncf %467 : vector<5x16xf32> to vector<5x16xbf16>
    %cst_186 = arith.constant dense<0.000000e+00> : vector<5x5xf32>
    %471 = tpu.matmul %469, %470, %cst_186 {dimension_numbers = #tpu.dot_dimension_numbers<[1], [1], [0], [0], [0, 0, 1, 0], [], []>} : vector<5x16xbf16>, vector<5x16xbf16>, vector<5x5xf32> -> vector<5x5xf32>
    %cst_187 = arith.constant dense<0xFF800000> : vector<5xf32>
    %472 = vector.multi_reduction <maximumf>, %471, %cst_187 [1] : vector<5x5xf32> to vector<5xf32>
    %473 = vector.shape_cast %472 : vector<5xf32> to vector<5x1xf32>
    %474 = vector.broadcast %473 : vector<5x1xf32> to vector<5x5xf32>
    %475 = arith.subf %471, %474 : vector<5x5xf32>
    %476 = math.exp %475 : vector<5x5xf32>
    %cst_188 = arith.constant dense<0.000000e+00> : vector<5xf32>
    %477 = vector.multi_reduction <add>, %476, %cst_188 [1] : vector<5x5xf32> to vector<5xf32>
    %478 = vector.shape_cast %477 : vector<5xf32> to vector<5x1xf32>
    %479 = tpu.reciprocal %478 {approx = true} : vector<5x1xf32> -> vector<5x1xf32>
    %480 = vector.broadcast %479 : vector<5x1xf32> to vector<5x5xf32>
    %481 = arith.mulf %476, %480 : vector<5x5xf32>
    %482 = arith.truncf %481 : vector<5x5xf32> to vector<5x5xbf16>
    %483 = arith.truncf %468 : vector<5x16xf32> to vector<5x16xbf16>
    %cst_189 = arith.constant dense<0.000000e+00> : vector<5x16xf32>
    %484 = tpu.matmul %482, %483, %cst_189 {dimension_numbers = #tpu.dot_dimension_numbers<[1], [0], [0], [1], [0, 0, 1, 1], [], []>} : vector<5x5xbf16>, vector<5x16xbf16>, vector<5x16xf32> -> vector<5x16xf32>
    %c5_190 = arith.constant 5 : index
    %c48_191 = arith.constant 48 : index
    %485 = vector.load %arg30[%c5_190, %c48_191] : memref<10x64xf32, #tpu.memory_space<vmem>>, vector<5x16xf32>
    tpu.vector_store %arg30[%c5_190, %c48_191], %484 {strides = array<i32>} : memref<10x64xf32, #tpu.memory_space<vmem>>, vector<5x16xf32>,
    %c0_192 = arith.constant 0 : index
    %c0_193 = arith.constant 0 : index
    %486 = vector.load %arg30[%c0_192, %c0_193] : memref<10x64xf32, #tpu.memory_space<vmem>>, vector<10x64xf32>
    %487 = arith.truncf %486 : vector<10x64xf32> to vector<10x64xbf16>
    %c1_194 = arith.constant 1 : index
    %c0_195 = arith.constant 0 : index
    %c0_196 = arith.constant 0 : index
    %488 = vector.load %arg10[%c1_194, %c0_195, %c0_196] : memref<2x64x64xbf16, #tpu.memory_space<vmem>>, vector<1x64x64xbf16>
    %489 = vector.shape_cast %488 : vector<1x64x64xbf16> to vector<64x64xbf16>
    %cst_197 = arith.constant dense<0.000000e+00> : vector<10x64xf32>
    %490 = tpu.matmul %487, %489, %cst_197 {dimension_numbers = #tpu.dot_dimension_numbers<[1], [0], [0], [1], [0, 0, 1, 1], [], []>} : vector<10x64xbf16>, vector<64x64xbf16>, vector<10x64xf32> -> vector<10x64xf32>
    %491 = arith.addf %293, %490 : vector<10x64xf32>
    %c1_198 = arith.constant 1 : index
    %c0_199 = arith.constant 0 : index
    %c0_200 = arith.constant 0 : index
    %492 = vector.load %arg11[%c1_198, %c0_199, %c0_200] : memref<2x1x64xf32, #tpu.memory_space<vmem>>, vector<1x1x64xf32>
    %493 = vector.shape_cast %492 : vector<1x1x64xf32> to vector<1x64xf32>
    %494 = vector.broadcast %493 : vector<1x64xf32> to vector<10x64xf32>
    %495 = arith.addf %491, %494 : vector<10x64xf32>
    %c1_201 = arith.constant 1 : index
    %c0_202 = arith.constant 0 : index
    %c0_203 = arith.constant 0 : index
    %496 = vector.load %arg12[%c1_201, %c0_202, %c0_203] : memref<2x1x64xf32, #tpu.memory_space<vmem>>, vector<1x1x64xf32>
    %497 = vector.shape_cast %496 : vector<1x1x64xf32> to vector<1x64xf32>
    %c1_204 = arith.constant 1 : index
    %c0_205 = arith.constant 0 : index
    %c0_206 = arith.constant 0 : index
    %498 = vector.load %arg13[%c1_204, %c0_205, %c0_206] : memref<2x1x64xf32, #tpu.memory_space<vmem>>, vector<1x1x64xf32>
    %499 = vector.shape_cast %498 : vector<1x1x64xf32> to vector<1x64xf32>
    %cst_207 = arith.constant dense<0.000000e+00> : vector<10xf32>
    %500 = vector.multi_reduction <add>, %495, %cst_207 [1] : vector<10x64xf32> to vector<10xf32>
    %501 = vector.shape_cast %500 : vector<10xf32> to vector<10x1xf32>
    %cst_208 = arith.constant 6.400000e+01 : f32
    %502 = vector.broadcast %cst_208 : f32 to vector<10x1xf32>
    %503 = arith.divf %501, %502 : vector<10x1xf32>
    %504 = vector.broadcast %503 : vector<10x1xf32> to vector<10x64xf32>
    %505 = arith.subf %495, %504 : vector<10x64xf32>
    %506 = arith.mulf %505, %505 : vector<10x64xf32>
    %cst_209 = arith.constant dense<0.000000e+00> : vector<10xf32>
    %507 = vector.multi_reduction <add>, %506, %cst_209 [1] : vector<10x64xf32> to vector<10xf32>
    %508 = vector.shape_cast %507 : vector<10xf32> to vector<10x1xf32>
    %cst_210 = arith.constant 6.400000e+01 : f32
    %509 = vector.broadcast %cst_210 : f32 to vector<10x1xf32>
    %510 = arith.divf %508, %509 : vector<10x1xf32>
    %cst_211 = arith.constant 9.99999974E-6 : f32
    %511 = vector.broadcast %cst_211 : f32 to vector<10x1xf32>
    %512 = arith.addf %510, %511 : vector<10x1xf32>
    %513 = math.rsqrt %512 : vector<10x1xf32>
    %514 = vector.broadcast %513 : vector<10x1xf32> to vector<10x64xf32>
    %515 = arith.mulf %505, %514 : vector<10x64xf32>
    %516 = vector.broadcast %497 : vector<1x64xf32> to vector<10x64xf32>
    %517 = arith.mulf %515, %516 : vector<10x64xf32>
    %518 = vector.broadcast %499 : vector<1x64xf32> to vector<10x64xf32>
    %519 = arith.addf %517, %518 : vector<10x64xf32>
    %520 = arith.truncf %519 : vector<10x64xf32> to vector<10x64xbf16>
    %c1_212 = arith.constant 1 : index
    %c0_213 = arith.constant 0 : index
    %c0_214 = arith.constant 0 : index
    %521 = vector.load %arg14[%c1_212, %c0_213, %c0_214] : memref<2x64x256xbf16, #tpu.memory_space<vmem>>, vector<1x64x256xbf16>
    %522 = vector.shape_cast %521 : vector<1x64x256xbf16> to vector<64x256xbf16>
    %cst_215 = arith.constant dense<0.000000e+00> : vector<10x256xf32>
    %523 = tpu.matmul %520, %522, %cst_215 {dimension_numbers = #tpu.dot_dimension_numbers<[1], [0], [0], [1], [0, 0, 1, 1], [], []>} : vector<10x64xbf16>, vector<64x256xbf16>, vector<10x256xf32> -> vector<10x256xf32>
    %c1_216 = arith.constant 1 : index
    %c0_217 = arith.constant 0 : index
    %c0_218 = arith.constant 0 : index
    %524 = vector.load %arg15[%c1_216, %c0_217, %c0_218] : memref<2x1x256xf32, #tpu.memory_space<vmem>>, vector<1x1x256xf32>
    %525 = vector.shape_cast %524 : vector<1x1x256xf32> to vector<1x256xf32>
    %526 = vector.broadcast %525 : vector<1x256xf32> to vector<10x256xf32>
    %527 = arith.addf %523, %526 : vector<10x256xf32>
    %528 = arith.mulf %527, %527 : vector<10x256xf32>
    %529 = arith.mulf %527, %528 : vector<10x256xf32>
    %cst_219 = arith.constant 4.471500e-02 : f32
    %530 = vector.broadcast %cst_219 : f32 to vector<10x256xf32>
    %531 = arith.mulf %530, %529 : vector<10x256xf32>
    %532 = arith.addf %527, %531 : vector<10x256xf32>
    %cst_220 = arith.constant 0.797884583 : f32
    %533 = vector.broadcast %cst_220 : f32 to vector<10x256xf32>
    %534 = arith.mulf %533, %532 : vector<10x256xf32>
    %535 = math.tanh %534 : vector<10x256xf32>
    %cst_221 = arith.constant 1.000000e+00 : f32
    %536 = vector.broadcast %cst_221 : f32 to vector<10x256xf32>
    %537 = arith.addf %536, %535 : vector<10x256xf32>
    %cst_222 = arith.constant 5.000000e-01 : f32
    %538 = vector.broadcast %cst_222 : f32 to vector<10x256xf32>
    %539 = arith.mulf %538, %537 : vector<10x256xf32>
    %540 = arith.mulf %527, %539 : vector<10x256xf32>
    %541 = arith.truncf %540 : vector<10x256xf32> to vector<10x256xbf16>
    %c1_223 = arith.constant 1 : index
    %c0_224 = arith.constant 0 : index
    %c0_225 = arith.constant 0 : index
    %542 = vector.load %arg16[%c1_223, %c0_224, %c0_225] : memref<2x256x64xbf16, #tpu.memory_space<vmem>>, vector<1x256x64xbf16>
    %543 = vector.shape_cast %542 : vector<1x256x64xbf16> to vector<256x64xbf16>
    %cst_226 = arith.constant dense<0.000000e+00> : vector<10x64xf32>
    %544 = tpu.matmul %541, %543, %cst_226 {dimension_numbers = #tpu.dot_dimension_numbers<[1], [0], [0], [1], [0, 0, 1, 1], [], []>} : vector<10x256xbf16>, vector<256x64xbf16>, vector<10x64xf32> -> vector<10x64xf32>
    %545 = arith.addf %495, %544 : vector<10x64xf32>
    %c1_227 = arith.constant 1 : index
    %c0_228 = arith.constant 0 : index
    %c0_229 = arith.constant 0 : index
    %546 = vector.load %arg17[%c1_227, %c0_228, %c0_229] : memref<2x1x64xf32, #tpu.memory_space<vmem>>, vector<1x1x64xf32>
    %547 = vector.shape_cast %546 : vector<1x1x64xf32> to vector<1x64xf32>
    %548 = vector.broadcast %547 : vector<1x64xf32> to vector<10x64xf32>
    %549 = arith.addf %545, %548 : vector<10x64xf32>
    %550 = vector.extract_strided_slice %549 {offsets = [0, 0], sizes = [1, 64], strides = [1, 1]} : vector<10x64xf32> to vector<1x64xf32>
    %c0_230 = arith.constant 0 : index
    %c0_231 = arith.constant 0 : index
    %551 = vector.load %arg31[%c0_230, %c0_231] : memref<2x64xf32, #tpu.memory_space<vmem>>, vector<1x64xf32>
    tpu.vector_store %arg31[%c0_230, %c0_231], %550 {strides = array<i32>} : memref<2x64xf32, #tpu.memory_space<vmem>>, vector<1x64xf32>,
    %552 = vector.extract_strided_slice %549 {offsets = [5, 0], sizes = [1, 64], strides = [1, 1]} : vector<10x64xf32> to vector<1x64xf32>
    %c1_232 = arith.constant 1 : index
    %c0_233 = arith.constant 0 : index
    %553 = vector.load %arg31[%c1_232, %c0_233] : memref<2x64xf32, #tpu.memory_space<vmem>>, vector<1x64xf32>
    tpu.vector_store %arg31[%c1_232, %c0_233], %552 {strides = array<i32>} : memref<2x64xf32, #tpu.memory_space<vmem>>, vector<1x64xf32>,
    %c0_234 = arith.constant 0 : index
    %c0_235 = arith.constant 0 : index
    %554 = vector.load %arg31[%c0_234, %c0_235] : memref<2x64xf32, #tpu.memory_space<vmem>>, vector<2x64xf32>
    %c0_236 = arith.constant 0 : index
    %c0_237 = arith.constant 0 : index
    %555 = vector.load %arg18[%c0_236, %c0_237] : memref<1x64xf32, #tpu.memory_space<vmem>>, vector<1x64xf32>
    %c0_238 = arith.constant 0 : index
    %c0_239 = arith.constant 0 : index
    %556 = vector.load %arg19[%c0_238, %c0_239] : memref<1x64xf32, #tpu.memory_space<vmem>>, vector<1x64xf32>
    %cst_240 = arith.constant dense<0.000000e+00> : vector<2xf32>
    %557 = vector.multi_reduction <add>, %554, %cst_240 [1] : vector<2x64xf32> to vector<2xf32>
    %558 = vector.shape_cast %557 : vector<2xf32> to vector<2x1xf32>
    %cst_241 = arith.constant 6.400000e+01 : f32
    %559 = vector.broadcast %cst_241 : f32 to vector<2x1xf32>
    %560 = arith.divf %558, %559 : vector<2x1xf32>
    %561 = vector.broadcast %560 : vector<2x1xf32> to vector<2x64xf32>
    %562 = arith.subf %554, %561 : vector<2x64xf32>
    %563 = arith.mulf %562, %562 : vector<2x64xf32>
    %cst_242 = arith.constant dense<0.000000e+00> : vector<2xf32>
    %564 = vector.multi_reduction <add>, %563, %cst_242 [1] : vector<2x64xf32> to vector<2xf32>
    %565 = vector.shape_cast %564 : vector<2xf32> to vector<2x1xf32>
    %cst_243 = arith.constant 6.400000e+01 : f32
    %566 = vector.broadcast %cst_243 : f32 to vector<2x1xf32>
    %567 = arith.divf %565, %566 : vector<2x1xf32>
    %cst_244 = arith.constant 9.99999974E-6 : f32
    %568 = vector.broadcast %cst_244 : f32 to vector<2x1xf32>
    %569 = arith.addf %567, %568 : vector<2x1xf32>
    %570 = math.rsqrt %569 : vector<2x1xf32>
    %571 = vector.broadcast %570 : vector<2x1xf32> to vector<2x64xf32>
    %572 = arith.mulf %562, %571 : vector<2x64xf32>
    %573 = vector.broadcast %555 : vector<1x64xf32> to vector<2x64xf32>
    %574 = arith.mulf %572, %573 : vector<2x64xf32>
    %575 = vector.broadcast %556 : vector<1x64xf32> to vector<2x64xf32>
    %576 = arith.addf %574, %575 : vector<2x64xf32>
    %577 = arith.truncf %576 : vector<2x64xf32> to vector<2x64xbf16>
    %c0_245 = arith.constant 0 : index
    %c0_246 = arith.constant 0 : index
    %578 = vector.load %arg20[%c0_245, %c0_246] : memref<64x32xbf16, #tpu.memory_space<vmem>>, vector<64x32xbf16>
    %cst_247 = arith.constant dense<0.000000e+00> : vector<2x32xf32>
    %579 = tpu.matmul %577, %578, %cst_247 {dimension_numbers = #tpu.dot_dimension_numbers<[1], [0], [0], [1], [0, 0, 1, 1], [], []>} : vector<2x64xbf16>, vector<64x32xbf16>, vector<2x32xf32> -> vector<2x32xf32>
    %580 = arith.truncf %579 : vector<2x32xf32> to vector<2x32xbf16>
    %c0_248 = arith.constant 0 : index
    %c0_249 = arith.constant 0 : index
    %581 = vector.load %arg21[%c0_248, %c0_249] : memref<32x32xbf16, #tpu.memory_space<vmem>>, vector<32x32xbf16>
    %cst_250 = arith.constant dense<0.000000e+00> : vector<2x32xf32>
    %582 = tpu.matmul %580, %581, %cst_250 {dimension_numbers = #tpu.dot_dimension_numbers<[1], [0], [0], [1], [0, 0, 1, 1], [], []>} : vector<2x32xbf16>, vector<32x32xbf16>, vector<2x32xf32> -> vector<2x32xf32>
    %c0_251 = arith.constant 0 : index
    %c0_252 = arith.constant 0 : index
    %583 = vector.load %arg22[%c0_251, %c0_252] : memref<1x32xf32, #tpu.memory_space<vmem>>, vector<1x32xf32>
    %584 = vector.broadcast %583 : vector<1x32xf32> to vector<2x32xf32>
    %585 = arith.addf %582, %584 : vector<2x32xf32>
    %c0_253 = arith.constant 0 : index
    %c0_254 = arith.constant 0 : index
    %586 = vector.load %arg23[%c0_253, %c0_254] : memref<1x32xf32, #tpu.memory_space<vmem>>, vector<1x32xf32>
    %587 = vector.broadcast %586 : vector<1x32xf32> to vector<2x32xf32>
    %588 = arith.subf %585, %587 : vector<2x32xf32>
    %c0_255 = arith.constant 0 : index
    %c0_256 = arith.constant 0 : index
    %589 = vector.load %arg24[%c0_255, %c0_256] : memref<1x32xf32, #tpu.memory_space<vmem>>, vector<1x32xf32>
    %cst_257 = arith.constant 9.99999974E-6 : f32
    %590 = vector.broadcast %cst_257 : f32 to vector<1x32xf32>
    %591 = arith.addf %589, %590 : vector<1x32xf32>
    %592 = math.rsqrt %591 : vector<1x32xf32>
    %593 = vector.broadcast %592 : vector<1x32xf32> to vector<2x32xf32>
    %594 = arith.mulf %588, %593 : vector<2x32xf32>
    %c0_258 = arith.constant 0 : index
    %c0_259 = arith.constant 0 : index
    %595 = vector.load %arg25[%c0_258, %c0_259] : memref<1x32xf32, #tpu.memory_space<vmem>>, vector<1x32xf32>
    %596 = vector.broadcast %595 : vector<1x32xf32> to vector<2x32xf32>
    %597 = arith.mulf %594, %596 : vector<2x32xf32>
    %c0_260 = arith.constant 0 : index
    %c0_261 = arith.constant 0 : index
    %598 = vector.load %arg26[%c0_260, %c0_261] : memref<1x32xf32, #tpu.memory_space<vmem>>, vector<1x32xf32>
    %599 = vector.broadcast %598 : vector<1x32xf32> to vector<2x32xf32>
    %600 = arith.addf %597, %599 : vector<2x32xf32>
    %601 = arith.mulf %600, %600 : vector<2x32xf32>
    %cst_262 = arith.constant dense<0.000000e+00> : vector<2xf32>
    %602 = vector.multi_reduction <add>, %601, %cst_262 [1] : vector<2x32xf32> to vector<2xf32>
    %603 = vector.shape_cast %602 : vector<2xf32> to vector<2x1xf32>
    %cst_263 = arith.constant 9.99999996E-13 : f32
    %604 = vector.broadcast %cst_263 : f32 to vector<2x1xf32>
    %605 = arith.addf %603, %604 : vector<2x1xf32>
    %606 = math.rsqrt %605 : vector<2x1xf32>
    %607 = vector.broadcast %606 : vector<2x1xf32> to vector<2x32xf32>
    %608 = arith.mulf %600, %607 : vector<2x32xf32>
    %c0_264 = arith.constant 0 : index
    %c0_265 = arith.constant 0 : index
    %609 = vector.load %arg27[%c0_264, %c0_265] : memref<16x32xf32, #tpu.memory_space<vmem>>, vector<16x32xf32>
    %610 = arith.mulf %609, %609 : vector<16x32xf32>
    %cst_266 = arith.constant dense<0.000000e+00> : vector<16xf32>
    %611 = vector.multi_reduction <add>, %610, %cst_266 [1] : vector<16x32xf32> to vector<16xf32>
    %612 = vector.shape_cast %611 : vector<16xf32> to vector<16x1xf32>
    %cst_267 = arith.constant 9.99999996E-13 : f32
    %613 = vector.broadcast %cst_267 : f32 to vector<16x1xf32>
    %614 = arith.addf %612, %613 : vector<16x1xf32>
    %615 = math.rsqrt %614 : vector<16x1xf32>
    %616 = vector.broadcast %615 : vector<16x1xf32> to vector<16x32xf32>
    %617 = arith.mulf %609, %616 : vector<16x32xf32>
    %cst_268 = arith.constant dense<0.000000e+00> : vector<2x16xf32>
    %618 = tpu.matmul %608, %617, %cst_268 {dimension_numbers = #tpu.dot_dimension_numbers<[1], [1], [0], [0], [0, 0, 1, 0], [], []>} : vector<2x32xf32>, vector<16x32xf32>, vector<2x16xf32> -> vector<2x16xf32>
    %619 = arith.mulf %618, %618 : vector<2x16xf32>
    %cst_269 = arith.constant 1.000000e+00 : f32
    %620 = vector.broadcast %cst_269 : f32 to vector<2x16xf32>
    %621 = arith.subf %620, %619 : vector<2x16xf32>
    %cst_270 = arith.constant 0.000000e+00 : f32
    %cst_271 = arith.constant 1.000000e+00 : f32
    %622 = vector.broadcast %cst_270 : f32 to vector<2x16xf32>
    %623 = arith.maximumf %622, %621 : vector<2x16xf32>
    %624 = vector.broadcast %cst_271 : f32 to vector<2x16xf32>
    %625 = arith.minimumf %624, %623 : vector<2x16xf32>
    %626 = math.sqrt %625 : vector<2x16xf32>
    %cst_272 = arith.constant -0.87758255 : f32
    %627 = vector.broadcast %cst_272 : f32 to vector<2x16xf32>
    %628 = arith.cmpf ogt, %618, %627 : vector<2x16xf32>
    %cst_273 = arith.constant 0.87758255 : f32
    %629 = vector.broadcast %cst_273 : f32 to vector<2x16xf32>
    %630 = arith.mulf %618, %629 : vector<2x16xf32>
    %cst_274 = arith.constant 0.47942555 : f32
    %631 = vector.broadcast %cst_274 : f32 to vector<2x16xf32>
    %632 = arith.mulf %626, %631 : vector<2x16xf32>
    %633 = arith.subf %630, %632 : vector<2x16xf32>
    %cst_275 = arith.constant 0.239712775 : f32
    %634 = vector.broadcast %cst_275 : f32 to vector<2x16xf32>
    %635 = arith.subf %618, %634 : vector<2x16xf32>
    %636 = arith.select %628, %633, %635 : vector<2x16xi1>, vector<2x16xf32>
    %637 = tpu.iota {dimensions = array<i32: 1>} : vector<2x16xi32>
    %c0_276 = arith.constant 0 : index
    %c0_277 = arith.constant 0 : index
    %638 = vector.load %arg28[%c0_276, %c0_277] : memref<2x1xi32, #tpu.memory_space<vmem>>, vector<2x1xi32>
    %639 = vector.broadcast %638 : vector<2x1xi32> to vector<2x16xi32>
    %640 = arith.cmpi eq, %637, %639 : vector<2x16xi32>
    %641 = arith.select %640, %636, %618 : vector<2x16xi1>, vector<2x16xf32>
    %cst_278 = arith.constant 3.000000e+01 : f32
    %642 = vector.broadcast %cst_278 : f32 to vector<2x16xf32>
    %643 = arith.mulf %641, %642 : vector<2x16xf32>
    %c0_279 = arith.constant 0 : index
    %c0_280 = arith.constant 0 : index
    %644 = vector.load %arg29[%c0_279, %c0_280] : memref<2x16xf32, #tpu.memory_space<vmem>>, vector<2x16xf32>
    tpu.vector_store %arg29[%c0_279, %c0_280], %643 {strides = array<i32>} : memref<2x16xf32, #tpu.memory_space<vmem>>, vector<2x16xf32>,
    return
  }
}

</mosaic_0001>

<bundles_post_ra>
// kernel: forward.1
= control target key start
LH: loop header
LB: loop body
LE: loop exit
PB: predicated region body
PF: predicated region fallthrough
CT: control target
= control target key end

     0   :  { %s4682_s6 = smov 1   ;;  %s4683_s10 = smov 2   ;;  %s5489_s0 = inlined_call_operand.smem [shape: u32[30], index: -1, kind: input, shape index: {}] }
   0x1   :  { %s4731_s5 = sld [smem:[%s5489_s0]]   ;;  %s4684_s14 = smov 3  }
   0x2   :  { %s4736_s9 = sld [smem:[%s5489_s0 + %s4682_s6]]   ;;  %s4685_s18 = smov 4  }
   0x3   :  { %s4741_s13 = sld [smem:[%s5489_s0 + %s4683_s10]]   ;;  %s4686_s22 = smov 5  }
   0x4   :  { %s4746_s17 = sld [smem:[%s5489_s0 + %s4684_s14]]   ;;  %s4687_s26 = smov 6  }
   0x5   :  { %s4751_s21 = sld [smem:[%s5489_s0 + %s4685_s18]]   ;;  %s4688_s30 = smov 7  }
   0x6   :  { %s4756_s25 = sld [smem:[%s5489_s0 + %s4686_s22]]   ;;  %s4689_s4 = smov 8  }
   0x7   :  { %s4761_s29 = sld [smem:[%s5489_s0 + %s4687_s26]]   ;;  %s4690_s10 = smov 9  }
   0x8   :  { %s4766_s3 = sld [smem:[%s5489_s0 + %s4688_s30]]   ;;  %s4691_s15 = smov 10  }
   0x9   :  { %s4771_s8 = sld [smem:[%s5489_s0 + %s4689_s4]]   ;;  %s4692_s20 = smov 11  }
   0xa   :  { %s4776_s14 = sld [smem:[%s5489_s0 + %s4690_s10]]   ;;  %s4693_s26 = smov 12  }
   0xb   :  { %s4781_s19 = sld [smem:[%s5489_s0 + %s4691_s15]]   ;;  %s4694_s1 = smov 13  }
   0xc   :  { %s4786_s24 = sld [smem:[%s5489_s0 + %s4692_s20]]   ;;  %s4695_s7 = smov 14  }
   0xd   :  { %s4791_s30 = sld [smem:[%s5489_s0 + %s4693_s26]]   ;;  %s4696_s15 = smov 15  }
   0xe   :  { %s4796_s6 = sld [smem:[%s5489_s0 + %s4694_s1]]   ;;  %s4697_s22 = smov 16  }
   0xf   :  { %s4801_s12 = sld [smem:[%s5489_s0 + %s4695_s7]]   ;;  %s4698_s28 = smov 17  }
  0x10   :  { %s4806_s20 = sld [smem:[%s5489_s0 + %s4696_s15]]   ;;  %s4699_s7 = smov 18  }
  0x11   :  { %s4811_s27 = sld [smem:[%s5489_s0 + %s4697_s22]]   ;;  %s4700_s15 = smov 19  }
  0x12   :  { %s4816_s4 = sld [smem:[%s5489_s0 + %s4698_s28]]   ;;  %s4701_s22 = smov 20  }
  0x13   :  { %s4702_s28 = smov 21  }
  0x14   :  { %5496 = sst [smem:[#allocation7_spill]] %s4796_s6 }
  0x15   :  { %s4821_s6 = sld [smem:[%s5489_s0 + %s4699_s7]]   ;;  %s4703_s7 = smov 22  }
  0x16   :  { %5497 = sst [smem:[#allocation8_spill]] %s4806_s20 }
  0x17   :  { %5498 = sst [smem:[#allocation9_spill]] %s4811_s27 }
  0x18   :  { %5499 = sst [smem:[#allocation10_spill]] %s4816_s4 }
  0x19   :  { %s4826_s20 = sld [smem:[%s5489_s0 + %s4700_s15]]   ;;  %s4704_s15 = smov 23  }
  0x1a   :  { %s4831_s27 = sld [smem:[%s5489_s0 + %s4701_s22]]   ;;  %s4705_s22 = smov 24  }
  0x1b   :  { %5500 = sst [smem:[#allocation11_spill]] %s4821_s6 }
  0x1c   :  { %s4836_s4 = sld [smem:[%s5489_s0 + %s4702_s28]]   ;;  %s4706_s28 = smov 25  }
  0x1d   :  { %s4841_s6 = sld [smem:[%s5489_s0 + %s4703_s7]]   ;;  %s4707_s7 = smov 26  }
  0x1f   :  { %5501 = sst [smem:[#allocation12_spill]] %s4826_s20 }
  0x20   :  { %5502 = sst [smem:[#allocation13_spill]] %s4831_s27 }
  0x21   :  { %s4846_s20 = sld [smem:[%s5489_s0 + %s4704_s15]]   ;;  %s4708_s15 = smov 27  }
  0x22   :  { %5503 = sst [smem:[#allocation14_spill]] %s4836_s4 }
  0x23   :  { %5504 = sst [smem:[#allocation15_spill]] %s4841_s6 }
  0x24   :  { %s4851_s27 = sld [smem:[%s5489_s0 + %s4705_s22]]   ;;  %s4709_s22 = smov 28  }
  0x25   :  { %s4856_s4 = sld [smem:[%s5489_s0 + %s4706_s28]]   ;;  %s4710_s28 = smov 29  }
  0x26   :  { %s4861_s6 = sld [smem:[%s5489_s0 + %s4707_s7]]  }
  0x27   :  { %5505 = sst [smem:[#allocation16_spill]] %s4846_s20 }
  0x28   :  { %s4866_s20 = sld [smem:[%s5489_s0 + %s4708_s15]]  }
  0x2a   :  { %5506 = sst [smem:[#allocation17_spill]] %s4851_s27 }
  0x2b   :  { %5507 = sst [smem:[#allocation18_spill]] %s4856_s4 }
  0x2c   :  { %s4871_s27 = sld [smem:[%s5489_s0 + %s4709_s22]]  }
  0x2d   :  { %s4876_s4 = sld [smem:[%s5489_s0 + %s4710_s28]]  }
  0x2e   :  { %v4442_v0 = vld [vmem:[%s4736_s9 + $0x38] sm:$0xff]   ;;  %v4711_v1 = vmov 0   ;;  %v4443_v2 = vld [vmem:[%s4736_s9 + $0x30] sm:$0xff]   ;;  %v4444_v3 = vld [vmem:[%s4736_s9 + $0x28] sm:$0xff]   ;;  %vm224_vm0 = vcmask 523264  }
  0x2f   :  { %228 = vmatprep.subr.bf16.mxu0 %v4711_v1  ;;  %471 = vmatprep.mubr.bf16.mxu1 %v4711_v1  ;;  %v4445_v4 = vld [vmem:[%s4736_s9 + $0x20] sm:$0xff]   ;;  %v4446_v5 = vld [vmem:[%s4736_s9 + $0x18] sm:$0xff]   ;;  %v125_v6 = vld [vmem:[%s4731_s5 + $0x8] sm:$0xff] }
  0x30   :  { %229 = vmatpush1.bf16.msra.mxu0 %v4442_v0  ;;  %4440 = vset.pattern.permute.xlu1 %v4711_v1  ;;  %v127_v7 = vpack.c.bf16 %v125_v6, %v125_v6  ;;  %v4447_v8 = vld [vmem:[%s4736_s9 + $0x10] sm:$0xff]   ;;  %v4448_v9 = vld [vmem:[%s4736_s9 + $0x8] sm:$0xff]   ;;  %v4449_v10 = vld [vmem:[%s4736_s9] sm:$0xff]  }
  0x31   :  { %230 = vmatprep.subr.bf16.mxu0 %v4711_v1  ;;  %4441 = vset.pattern.permute.xlu0 %v4711_v1  ;;  %v4450_v11 = vld [vmem:[%s4736_s9 + $0x58] sm:$0xff]   ;;  %v4451_v12 = vld [vmem:[%s4736_s9 + $0x50] sm:$0xff]   ;;  %v4452_v13 = vld [vmem:[%s4736_s9 + $0x48] sm:$0xff]  }
  0x32   :  { %3820 = vmatprep.mubr.msk.bf16.mxu0 %vm224_vm0, %v127_v7  ;;  %v4453_v14 = vld [vmem:[%s4736_s9 + $0x40] sm:$0xff]  }
  0x33   :  { %v124_v15 = vld [vmem:[%s4731_s5] sm:$0xff] }
  0x34   :  { %231 = vmatpush1.bf16.msra.mxu0 %v4443_v2  ;;  %v126_v16 = vpack.c.bf16 %v124_v15, %v124_v15 }
  0x35   :  { %232 = vmatprep.subr.bf16.mxu0 %v4711_v1 }
  0x38   :  { %233 = vmatpush1.bf16.msra.mxu0 %v4444_v3 }
  0x39   :  { %234 = vmatprep.subr.bf16.mxu0 %v4711_v1 }
  0x3c   :  { %235 = vmatpush1.bf16.msra.mxu0 %v4445_v4 }
  0x3d   :  { %236 = vmatprep.subr.bf16.mxu0 %v4711_v1 }
  0x40   :  { %237 = vmatpush1.bf16.msra.mxu0 %v4446_v5 }
  0x41   :  { %238 = vmatprep.subr.bf16.mxu0 %v4711_v1 }
  0x44   :  { %239 = vmatpush1.bf16.msra.mxu0 %v4447_v8 }
  0x45   :  { %240 = vmatprep.subr.bf16.mxu0 %v4711_v1 }
  0x48   :  { %241 = vmatpush1.bf16.msra.mxu0 %v4448_v9 }
  0x49   :  { %242 = vmatprep.subr.bf16.mxu0 %v4711_v1 }
  0x4c   :  { %243 = vmatpush1.bf16.msra.mxu0 %v4449_v10 }
  0x4d   :  { %252 = vmatprep.subr.bf16.mxu0 %v4711_v1 }
  0x50   :  { %253 = vmatpush2.bf16.msra.mxu0 %v4450_v11 }
  0x51   :  { %254 = vmatprep.subr.bf16.mxu0 %v4711_v1 }
  0x54   :  { %255 = vmatpush2.bf16.msra.mxu0 %v4451_v12 }
  0x55   :  { %256 = vmatprep.subr.bf16.mxu0 %v4711_v1 }
  0x58   :  { %257 = vmatpush2.bf16.msra.mxu0 %v4452_v13 }
  0x59   :  { %258 = vmatprep.subr.bf16.mxu0 %v4711_v1 }
  0x5c   :  { %259 = vmatpush2.bf16.msra.mxu0 %v4453_v14 }
  0x5f   :  { %261 = vmatmul.mubr.bf16.vlgmr.msra.gmra.mxu0 %v126_v16 }
  0x60   :  { %64 = vsyncpa [#allocation5], 0  ;;  %v269_v17 = vld [vmem:[%s4741_s13] sm:$0x1]  ;;  %vm270_vm1 = vcmask 516096   ;;  %vm273_vm2 = vcmask 519168  }
  0x61   :  { %271 = vst.msk [vmem:[#allocation2] sm:$0x1] %vm270_vm1, %v269_v17  ;;  %v275_v18 = vld [vmem:[%s4741_s13] sm:$0x1]  ;;  %vm281_vm3 = vcmask 523268   ;;  %vm290_vm4 = vcmask 517120  }
  0x62   :  { %276 = vst.msk [vmem:[#allocation2 + $0x5] sm:$0x1] %vm270_vm1, %v275_v18  ;;  %v268_v19 = vld [vmem:[%s4746_s17] sm:$0xf]  ;;  %v4454_v6 = vld [vmem:[%s4771_s8 + $0x34] ss:$8 sps:$4 sm:$0xff]  }
  0x63   :  { %v278_v20 = vrot.slane %v268_v19, 4  ;;  %v3821_v48 = vld [vmem:[%s4751_s21] ss:$0 sm:$0xff]  ;;  %v4456_v7 = vld [vmem:[%s4771_s8 + $0x30] ss:$8 sps:$4 sm:$0xff]   ;;  %447 = vmatprep.subr.bf16.mxu1 %v4454_v6  ;;  %vm4713_vm5 = vmmov 0  }
  0x64   :  { %v3822_v50 = vld [vmem:[%s4756_s25] ss:$0 sm:$0xff]  ;;  %v4457_v8 = vld [vmem:[%s4771_s8 + $0x24] ss:$8 sps:$4 sm:$0xff]   ;;  %448 = vmatpush1.bf16.msra.mxu1 %v4456_v7  ;;  %v4460_v10 = vld [vmem:[%s4771_s8 + $0x14] ss:$8 sps:$4 sm:$0xff]  }
  0x65   :  { %v4459_v9 = vld [vmem:[%s4771_s8 + $0x20] ss:$8 sps:$4 sm:$0xff]   ;;  %449 = vmatprep.subr.bf16.mxu1 %v4457_v8  ;;  %v4462_v11 = vld [vmem:[%s4771_s8 + $0x10] ss:$8 sps:$4 sm:$0xff]   ;;  %v4463_v12 = vld [vmem:[%s4771_s8 + $0x4] ss:$8 sps:$4 sm:$0xff]  }
  0x66   :  { %v4465_v13 = vld [vmem:[%s4771_s8] ss:$8 sps:$4 sm:$0xff]   ;;  %s4714_s0 = smov 64   ;;  %s4715_s5 = smov 112   ;;  %vm486_vm6 = vcmask 130048   ;;  %vm551_vm7 = vcmask 1041408  }
  0x67   :  { %s4716_s9 = smov 96   ;;  %s4717_s13 = smov 80   ;;  %vm552_vm8 = vcmask 1042432   ;;  %vm533_vm9 = vcmask 36864   ;;  %vm547_vm10 = vcmask 39936   ;;  %vm598_vm11 = vcmask 126976  }
  0x68   :  { %450 = vmatpush1.bf16.msra.mxu1 %v4459_v9  ;;  %s4718_s17 = smov 48   ;;  %s4719_s21 = smov 32   ;;  %vm715_vm12 = vcmask 258176   ;;  %vm831_vm13 = vcmask 389376   ;;  %vm947_vm14 = vcmask 520576   ;;  %vm3424_vm15 = vcmask 521221  }
  0x69   :  { %451 = vmatprep.subr.bf16.mxu1 %v4460_v10  ;;  %s4720_s25 = smov 16   ;;  %s5508_s7 = sld [smem:[#allocation7_spill]] }
  0x6a   :  { %s5509_s10 = sld [smem:[#allocation9_spill]] }
  0x6b   :  { %s5510_s11 = sld [smem:[#allocation8_spill]] }
  0x6c   :  { %452 = vmatpush1.bf16.msra.mxu1 %v4462_v11  ;;  %s5511_s15 = sld [smem:[#allocation10_spill]] }
  0x6d   :  { %453 = vmatprep.subr.bf16.mxu1 %v4463_v12 }
  0x70   :  { %454 = vmatpush1.bf16.msra.mxu1 %v4465_v13 }
 0x11f   :  { %v262_v21 = vpop.f32.mrf.mxu0 }
 0x120   :  { %v272_v22 = vadd.f32 %v268_v19, %v262_v21  ;;  %v280_v23 = vadd.f32 %v278_v20, %v262_v21 }
 0x121   :  { %v264_v24 = vpop.f32.mrf.mxu0 }
 0x122   :  { %274 = vst.msk [vmem:[#allocation2 + $0x1] sm:$0xf] %vm273_vm2, %v272_v22  ;;  %v3823_v22 = vld [vmem:[%s4761_s29] ss:$0 sm:$0xff] }
 0x123   :  { %282 = vst.msk [vmem:[#allocation2 + $0x2] sm:$0xf0] %vm281_vm3, %v280_v23  ;;  %v265_v25 = vpop.f32.mrf.mxu0 }
 0x125   :  { %v266_v26 = vpop.f32.mrf.mxu0 }
 0x126   :  { %v3824_v26 = vld [vmem:[%s4766_s3] ss:$0 sm:$0xff] }
 0x12a   :  { %v283_v27 = vld [vmem:[#allocation2] sm:$0xff]  ;;  %v284_v29 = vld [vmem:[#allocation2 + $0x8] sm:$0x3] }
 0x12b   :  { %v287_v28 = vsel %vm224_vm0, %v283_v27, 0.0  ;;  %v291_v30 = vsel %vm290_vm4, %v284_v29, 0.0 }
 0x12c   :  { %288 = vadd.xlane.f32.xlu0 %v287_v28 }
 0x130   :  { %292 = vadd.xlane.f32.xlu0 %v291_v30 }
 0x1b5   :  { %v289_v31 = vpop.xlane.xlu0 %288 }
 0x1b6   :  { %v295_v32 = vmul.f32 0.015625, %v289_v31  ;;  %v386_v31 = vlaneseq }
 0x1b8   :  { %v297_v33 = vsub.f32 %v283_v27, %v295_v32  ;;  %v387_v32 = vshrl.u32 %v386_v31, 7 }
 0x1b9   :  { %v293_v34 = vpop.xlane.xlu0 %292 }
 0x1ba   :  { %v296_v35 = vmul.f32 0.015625, %v293_v34  ;;  %v299_v36 = vmul.f32 %v297_v33, %v297_v33  ;;  %v4945_v34 = vsub.s32 0, %v387_v32 }
 0x1bc   :  { %v298_v37 = vsub.f32 %v284_v29, %v296_v35  ;;  %v301_v38 = vsel %vm224_vm0, %v299_v36, 0.0  ;;  %v384_v35 = vld [vmem:[%s4776_s14] sm:$0x3] }
 0x1bd   :  { %302 = vadd.xlane.f32.xlu1 %v301_v38  ;;  %v389_v36 = vrot.slane %v384_v35, %v4945_v34 }
 0x1be   :  { %v300_v39 = vmul.f32 %v298_v37, %v298_v37 }
 0x1c0   :  { %v304_v40 = vsel %vm290_vm4, %v300_v39, 0.0 }
 0x1c1   :  { %305 = vadd.xlane.f32.xlu1 %v304_v40 }
 0x246   :  { %v303_v41 = vpop.xlane.xlu1 %302 }
 0x247   :  { %v307_v42 = vmul.f32 0.015625, %v303_v41 }
 0x249   :  { %v309_v43 = vadd.f32 1e-05, %v307_v42 }
 0x24a   :  { %v306_v44 = vpop.xlane.xlu1 %305 }
 0x24b   :  { %4548 = vrsqrt.f32 %v309_v43  ;;  %v308_v45 = vmul.f32 0.015625, %v306_v44 }
 0x24d   :  { %v310_v46 = vadd.f32 1e-05, %v308_v45 }
 0x24f   :  { %4550 = vrsqrt.f32 %v310_v46 }
 0x258   :  { %v4549_v47 = vpop.eup %4548 }
 0x259   :  { %v313_v49 = vmul.f32 %v4549_v47, %v297_v33  ;;  %v4712_v33 = vmov 0.0  }
 0x25a   :  { %4156 = vmatprep.subr.bf16.mxu1 %v4712_v33  ;;  %4180 = vmatprep.subr.bf16.mxu0 %v4712_v33 }
 0x25b   :  { %v321_v51 = vmul.f32 %v3821_v48, %v313_v49  ;;  %4182 = vmatprep.mubr.msk.bf16.mxu0 %vm4713_vm5, %v4712_v33 }
 0x25c   :  { %v4551_v52 = vpop.eup %4550 }
 0x25d   :  { %v4919_v53 = vadd.f32 %v3822_v50, %v321_v51  ;;  %v314_v54 = vmul.f32 %v4551_v52, %v298_v37  ;;  %v4953_v37 = vsub.s32 1, %v387_v32 }
 0x25f   :  { %v333_v55 = vsel %vm224_vm0, %v4919_v53, 0.0  ;;  %v322_v56 = vmul.f32 %v3821_v48, %v314_v54  ;;  %v393_v42 = vrot.slane %v384_v35, %v4953_v37 }
 0x260   :  { %334 = vadd.xlane.f32.xlu0 %v333_v55 }
 0x261   :  { %v4923_v57 = vadd.f32 %v3822_v50, %v322_v56 }
 0x263   :  { %v336_v58 = vsel %vm290_vm4, %v4923_v57, 0.0 }
 0x264   :  { %337 = vadd.xlane.f32.xlu1 %v336_v58 }
 0x2e9   :  { %v335_v59 = vpop.xlane.xlu0 %334 }
 0x2ea   :  { %v339_v60 = vmul.f32 0.015625, %v335_v59  ;;  %v4721_v59 = vmov 65535  }
 0x2ec   :  { %v341_v61 = vsub.f32 %v4919_v53, %v339_v60  ;;  %v553_v60 = vsel %vm551_vm7, 4294967295, %v4721_v59 }
 0x2ed   :  { %v338_v62 = vpop.xlane.xlu1 %337 }
 0x2ee   :  { %v340_v63 = vmul.f32 0.015625, %v338_v62  ;;  %v343_v0 = vmul.f32 %v341_v61, %v341_v61  ;;  %v4974_v62 = vsel %vm552_vm8, %v553_v60, 0 }
 0x2f0   :  { %v342_v2 = vsub.f32 %v4923_v57, %v340_v63  ;;  %v345_v3 = vsel %vm224_vm0, %v343_v0, 0.0 }
 0x2f1   :  { %346 = vadd.xlane.f32.xlu0 %v345_v3 }
 0x2f2   :  { %v344_v4 = vmul.f32 %v342_v2, %v342_v2 }
 0x2f4   :  { %v348_v5 = vsel %vm290_vm4, %v344_v4, 0.0 }
 0x2f5   :  { %349 = vadd.xlane.f32.xlu1 %v348_v5 }
 0x37a   :  { %v347_v14 = vpop.xlane.xlu0 %346 }
 0x37b   :  { %v351_v15 = vmul.f32 0.015625, %v347_v14 }
 0x37d   :  { %v353_v16 = vadd.f32 1e-05, %v351_v15 }
 0x37e   :  { %v350_v17 = vpop.xlane.xlu1 %349 }
 0x37f   :  { %4552 = vrsqrt.f32 %v353_v16  ;;  %v352_v18 = vmul.f32 0.015625, %v350_v17 }
 0x381   :  { %v354_v19 = vadd.f32 1e-05, %v352_v18 }
 0x383   :  { %4554 = vrsqrt.f32 %v354_v19 }
 0x38c   :  { %v4553_v20 = vpop.eup %4552 }
 0x38d   :  { %v357_v21 = vmul.f32 %v4553_v20, %v341_v61 }
 0x38f   :  { %v365_v25 = vmul.f32 %v3823_v22, %v357_v21 }
 0x390   :  { %v4555_v23 = vpop.eup %4554 }
 0x391   :  { %v358_v24 = vmul.f32 %v4555_v23, %v342_v2  ;;  %v373_v28 = vadd.f32 %v3824_v26, %v365_v25 }
 0x393   :  { %v366_v27 = vmul.f32 %v3823_v22, %v358_v24 }
 0x395   :  { %v374_v29 = vadd.f32 %v3824_v26, %v366_v27 }
 0x397   :  { %v375_v30 = vpack.c.bf16 %v374_v29, %v373_v28 }
 0x399   :  { %3833 = vmatmul.mubr.msk.bf16.vlgmr.msra.gmra.mxu1 %vm224_vm0, %v375_v30 }
 0x39a   :  { %4158 = vmatprep.mubr.msk.bf16.mxu1 %vm4713_vm5, %v4712_v33 }
 0x459   :  { %v473_v38 = vpop.f32.mrf.mxu1 }
 0x45a   :  { %v474_v39 = vadd.f32 %v473_v38, %v389_v36 }
 0x45b   :  { %v475_v40 = vpop.f32.mrf.mxu1 }
 0x45c   :  { %v482_v41 = vpack.c.bf16 %v474_v39, %v474_v39  ;;  %v476_v46 = vadd.f32 %v475_v40, %v393_v42 }
 0x45d   :  { %v477_v43 = vpop.f32.mrf.mxu1 }
 0x45e   :  { %v478_v44 = vadd.f32 %v477_v43, %v389_v36  ;;  %484 = vrot.lane.b32.xlu0 %v482_v41, %s4714_s0  ;;  %v4972_v61 = vpack.c.bf16 %v476_v46, %v476_v46 }
 0x45f   :  { %v479_v45 = vpop.f32.mrf.mxu1 }
 0x460   :  { %v949_v47 = vpack.c.bf16 %v478_v44, %v474_v39  ;;  %v480_v48 = vadd.f32 %v479_v45, %v393_v42  ;;  %v556_v63 = vand.u32 %v4974_v62, %v4972_v61 }
 0x462   :  { %v4957_v49 = vpack.c.bf16 %v480_v48, %v476_v46  ;;  %600 = vrot.lane.b32.xlu0 %v482_v41, %s4715_s5  ;;  %v951_v50 = vshrl.u32 %v949_v47, 16  ;;  %v954_v51 = vshll.u32 %v949_v47, 16 }
 0x464   :  { %v953_v52 = vrot.slane %v951_v50, 2  ;;  %v956_v54 = vrot.slane %v954_v51, 3 }
 0x466   :  { %717 = vrot.lane.b32.xlu0 %v482_v41, %s4716_s9  ;;  %v4962_v55 = vor.u32 %v956_v54, %v953_v52 }
 0x46a   :  { %833 = vrot.lane.b32.xlu0 %v482_v41, %s4717_s13 }
 0x46e   :  { %1076 = vrot.lane.b32.xlu0 %v4962_v55, %s4718_s17 }
 0x472   :  { %1191 = vrot.lane.b32.xlu0 %v4962_v55, %s4719_s21 }
 0x476   :  { %1306 = vrot.lane.b32.xlu0 %v4962_v55, %s4720_s25 }
 0x4d0   :  { %v485_v56 = vpop.permute.xlu0 %484 }
 0x4d1   :  { %v491_v58 = vsel %vm486_vm6, %v485_v56, 0 }
 0x4d2   :  { %4157 = vmatpush3.bf16.xpose.msra.mxu1 %v491_v58 }
 0x4d3   :  { %4162 = vmatprep.subr.bf16.mxu1 %v4712_v33 }
 0x4d4   :  { %v601_v15 = vpop.permute.xlu0 %600 }
 0x4d8   :  { %v718_v19 = vpop.permute.xlu0 %717 }
 0x4d9   :  { %4159 = vmatmul.mubr.msk.bf16.vlgmr.msra.gmra.mxu1 %vm486_vm6, %v482_v41 }
 0x4da   :  { %4163 = vmatpush3.bf16.msra.mxu1 %v556_v63  ;;  %4164 = vmatprep.mubr.msk.bf16.mxu1 %vm4713_vm5, %v4712_v33 }
 0x4db   :  { %4168 = vmatprep.subr.bf16.mxu1 %v4712_v33 }
 0x4dc   :  { %v834_v24 = vpop.permute.xlu0 %833 }
 0x4e0   :  { %v1077_v26 = vpop.permute.xlu0 %1076 }
 0x4e1   :  { %v1082_v27 = vsel %vm486_vm6, %v1077_v26, 0 }
 0x4e4   :  { %v1192_v28 = vpop.permute.xlu0 %1191 }
 0x4e5   :  { %v1197_v30 = vsel %vm486_vm6, %v1192_v28, 0 }
 0x4e8   :  { %v1307_v32 = vpop.permute.xlu0 %1306 }
 0x4e9   :  { %v1312_v36 = vsel %vm486_vm6, %v1307_v32, 0 }
 0x599   :  { %v527_v0 = vpop.f32.mrf.mxu1 }
 0x59a   :  { %v534_v2 = vsel %vm533_vm9, %v527_v0, -inf }
 0x59b   :  { %535 = vmax.xlane.f32.xlu1 %v534_v2  ;;  %v4160_v3 = vpop.f32.mrf.mxu1 }
 0x59d   :  { %v530_v4 = vpop.f32.mrf.mxu1 }
 0x59f   :  { %v4161_v5 = vpop.f32.mrf.mxu1 }
 0x624   :  { %v536_v6 = vpop.xlane.xlu1 %535 }
 0x625   :  { %v537_v7 = vsub.f32 %v527_v0, %v536_v6 }
 0x627   :  { %v538_v8 = vmul.f32 1.442695, %v537_v7 }
 0x629   :  { %4556 = vpow2.f32 %v538_v8 }
 0x636   :  { %v4557_v9 = vpop.eup %4556 }
 0x637   :  { %v540_v10 = vsel %vm533_vm9, %v4557_v9, 0.0 }
 0x638   :  { %541 = vadd.xlane.f32.xlu1 %v540_v10 }
 0x649   :  { %602 = vrot.lane.b32.xlu1 %v482_v41, %s4718_s17 }
 0x64d   :  { %719 = vrot.lane.b32.xlu1 %v482_v41, %s4719_s21 }
 0x651   :  { %835 = vrot.lane.b32.xlu1 %v482_v41, %s4720_s25 }
 0x655   :  { %958 = vrot.lane.b32.xlu1 %v4962_v55, %s4714_s0 }
 0x659   :  { %1074 = vrot.lane.b32.xlu1 %v4962_v55, %s4715_s5 }
 0x65d   :  { %1189 = vrot.lane.b32.xlu1 %v4962_v55, %s4716_s9 }
 0x661   :  { %1304 = vrot.lane.b32.xlu1 %v4962_v55, %s4717_s13 }
 0x6c1   :  { %v542_v11 = vpop.xlane.xlu1 %541 }
 0x6c2   :  { %4558 = vrcp.f32 %v542_v11 }
 0x6c5   :  { %v603_v12 = vpop.permute.xlu1 %602 }
 0x6c6   :  { %v608_v22 = vsel %vm486_vm6, %v603_v12, 0 }
 0x6c9   :  { %v720_v13 = vpop.permute.xlu1 %719 }
 0x6ca   :  { %v725_v14 = vsel %vm486_vm6, %v720_v13, 0 }
 0x6cb   :  { %4181 = vmatpush3.bf16.xpose.msra.mxu0 %v725_v14 }
 0x6cc   :  { %4192 = vmatprep.subr.bf16.mxu0 %v4712_v33 }
 0x6cd   :  { %v836_v17 = vpop.permute.xlu1 %835 }
 0x6ce   :  { %v841_v20 = vsel %vm486_vm6, %v836_v17, 0 }
 0x6cf   :  { %v4559_v16 = vpop.eup %4558 }
 0x6d0   :  { %v544_v18 = vmul.f32 %v4559_v16, %v4557_v9 }
 0x6d1   :  { %v959_v23 = vpop.permute.xlu1 %958 }
 0x6d2   :  { %4183 = vmatmul.mubr.msk.bf16.vlgmr.msra.gmra.mxu0 %vm486_vm6, %v718_v19  ;;  %v545_v21 = vpack.c.bf16 %v544_v18, %v544_v18  ;;  %v964_v25 = vsel %vm486_vm6, %v959_v23, 0 }
 0x6d3   :  { %4193 = vmatpush3.bf16.xpose.msra.mxu0 %v841_v20  ;;  %4194 = vmatprep.mubr.msk.bf16.mxu0 %vm4713_vm5, %v4712_v33 }
 0x6d4   :  { %4165 = vmatmul.mubr.msk.bf16.vlgmr.msra.gmra.mxu1 %vm547_vm10, %v545_v21  ;;  %4204 = vmatprep.subr.bf16.mxu0 %v4712_v33 }
 0x6d5   :  { %4169 = vmatpush3.bf16.xpose.msra.mxu1 %v608_v22  ;;  %4170 = vmatprep.mubr.msk.bf16.mxu1 %vm4713_vm5, %v4712_v33  ;;  %v1075_v29 = vpop.permute.xlu1 %1074 }
 0x6d6   :  { %4174 = vmatprep.subr.bf16.mxu1 %v4712_v33 }
 0x6d9   :  { %v1190_v35 = vpop.permute.xlu1 %1189 }
 0x6da   :  { %4195 = vmatmul.mubr.msk.bf16.vlgmr.msra.gmra.mxu0 %vm486_vm6, %v834_v24 }
 0x6db   :  { %4205 = vmatpush3.bf16.xpose.msra.mxu0 %v964_v25  ;;  %4206 = vmatprep.mubr.msk.bf16.mxu0 %vm4713_vm5, %v4712_v33 }
 0x6dc   :  { %4171 = vmatmul.mubr.msk.bf16.vlgmr.msra.gmra.mxu1 %vm486_vm6, %v601_v15  ;;  %4216 = vmatprep.subr.bf16.mxu0 %v4712_v33 }
 0x6dd   :  { %4176 = vmatprep.mubr.msk.bf16.mxu1 %vm4713_vm5, %v4712_v33  ;;  %v1305_v38 = vpop.permute.xlu1 %1304 }
 0x6e2   :  { %4207 = vmatmul.mubr.msk.bf16.vlgmr.msra.gmra.mxu0 %vm486_vm6, %v4962_v55 }
 0x6e3   :  { %4217 = vmatpush3.bf16.xpose.msra.mxu0 %v1082_v27  ;;  %4218 = vmatprep.mubr.msk.bf16.mxu0 %vm4713_vm5, %v4712_v33 }
 0x6e4   :  { %4228 = vmatprep.subr.bf16.mxu0 %v4712_v33 }
 0x6ea   :  { %4219 = vmatmul.mubr.msk.bf16.vlgmr.msra.gmra.mxu0 %vm486_vm6, %v1075_v29 }
 0x6eb   :  { %4229 = vmatpush3.bf16.xpose.msra.mxu0 %v1197_v30  ;;  %4230 = vmatprep.mubr.msk.bf16.mxu0 %vm4713_vm5, %v4712_v33 }
 0x6ec   :  { %4240 = vmatprep.subr.bf16.mxu0 %v4712_v33 }
 0x6f2   :  { %4231 = vmatmul.mubr.msk.bf16.vlgmr.msra.gmra.mxu0 %vm486_vm6, %v1190_v35 }
 0x6f3   :  { %4241 = vmatpush3.bf16.xpose.msra.mxu0 %v1312_v36  ;;  %4242 = vmatprep.mubr.msk.bf16.mxu0 %vm4713_vm5, %v4712_v33 }
 0x6f4   :  { %4252 = vmatprep.subr.bf16.mxu0 %v4712_v33 }
 0x6fa   :  { %4243 = vmatmul.mubr.msk.bf16.vlgmr.msra.gmra.mxu0 %vm486_vm6, %v1305_v38 }
 0x6fb   :  { %4260 = vmatprep.mubr.msk.bf16.mxu0 %vm4713_vm5, %v4712_v33 }
 0x792   :  { %v761_v39 = vpop.f32.mrf.mxu0 }
 0x793   :  { %v767_v40 = vsel %vm533_vm9, %v761_v39, -inf }
 0x794   :  { %v592_v41 = vpop.f32.mrf.mxu1  ;;  %768 = vmax.xlane.f32.xlu1 %v767_v40  ;;  %v4184_v42 = vpop.f32.mrf.mxu0 }
 0x795   :  { %599 = vst.msk [vmem:[#allocation2] sm:$0x1f] %vm598_vm11, %v592_v41 }
 0x796   :  { %v4166_v43 = vpop.f32.mrf.mxu1  ;;  %v764_v44 = vpop.f32.mrf.mxu0 }
 0x798   :  { %v595_v45 = vpop.f32.mrf.mxu1  ;;  %v4185_v46 = vpop.f32.mrf.mxu0 }
 0x79a   :  { %v4167_v47 = vpop.f32.mrf.mxu1  ;;  %v877_v48 = vpop.f32.mrf.mxu0 }
 0x79b   :  { %v883_v59 = vsel %vm533_vm9, %v877_v48, -inf }
 0x79c   :  { %v644_v50 = vpop.f32.mrf.mxu1  ;;  %v4196_v51 = vpop.f32.mrf.mxu0 }
 0x79d   :  { %v650_v52 = vsel %vm533_vm9, %v644_v50, -inf }
 0x79e   :  { %651 = vmax.xlane.f32.xlu0 %v650_v52  ;;  %v4172_v54 = vpop.f32.mrf.mxu1  ;;  %v880_v55 = vpop.f32.mrf.mxu0 }
 0x7a0   :  { %v647_v56 = vpop.f32.mrf.mxu1  ;;  %v4197_v58 = vpop.f32.mrf.mxu0 }
 0x7a2   :  { %v4173_v60 = vpop.f32.mrf.mxu1  ;;  %884 = vmax.xlane.f32.xlu0 %v883_v59  ;;  %v1000_v63 = vpop.f32.mrf.mxu0 }
 0x7a3   :  { %v1006_v2 = vsel %vm533_vm9, %v1000_v63, -inf }
 0x7a4   :  { %v4208_v0 = vpop.f32.mrf.mxu0 }
 0x7a5   :  { %v1023_v0 = vshll.u32 %v4957_v49, 16 }
 0x7a6   :  { %1007 = vmax.xlane.f32.xlu0 %v1006_v2  ;;  %v1003_v3 = vpop.f32.mrf.mxu0 }
 0x7a7   :  { %v1025_v3 = vrot.slane %v1023_v0, 3 }
 0x7a8   :  { %v4209_v4 = vpop.f32.mrf.mxu0 }
 0x7aa   :  { %v1118_v5 = vpop.f32.mrf.mxu0 }
 0x7ab   :  { %v1124_v6 = vsel %vm533_vm9, %v1118_v5, -inf }
 0x7ac   :  { %1125 = vmax.xlane.f32.xlu0 %v1124_v6  ;;  %v4220_v7 = vpop.f32.mrf.mxu0 }
 0x7ae   :  { %v1121_v8 = vpop.f32.mrf.mxu0 }
 0x7b0   :  { %v4221_v9 = vpop.f32.mrf.mxu0 }
 0x7b2   :  { %v1233_v10 = vpop.f32.mrf.mxu0 }
 0x7b3   :  { %v1239_v11 = vsel %vm533_vm9, %v1233_v10, -inf }
 0x7b4   :  { %1240 = vmax.xlane.f32.xlu1 %v1239_v11  ;;  %v4232_v12 = vpop.f32.mrf.mxu0 }
 0x7b6   :  { %v1236_v13 = vpop.f32.mrf.mxu0 }
 0x7b8   :  { %v4233_v14 = vpop.f32.mrf.mxu0 }
 0x7ba   :  { %v1348_v15 = vpop.f32.mrf.mxu0 }
 0x7bb   :  { %v1354_v16 = vsel %vm533_vm9, %v1348_v15, -inf }
 0x7bc   :  { %1355 = vmax.xlane.f32.xlu0 %v1354_v16  ;;  %v4244_v17 = vpop.f32.mrf.mxu0 }
 0x7be   :  { %v1351_v18 = vpop.f32.mrf.mxu0 }
 0x7c0   :  { %v4245_v19 = vpop.f32.mrf.mxu0 }
 0x81d   :  { %v769_v20 = vpop.xlane.xlu1 %768 }
 0x81e   :  { %v770_v21 = vsub.f32 %v761_v39, %v769_v20 }
 0x820   :  { %v771_v22 = vmul.f32 1.442695, %v770_v21 }
 0x822   :  { %4560 = vpow2.f32 %v771_v22 }
 0x827   :  { %v652_v23 = vpop.xlane.xlu0 %651 }
 0x828   :  { %v653_v24 = vsub.f32 %v644_v50, %v652_v23 }
 0x82a   :  { %v654_v27 = vmul.f32 1.442695, %v653_v24 }
 0x82b   :  { %v885_v25 = vpop.xlane.xlu0 %884 }
 0x82c   :  { %v886_v26 = vsub.f32 %v877_v48, %v885_v25 }
 0x82e   :  { %v887_v28 = vmul.f32 1.442695, %v886_v26 }
 0x82f   :  { %v5042_v29 = vpop.eup %4560  ;;  %v1008_v30 = vpop.xlane.xlu0 %1007 }
 0x830   :  { %4562 = vpow2.f32 %v887_v28  ;;  %v1009_v32 = vsub.f32 %v1000_v63, %v1008_v30  ;;  %v773_v35 = vsel %vm533_vm9, %v5042_v29, 0.0  ;;  %v1020_v63 = vshrl.u32 %v4957_v49, 16 }
 0x831   :  { %774 = vadd.xlane.f32.xlu0 %v773_v35  ;;  %4564 = vpow2.f32 %v654_v27 }
 0x832   :  { %v1010_v36 = vmul.f32 1.442695, %v1009_v32  ;;  %v1022_v2 = vrot.slane %v1020_v63, 2 }
 0x834   :  { %4566 = vpow2.f32 %v1010_v36  ;;  %v1026_v4 = vor.u32 %v1025_v3, %v1022_v2 }
 0x835   :  { %v1126_v38 = vpop.xlane.xlu0 %1125 }
 0x836   :  { %v1127_v39 = vsub.f32 %v1118_v5, %v1126_v38  ;;  %v1031_v25 = vand.u32 %v1026_v4, %v4974_v62 }
 0x838   :  { %v1128_v40 = vmul.f32 1.442695, %v1127_v39 }
 0x83a   :  { %4568 = vpow2.f32 %v1128_v40 }
 0x83d   :  { %v5046_v41 = vpop.eup %4562  ;;  %v1241_v50 = vpop.xlane.xlu1 %1240 }
 0x83e   :  { %v889_v42 = vsel %vm533_vm9, %v5046_v41, 0.0  ;;  %v4565_v43 = vpop.eup %4564  ;;  %v1242_v51 = vsub.f32 %v1233_v10, %v1241_v50 }
 0x83f   :  { %890 = vadd.xlane.f32.xlu1 %v889_v42  ;;  %v656_v45 = vsel %vm533_vm9, %v4565_v43, 0.0 }
 0x840   :  { %v1243_v52 = vmul.f32 1.442695, %v1242_v51 }
 0x841   :  { %v5050_v44 = vpop.eup %4566 }
 0x842   :  { %v1012_v46 = vsel %vm533_vm9, %v5050_v44, 0.0  ;;  %4570 = vpow2.f32 %v1243_v52 }
 0x843   :  { %657 = vadd.xlane.f32.xlu1 %v656_v45  ;;  %1013 = vadd.xlane.f32.xlu0 %v1012_v46 }
 0x845   :  { %v1356_v54 = vpop.xlane.xlu0 %1355 }
 0x846   :  { %v1357_v55 = vsub.f32 %v1348_v15, %v1356_v54 }
 0x847   :  { %v5055_v47 = vpop.eup %4568 }
 0x848   :  { %v1130_v48 = vsel %vm533_vm9, %v5055_v47, 0.0  ;;  %v1358_v56 = vmul.f32 1.442695, %v1357_v55 }
 0x849   :  { %1131 = vadd.xlane.f32.xlu0 %v1130_v48 }
 0x84a   :  { %4572 = vpow2.f32 %v1358_v56 }
 0x84f   :  { %v5065_v58 = vpop.eup %4570 }
 0x850   :  { %v1245_v59 = vsel %vm533_vm9, %v5065_v58, 0.0 }
 0x854   :  { %663 = vrot.lane.b32.xlu1 %v4972_v61, %s4715_s5 }
 0x857   :  { %v5069_v60 = vpop.eup %4572 }
 0x85f   :  { %779 = vrot.lane.b32.xlu0 %v4972_v61, %s4716_s9 }
 0x863   :  { %895 = vrot.lane.b32.xlu0 %v4972_v61, %s4717_s13  ;;  %v1360_v61 = vsel %vm533_vm9, %v5069_v60, 0.0 }
 0x878   :  { %1246 = vadd.xlane.f32.xlu1 %v1245_v59 }
 0x882   :  { %1361 = vadd.xlane.f32.xlu0 %v1360_v61 }
 0x889   :  { %1136 = vrot.lane.b32.xlu1 %v1026_v4, %s4715_s5 }
 0x88d   :  { %1366 = vrot.lane.b32.xlu1 %v1026_v4, %s4717_s13 }
 0x898   :  { %1251 = vrot.lane.b32.xlu0 %v1026_v4, %s4716_s9 }
 0x8ba   :  { %v775_v7 = vpop.xlane.xlu0 %774 }
 0x8c8   :  { %v891_v5 = vpop.xlane.xlu1 %890 }
 0x8cc   :  { %v658_v6 = vpop.xlane.xlu1 %657  ;;  %v1014_v49 = vpop.xlane.xlu0 %1013 }
 0x8cd   :  { %4574 = vrcp.f32 %v658_v6  ;;  %v4466_v6 = vld [vmem:[%s4781_s19 + $0x18] sm:$0xff]  }
 0x8ce   :  { %4576 = vrcp.f32 %v775_v7  ;;  %4253 = vmatpush3.bf16.msra.mxu0 %v4466_v6 }
 0x8cf   :  { %4578 = vrcp.f32 %v891_v5  ;;  %4254 = vmatprep.subr.bf16.mxu0 %v4712_v33 }
 0x8d0   :  { %v664_v8 = vpop.permute.xlu1 %663  ;;  %4580 = vrcp.f32 %v1014_v49 }
 0x8d1   :  { %v669_v9 = vand.u32 %v664_v8, %v4974_v62  ;;  %v4467_v8 = vld [vmem:[%s4781_s19 + $0x10] sm:$0xff]  }
 0x8d2   :  { %v1132_v10 = vpop.xlane.xlu0 %1131  ;;  %4255 = vmatpush3.bf16.msra.mxu0 %v4467_v8 }
 0x8d3   :  { %4175 = vmatpush3.bf16.msra.mxu1 %v669_v9  ;;  %4582 = vrcp.f32 %v1132_v10  ;;  %4256 = vmatprep.subr.bf16.mxu0 %v4712_v33 }
 0x8d4   :  { %4186 = vmatprep.subr.bf16.mxu1 %v4712_v33 }
 0x8d6   :  { %v780_v12 = vpop.permute.xlu0 %779 }
 0x8d7   :  { %v785_v16 = vand.u32 %v780_v12, %v4974_v62  ;;  %v4469_v12 = vld [vmem:[%s4781_s19] sm:$0xff]  }
 0x8da   :  { %v4575_v11 = vpop.eup %4574  ;;  %v896_v18 = vpop.permute.xlu0 %895 }
 0x8db   :  { %v660_v13 = vmul.f32 %v4575_v11, %v4565_v43  ;;  %v4577_v15 = vpop.eup %4576  ;;  %v901_v21 = vand.u32 %v896_v18, %v4974_v62  ;;  %v4468_v11 = vld [vmem:[%s4781_s19 + $0x8] sm:$0xff]  }
 0x8dc   :  { %v777_v17 = vmul.f32 %v4577_v15, %v5042_v29  ;;  %v4579_v20 = vpop.eup %4578  ;;  %4257 = vmatpush3.bf16.msra.mxu0 %v4468_v11 }
 0x8dd   :  { %v661_v14 = vpack.c.bf16 %v660_v13, %v660_v13  ;;  %v893_v22 = vmul.f32 %v4579_v20, %v5046_v41  ;;  %v4581_v24 = vpop.eup %4580  ;;  %4258 = vmatprep.subr.bf16.mxu0 %v4712_v33 }
 0x8de   :  { %v778_v19 = vpack.c.bf16 %v777_v17, %v777_v17  ;;  %v1016_v26 = vmul.f32 %v4581_v24, %v5050_v44 }
 0x8df   :  { %4177 = vmatmul.mubr.msk.bf16.vlgmr.msra.gmra.mxu1 %vm547_vm10, %v661_v14  ;;  %v894_v23 = vpack.c.bf16 %v893_v22, %v893_v22 }
 0x8e0   :  { %4187 = vmatpush3.bf16.msra.mxu1 %v785_v16  ;;  %4188 = vmatprep.mubr.msk.bf16.mxu1 %vm4713_vm5, %v4712_v33  ;;  %v1017_v27 = vpack.c.bf16 %v1016_v26, %v1016_v26  ;;  %v4583_v29 = vpop.eup %4582 }
 0x8e1   :  { %4198 = vmatprep.subr.bf16.mxu1 %v4712_v33  ;;  %v1134_v32 = vmul.f32 %v4583_v29, %v5055_v47  ;;  %4259 = vmatpush3.bf16.msra.mxu0 %v4469_v12 }
 0x8e3   :  { %v1135_v36 = vpack.c.bf16 %v1134_v32, %v1134_v32  ;;  %v3855_v32 = vld [vmem:[%s4786_s24] ss:$0 sm:$0xff] }
 0x8e7   :  { %4189 = vmatmul.mubr.msk.bf16.vlgmr.msra.gmra.mxu1 %vm547_vm10, %v778_v19 }
 0x8e8   :  { %4199 = vmatpush3.bf16.msra.mxu1 %v901_v21  ;;  %4200 = vmatprep.mubr.msk.bf16.mxu1 %vm4713_vm5, %v4712_v33 }
 0x8e9   :  { %4210 = vmatprep.subr.bf16.mxu1 %v4712_v33 }
 0x8ef   :  { %4201 = vmatmul.mubr.msk.bf16.vlgmr.msra.gmra.mxu1 %vm547_vm10, %v894_v23 }
 0x8f0   :  { %4211 = vmatpush3.bf16.msra.mxu1 %v1031_v25  ;;  %4212 = vmatprep.mubr.msk.bf16.mxu1 %vm4713_vm5, %v4712_v33 }
 0x8f1   :  { %4222 = vmatprep.subr.bf16.mxu1 %v4712_v33 }
 0x8f7   :  { %4213 = vmatmul.mubr.msk.bf16.vlgmr.msra.gmra.mxu1 %vm547_vm10, %v1017_v27 }
 0x8f8   :  { %4224 = vmatprep.mubr.msk.bf16.mxu1 %vm4713_vm5, %v4712_v33 }
 0x901   :  { %v1247_v28 = vpop.xlane.xlu1 %1246 }
 0x902   :  { %4584 = vrcp.f32 %v1247_v28 }
 0x905   :  { %v1137_v30 = vpop.permute.xlu1 %1136 }
 0x906   :  { %v1142_v35 = vand.u32 %v1137_v30, %v4974_v62 }
 0x908   :  { %4223 = vmatpush3.bf16.msra.mxu1 %v1142_v35 }
 0x909   :  { %4234 = vmatprep.subr.bf16.mxu1 %v4712_v33  ;;  %v1367_v43 = vpop.permute.xlu1 %1366 }
 0x90a   :  { %v1372_v45 = vand.u32 %v1367_v43, %v4974_v62 }
 0x90b   :  { %4225 = vmatmul.mubr.msk.bf16.vlgmr.msra.gmra.mxu1 %vm547_vm10, %v1135_v36  ;;  %v1362_v38 = vpop.xlane.xlu0 %1361 }
 0x90c   :  { %4586 = vrcp.f32 %v1362_v38  ;;  %4236 = vmatprep.mubr.msk.bf16.mxu1 %vm4713_vm5, %v4712_v33 }
 0x90f   :  { %v4585_v39 = vpop.eup %4584  ;;  %v1252_v40 = vpop.permute.xlu0 %1251 }
 0x910   :  { %v1257_v41 = vand.u32 %v1252_v40, %v4974_v62  ;;  %v1249_v42 = vmul.f32 %v4585_v39, %v5065_v58 }
 0x912   :  { %4235 = vmatpush3.bf16.msra.mxu1 %v1257_v41  ;;  %v1250_v44 = vpack.c.bf16 %v1249_v42, %v1249_v42 }
 0x913   :  { %4246 = vmatprep.subr.bf16.mxu1 %v4712_v33 }
 0x915   :  { %4237 = vmatmul.mubr.msk.bf16.vlgmr.msra.gmra.mxu1 %vm547_vm10, %v1250_v44 }
 0x916   :  { %4247 = vmatpush3.bf16.msra.mxu1 %v1372_v45  ;;  %4248 = vmatprep.mubr.msk.bf16.mxu1 %vm4713_vm5, %v4712_v33 }
 0x919   :  { %v4587_v46 = vpop.eup %4586 }
 0x91a   :  { %v1364_v47 = vmul.f32 %v4587_v46, %v5069_v60 }
 0x91c   :  { %v1365_v48 = vpack.c.bf16 %v1364_v47, %v1364_v47 }
 0x91e   :  { %4249 = vmatmul.mubr.msk.bf16.vlgmr.msra.gmra.mxu1 %vm547_vm10, %v1365_v48 }
 0x91f   :  { %1649 = vmatprep.mubr.bf16.mxu1 %v4711_v1 }
 0x99f   :  { %v705_v50 = vpop.f32.mrf.mxu1 }
 0x9a0   :  { %712 = vrot.lane.b32.xlu1 %v705_v50, %s4720_s25 }
 0x9a1   :  { %v4178_v51 = vpop.f32.mrf.mxu1 }
 0x9a3   :  { %v708_v52 = vpop.f32.mrf.mxu1 }
 0x9a5   :  { %v4179_v54 = vpop.f32.mrf.mxu1 }
 0x9a7   :  { %v821_v55 = vpop.f32.mrf.mxu1 }
 0x9a8   :  { %828 = vrot.lane.b32.xlu1 %v821_v55, %s4719_s21  ;;  %v4472_v55 = vld [vmem:[%s4801_s12 + $0x34] ss:$8 sps:$4 sm:$0xff]  }
 0x9a9   :  { %v4190_v56 = vpop.f32.mrf.mxu1  ;;  %1625 = vmatprep.subr.bf16.mxu1 %v4472_v55 }
 0x9aa   :  { %v4470_v56 = vld [vmem:[%s4801_s12 + $0x30] ss:$8 sps:$4 sm:$0xff]  }
 0x9ab   :  { %v824_v58 = vpop.f32.mrf.mxu1  ;;  %1626 = vmatpush1.bf16.msra.mxu1 %v4470_v56 }
 0x9ac   :  { %v4475_v58 = vld [vmem:[%s4801_s12 + $0x24] ss:$8 sps:$4 sm:$0xff]  }
 0x9ad   :  { %v4191_v59 = vpop.f32.mrf.mxu1  ;;  %1627 = vmatprep.subr.bf16.mxu1 %v4475_v58 }
 0x9ae   :  { %v4473_v59 = vld [vmem:[%s4801_s12 + $0x20] ss:$8 sps:$4 sm:$0xff]  }
 0x9af   :  { %v937_v60 = vpop.f32.mrf.mxu1  ;;  %1628 = vmatpush1.bf16.msra.mxu1 %v4473_v59 }
 0x9b0   :  { %944 = vrot.lane.b32.xlu0 %v937_v60, %s4718_s17  ;;  %v4478_v60 = vld [vmem:[%s4801_s12 + $0x14] ss:$8 sps:$4 sm:$0xff]  }
 0x9b1   :  { %v4202_v63 = vpop.f32.mrf.mxu1  ;;  %1629 = vmatprep.subr.bf16.mxu1 %v4478_v60 }
 0x9b2   :  { %v4476_v63 = vld [vmem:[%s4801_s12 + $0x10] ss:$8 sps:$4 sm:$0xff]  }
 0x9b3   :  { %v940_v0 = vpop.f32.mrf.mxu1  ;;  %1630 = vmatpush1.bf16.msra.mxu1 %v4476_v63 }
 0x9b4   :  { %v4481_v0 = vld [vmem:[%s4801_s12 + $0x4] ss:$8 sps:$4 sm:$0xff]  }
 0x9b5   :  { %v4203_v61 = vpop.f32.mrf.mxu1  ;;  %1631 = vmatprep.subr.bf16.mxu1 %v4481_v0 }
 0x9b6   :  { %v4479_v61 = vld [vmem:[%s4801_s12] ss:$8 sps:$4 sm:$0xff]  }
 0x9b7   :  { %v1067_v2 = vpop.f32.mrf.mxu1  ;;  %1632 = vmatpush1.bf16.msra.mxu1 %v4479_v61 }
 0x9b8   :  { %1073 = vst.msk [vmem:[#allocation2 + $0x5] sm:$0x1f] %vm598_vm11, %v1067_v2 }
 0x9b9   :  { %v4214_v3 = vpop.f32.mrf.mxu1 }
 0x9bb   :  { %v1070_v4 = vpop.f32.mrf.mxu1 }
 0x9bd   :  { %v4215_v5 = vpop.f32.mrf.mxu1 }
 0x9cb   :  { %v1178_v7 = vpop.f32.mrf.mxu1 }
 0x9cc   :  { %1185 = vrot.lane.b32.xlu1 %v1178_v7, %s4720_s25 }
 0x9cd   :  { %v4226_v49 = vpop.f32.mrf.mxu1 }
 0x9cf   :  { %v1181_v9 = vpop.f32.mrf.mxu1 }
 0x9d0   :  { %v3856_v9 = vld [vmem:[%s4791_s30] ss:$0 sm:$0xff] }
 0x9d1   :  { %v4227_v10 = vpop.f32.mrf.mxu1 }
 0x9d5   :  { %v1293_v13 = vpop.f32.mrf.mxu1 }
 0x9d6   :  { %1300 = vrot.lane.b32.xlu1 %v1293_v13, %s4719_s21  ;;  %v3857_v13 = vld [vmem:[%s5508_s7] ss:$0 sm:$0xff] }
 0x9d7   :  { %v4238_v14 = vpop.f32.mrf.mxu1 }
 0x9d9   :  { %v1296_v15 = vpop.f32.mrf.mxu1 }
 0x9db   :  { %v4239_v16 = vpop.f32.mrf.mxu1 }
 0x9de   :  { %v1408_v17 = vpop.f32.mrf.mxu1 }
 0x9df   :  { %1415 = vrot.lane.b32.xlu1 %v1408_v17, %s4718_s17 }
 0x9e0   :  { %v4250_v18 = vpop.f32.mrf.mxu1 }
 0x9e1   :  { %v4482_v18 = vld [vmem:[%s5509_s10 + $0x78] sm:$0xff]  }
 0x9e2   :  { %v1411_v19 = vpop.f32.mrf.mxu1  ;;  %4064 = vmatprep.subr.bf16.mxu0 %v4482_v18 }
 0x9e3   :  { %v4483_v19 = vld [vmem:[%s5509_s10 + $0x38] sm:$0xff]  }
 0x9e4   :  { %v4251_v20 = vpop.f32.mrf.mxu1 }
 0x9e5   :  { %v4484_v20 = vld [vmem:[%s5509_s10 + $0x70] sm:$0xff]  }
 0xa12   :  { %v713_v21 = vpop.permute.xlu1 %712 }
 0xa13   :  { %716 = vst.msk [vmem:[#allocation2] sm:$0x1f] %vm715_vm12, %v713_v21  ;;  %v4485_v21 = vld [vmem:[%s5509_s10 + $0x30] sm:$0xff]  }
 0xa1a   :  { %v829_v22 = vpop.permute.xlu1 %828 }
 0xa1b   :  { %832 = vst.msk [vmem:[#allocation2] sm:$0x1f] %vm831_vm13, %v829_v22  ;;  %v4486_v22 = vld [vmem:[%s5509_s10 + $0x68] sm:$0xff]  }
 0xa22   :  { %v945_v23 = vpop.permute.xlu0 %944 }
 0xa23   :  { %948 = vst.msk [vmem:[#allocation2] sm:$0x1f] %vm947_vm14, %v945_v23  ;;  %v4487_v23 = vld [vmem:[%s5509_s10 + $0x28] sm:$0xff]  }
 0xa3e   :  { %v1186_v24 = vpop.permute.xlu1 %1185 }
 0xa3f   :  { %1188 = vst.msk [vmem:[#allocation2 + $0x5] sm:$0x1f] %vm715_vm12, %v1186_v24  ;;  %v4488_v24 = vld [vmem:[%s5509_s10 + $0x60] sm:$0xff]  }
 0xa48   :  { %v1301_v25 = vpop.permute.xlu1 %1300 }
 0xa49   :  { %1303 = vst.msk [vmem:[#allocation2 + $0x5] sm:$0x1f] %vm831_vm13, %v1301_v25  ;;  %v4489_v25 = vld [vmem:[%s5509_s10 + $0x20] sm:$0xff]  }
 0xa51   :  { %v1416_v26 = vpop.permute.xlu1 %1415 }
 0xa52   :  { %1418 = vst.msk [vmem:[#allocation2 + $0x5] sm:$0x1f] %vm947_vm14, %v1416_v26  ;;  %v4490_v26 = vld [vmem:[%s5509_s10 + $0x58] sm:$0xff]  }
 0xa59   :  { %v1419_v27 = vld [vmem:[#allocation2] sm:$0xff]  ;;  %v1420_v28 = vld [vmem:[#allocation2 + $0x8] sm:$0x3] }
 0xa5a   :  { %v1421_v29 = vpack.c.bf16 %v1420_v28, %v1419_v27  ;;  %v4491_v27 = vld [vmem:[%s5509_s10 + $0x18] sm:$0xff]   ;;  %v4492_v28 = vld [vmem:[%s5509_s10 + $0x50] sm:$0xff]  }
 0xa5c   :  { %4261 = vmatmul.mubr.msk.bf16.vlgmr.msra.gmra.mxu0 %vm224_vm0, %v1421_v29  ;;  %v4493_v29 = vld [vmem:[%s5509_s10 + $0x10] sm:$0xff]  }
 0xa5d   :  { %4065 = vmatpush3.bf16.msra.mxu0 %v4483_v19 }
 0xa5e   :  { %4066 = vmatprep.subr.bf16.mxu0 %v4484_v20 }
 0xa61   :  { %4067 = vmatpush3.bf16.msra.mxu0 %v4485_v21 }
 0xa62   :  { %4068 = vmatprep.subr.bf16.mxu0 %v4486_v22 }
 0xa65   :  { %4069 = vmatpush3.bf16.msra.mxu0 %v4487_v23 }
 0xa66   :  { %4070 = vmatprep.subr.bf16.mxu0 %v4488_v24 }
 0xa69   :  { %4071 = vmatpush3.bf16.msra.mxu0 %v4489_v25 }
 0xa6a   :  { %4072 = vmatprep.subr.bf16.mxu0 %v4490_v26 }
 0xa6d   :  { %4073 = vmatpush3.bf16.msra.mxu0 %v4491_v27 }
 0xa6e   :  { %4074 = vmatprep.subr.bf16.mxu0 %v4492_v28 }
 0xa71   :  { %4075 = vmatpush3.bf16.msra.mxu0 %v4493_v29 }
 0xb1c   :  { %v1491_v30 = vpop.f32.mrf.mxu0 }
 0xb1d   :  { %v1498_v35 = vadd.f32 %v1491_v30, %v4919_v53  ;;  %v4494_v30 = vld [vmem:[%s5509_s10 + $0x48] sm:$0xff]  }
 0xb1e   :  { %v4262_v36 = vpop.f32.mrf.mxu0  ;;  %4076 = vmatprep.subr.bf16.mxu0 %v4494_v30  ;;  %v3883_v30 = vld [vmem:[%s5511_s15] ss:$0 sm:$0xff] }
 0xb1f   :  { %v5140_v38 = vadd.f32 %v3855_v32, %v1498_v35  ;;  %v4496_v35 = vld [vmem:[%s5509_s10 + $0x40] sm:$0xff]  }
 0xb20   :  { %v1494_v39 = vpop.f32.mrf.mxu0  ;;  %v4497_v36 = vld [vmem:[%s5509_s10] sm:$0xff]  }
 0xb21   :  { %v1499_v40 = vadd.f32 %v1494_v39, %v4923_v57  ;;  %v1511_v41 = vsel %vm224_vm0, %v5140_v38, 0.0  ;;  %v1562_v39 = vld [vmem:[%s5510_s11] sm:$0x3] }
 0xb22   :  { %1512 = vadd.xlane.f32.xlu0 %v1511_v41  ;;  %v4263_v42 = vpop.f32.mrf.mxu0  ;;  %v1571_v41 = vrot.slane %v1562_v39, %v4953_v37 }
 0xb23   :  { %v5145_v43 = vadd.f32 %v3855_v32, %v1499_v40  ;;  %v4495_v32 = vld [vmem:[%s5509_s10 + $0x8] sm:$0xff]   ;;  %v1567_v40 = vrot.slane %v1562_v39, %v4945_v34 }
 0xb24   :  { %4077 = vmatpush3.bf16.msra.mxu0 %v4495_v32 }
 0xb25   :  { %v1514_v44 = vsel %vm290_vm4, %v5145_v43, 0.0  ;;  %4078 = vmatprep.subr.bf16.mxu0 %v4496_v35 }
 0xb26   :  { %1515 = vadd.xlane.f32.xlu1 %v1514_v44 }
 0xb28   :  { %4079 = vmatpush3.bf16.msra.mxu0 %v4497_v36 }
 0xb29   :  { %4276 = vmatprep.subr.bf16.mxu0 %v4712_v33 }
 0xbab   :  { %v1513_v53 = vpop.xlane.xlu0 %1512 }
 0xbac   :  { %v1517_v45 = vmul.f32 0.015625, %v1513_v53 }
 0xbae   :  { %v1519_v46 = vsub.f32 %v5140_v38, %v1517_v45 }
 0xbaf   :  { %v1516_v57 = vpop.xlane.xlu1 %1515 }
 0xbb0   :  { %v1518_v47 = vmul.f32 0.015625, %v1516_v57  ;;  %v1521_v48 = vmul.f32 %v1519_v46, %v1519_v46 }
 0xbb2   :  { %v1520_v50 = vsub.f32 %v5145_v43, %v1518_v47  ;;  %v1523_v51 = vsel %vm224_vm0, %v1521_v48, 0.0 }
 0xbb3   :  { %1524 = vadd.xlane.f32.xlu0 %v1523_v51 }
 0xbb4   :  { %v1522_v52 = vmul.f32 %v1520_v50, %v1520_v50 }
 0xbb6   :  { %v1526_v54 = vsel %vm290_vm4, %v1522_v52, 0.0 }
 0xbb7   :  { %1527 = vadd.xlane.f32.xlu0 %v1526_v54 }
 0xc3c   :  { %v1525_v2 = vpop.xlane.xlu0 %1524 }
 0xc3d   :  { %v1529_v3 = vmul.f32 0.015625, %v1525_v2 }
 0xc3f   :  { %v1531_v4 = vadd.f32 1e-05, %v1529_v3 }
 0xc40   :  { %v1528_v5 = vpop.xlane.xlu0 %1527 }
 0xc41   :  { %4588 = vrsqrt.f32 %v1531_v4  ;;  %v1530_v6 = vmul.f32 0.015625, %v1528_v5 }
 0xc43   :  { %v1532_v7 = vadd.f32 1e-05, %v1530_v6 }
 0xc45   :  { %4590 = vrsqrt.f32 %v1532_v7 }
 0xc4e   :  { %v4589_v8 = vpop.eup %4588 }
 0xc4f   :  { %v1535_v49 = vmul.f32 %v4589_v8, %v1519_v46 }
 0xc51   :  { %v1543_v12 = vmul.f32 %v3856_v9, %v1535_v49 }
 0xc52   :  { %v4591_v10 = vpop.eup %4590 }
 0xc53   :  { %v1536_v11 = vmul.f32 %v4591_v10, %v1520_v50  ;;  %v1551_v15 = vadd.f32 %v3857_v13, %v1543_v12 }
 0xc55   :  { %v1544_v14 = vmul.f32 %v3856_v9, %v1536_v11 }
 0xc57   :  { %v1552_v16 = vadd.f32 %v3857_v13, %v1544_v14 }
 0xc59   :  { %v1553_v17 = vpack.c.bf16 %v1552_v16, %v1551_v15 }
 0xc5b   :  { %3866 = vmatmul.mubr.msk.bf16.vlgmr.msra.gmra.mxu1 %vm224_vm0, %v1553_v17 }
 0xc5c   :  { %2022 = vmatprep.mubr.bf16.mxu1 %v4711_v1 }
 0xd1b   :  { %v1651_v42 = vpop.f32.mrf.mxu1 }
 0xd1c   :  { %v1652_v44 = vadd.f32 %v1651_v42, %v1567_v40 }
 0xd1d   :  { %v1653_v53 = vpop.f32.mrf.mxu1 }
 0xd1e   :  { %v1660_v45 = vmul.f32 %v1652_v44, %v1652_v44  ;;  %v1654_v46 = vadd.f32 %v1653_v53, %v1571_v41 }
 0xd1f   :  { %v1655_v57 = vpop.f32.mrf.mxu1 }
 0xd20   :  { %v1664_v47 = vmul.f32 %v1660_v45, %v1652_v44  ;;  %v1661_v48 = vmul.f32 %v1654_v46, %v1654_v46  ;;  %v1656_v50 = vadd.f32 %v1655_v57, %v1567_v40 }
 0xd21   :  { %v1657_v51 = vpop.f32.mrf.mxu1 }
 0xd22   :  { %v1668_v52 = vmul.f32 0.044715, %v1664_v47  ;;  %v1665_v54 = vmul.f32 %v1661_v48, %v1654_v46  ;;  %v1662_v55 = vmul.f32 %v1656_v50, %v1656_v50  ;;  %v1658_v56 = vadd.f32 %v1657_v51, %v1571_v41 }
 0xd24   :  { %v1672_v58 = vadd.f32 %v1668_v52, %v1652_v44  ;;  %v1669_v59 = vmul.f32 0.044715, %v1665_v54  ;;  %v1666_v60 = vmul.f32 %v1662_v55, %v1656_v50  ;;  %v1663_v63 = vmul.f32 %v1658_v56, %v1658_v56  ;;  %v4500_v54 = vld [vmem:[%s4771_s8 + $0x74] ss:$8 sps:$4 sm:$0xff]   ;;  %v4498_v55 = vld [vmem:[%s4771_s8 + $0x70] ss:$8 sps:$4 sm:$0xff]  }
 0xd25   :  { %1998 = vmatprep.subr.bf16.mxu1 %v4500_v54 }
 0xd26   :  { %v1676_v0 = vmul.f32 0.7978846, %v1672_v58  ;;  %v1673_v61 = vadd.f32 %v1669_v59, %v1654_v46  ;;  %v1670_v2 = vmul.f32 0.044715, %v1666_v60  ;;  %v1667_v3 = vmul.f32 %v1663_v63, %v1658_v56  ;;  %1999 = vmatpush1.bf16.msra.mxu1 %v4498_v55  ;;  %v4501_v58 = vld [vmem:[%s4771_s8 + $0x60] ss:$8 sps:$4 sm:$0xff]  }
 0xd27   :  { %v4506_v59 = vld [vmem:[%s4771_s8 + $0x54] ss:$8 sps:$4 sm:$0xff]   ;;  %v4504_v60 = vld [vmem:[%s4771_s8 + $0x50] ss:$8 sps:$4 sm:$0xff]   ;;  %v4509_v63 = vld [vmem:[%s4771_s8 + $0x44] ss:$8 sps:$4 sm:$0xff]  }
 0xd28   :  { %v1677_v4 = vmul.f32 0.7978846, %v1673_v61  ;;  %v1674_v5 = vadd.f32 %v1670_v2, %v1656_v50  ;;  %v1671_v6 = vmul.f32 0.044715, %v1667_v3  ;;  %4592 = vtanh.f32 %v1676_v0  ;;  %v4507_v0 = vld [vmem:[%s4771_s8 + $0x40] ss:$8 sps:$4 sm:$0xff]  }
 0xd2a   :  { %4594 = vtanh.f32 %v1677_v4  ;;  %v1678_v7 = vmul.f32 0.7978846, %v1674_v5  ;;  %v1675_v8 = vadd.f32 %v1671_v6, %v1658_v56 }
 0xd2c   :  { %4596 = vtanh.f32 %v1678_v7  ;;  %v1679_v49 = vmul.f32 0.7978846, %v1675_v8 }
 0xd2e   :  { %4598 = vtanh.f32 %v1679_v49  ;;  %v3886_v49 = vld [vmem:[%s4761_s29 + $0x1] ss:$0 sm:$0xff]  ;;  %s5512_s29 = sld [smem:[#allocation13_spill]] }
 0xd35   :  { %v4593_v9 = vpop.eup %4592 }
 0xd36   :  { %v1684_v13 = vadd.f32 1.0, %v4593_v9 }
 0xd37   :  { %v4595_v10 = vpop.eup %4594 }
 0xd38   :  { %v1685_v11 = vadd.f32 1.0, %v4595_v10  ;;  %v1688_v19 = vmul.f32 0.5, %v1684_v13 }
 0xd39   :  { %v4597_v12 = vpop.eup %4596 }
 0xd3a   :  { %v1686_v14 = vadd.f32 1.0, %v4597_v12  ;;  %v1689_v18 = vmul.f32 0.5, %v1685_v11  ;;  %v1692_v24 = vmul.f32 %v1688_v19, %v1652_v44  ;;  %v3887_v12 = vld [vmem:[%s4766_s3 + $0x1] ss:$0 sm:$0xff]  ;;  %s5513_s3 = sld [smem:[#allocation11_spill]] }
 0xd3b   :  { %v4599_v15 = vpop.eup %4598 }
 0xd3c   :  { %v1690_v16 = vmul.f32 0.5, %v1686_v14  ;;  %v1687_v17 = vadd.f32 1.0, %v4599_v15  ;;  %v1693_v22 = vmul.f32 %v1689_v18, %v1654_v46 }
 0xd3e   :  { %v1691_v20 = vmul.f32 0.5, %v1687_v17  ;;  %v1694_v21 = vmul.f32 %v1690_v16, %v1656_v50  ;;  %v3896_v17 = vld [vmem:[%s4776_s14 + $0x2] sm:$0x3]  ;;  %s5515_s14 = sld [smem:[#allocation14_spill]] }
 0xd3f   :  { %v1940_v18 = vrot.slane %v3896_v17, %v4945_v34 }
 0xd40   :  { %v1695_v23 = vmul.f32 %v1691_v20, %v1658_v56  ;;  %v1696_v26 = vpack.c.bf16 %v1694_v21, %v1692_v24  ;;  %v4503_v56 = vld [vmem:[%s4771_s8 + $0x64] ss:$8 sps:$4 sm:$0xff]   ;;  %s5514_s8 = sld [smem:[#allocation12_spill]] }
 0xd41   :  { %2000 = vmatprep.subr.bf16.mxu1 %v4503_v56 }
 0xd42   :  { %v1697_v25 = vpack.c.bf16 %v1695_v23, %v1693_v22  ;;  %2001 = vmatpush1.bf16.msra.mxu1 %v4501_v58  ;;  %v1944_v23 = vrot.slane %v3896_v17, %v4953_v37 }
 0xd43   :  { %2002 = vmatprep.subr.bf16.mxu1 %v4506_v59 }
 0xd44   :  { %1858 = vmatprep.mubr.bf16.mxu0 %v1697_v25 }
 0xd45   :  { %1859 = vmatmul.mubr.bf16.vlgmr.msra.gmra.mxu0 %v1696_v26 }
 0xd46   :  { %4278 = vmatprep.mubr.msk.bf16.mxu0 %vm4713_vm5, %v4712_v33  ;;  %2003 = vmatpush1.bf16.msra.mxu1 %v4504_v60 }
 0xd47   :  { %2004 = vmatprep.subr.bf16.mxu1 %v4509_v63 }
 0xd4a   :  { %2005 = vmatpush1.bf16.msra.mxu1 %v4507_v0 }
 0xd4b   :  { %4264 = vmatprep.subr.bf16.mxu1 %v4712_v33 }
 0xe05   :  { %v4080_v27 = vpop.f32.mrf.mxu0 }
 0xe07   :  { %v4081_v28 = vpop.f32.mrf.mxu0 }
 0xe08   :  { %v4082_v29 = vadd.f32 %v4081_v28, %v4080_v27 }
 0xe09   :  { %v4083_v32 = vpop.f32.mrf.mxu0 }
 0xe0a   :  { %v1867_v35 = vadd.f32 %v4082_v29, %v5140_v38 }
 0xe0b   :  { %v4084_v36 = vpop.f32.mrf.mxu0 }
 0xe0c   :  { %v5189_v39 = vadd.f32 %v3883_v30, %v1867_v35  ;;  %v4085_v40 = vadd.f32 %v4084_v36, %v4083_v32 }
 0xe0e   :  { %v1868_v41 = vadd.f32 %v4085_v40, %v5145_v43  ;;  %v1882_v42 = vsel %vm224_vm0, %v5189_v39, 0.0 }
 0xe0f   :  { %1883 = vadd.xlane.f32.xlu0 %v1882_v42 }
 0xe10   :  { %v5194_v44 = vadd.f32 %v3883_v30, %v1868_v41 }
 0xe12   :  { %v1885_v53 = vsel %vm290_vm4, %v5194_v44, 0.0 }
 0xe13   :  { %1886 = vadd.xlane.f32.xlu1 %v1885_v53 }
 0xe98   :  { %v1884_v45 = vpop.xlane.xlu0 %1883 }
 0xe99   :  { %v1888_v38 = vmul.f32 0.015625, %v1884_v45 }
 0xe9b   :  { %v1890_v46 = vsub.f32 %v5189_v39, %v1888_v38 }
 0xe9c   :  { %v1887_v57 = vpop.xlane.xlu1 %1886 }
 0xe9d   :  { %v1889_v43 = vmul.f32 0.015625, %v1887_v57  ;;  %v1892_v47 = vmul.f32 %v1890_v46, %v1890_v46 }
 0xe9f   :  { %v1891_v48 = vsub.f32 %v5194_v44, %v1889_v43  ;;  %v1894_v50 = vsel %vm224_vm0, %v1892_v47, 0.0 }
 0xea0   :  { %1895 = vadd.xlane.f32.xlu0 %v1894_v50 }
 0xea1   :  { %v1893_v51 = vmul.f32 %v1891_v48, %v1891_v48 }
 0xea3   :  { %v1897_v52 = vsel %vm290_vm4, %v1893_v51, 0.0 }
 0xea4   :  { %1898 = vadd.xlane.f32.xlu1 %v1897_v52 }
 0xf29   :  { %v1896_v61 = vpop.xlane.xlu0 %1895 }
 0xf2a   :  { %v1900_v2 = vmul.f32 0.015625, %v1896_v61 }
 0xf2c   :  { %v1902_v3 = vadd.f32 1e-05, %v1900_v2 }
 0xf2d   :  { %v1899_v4 = vpop.xlane.xlu1 %1898 }
 0xf2e   :  { %4600 = vrsqrt.f32 %v1902_v3  ;;  %v1901_v5 = vmul.f32 0.015625, %v1899_v4 }
 0xf30   :  { %v1903_v6 = vadd.f32 1e-05, %v1901_v5 }
 0xf32   :  { %4602 = vrsqrt.f32 %v1903_v6 }
 0xf3b   :  { %v4601_v7 = vpop.eup %4600 }
 0xf3c   :  { %v1906_v8 = vmul.f32 %v4601_v7, %v1890_v46 }
 0xf3e   :  { %v1914_v11 = vmul.f32 %v3886_v49, %v1906_v8 }
 0xf3f   :  { %v4603_v9 = vpop.eup %4602 }
 0xf40   :  { %v1907_v10 = vmul.f32 %v4603_v9, %v1891_v48  ;;  %v1922_v14 = vadd.f32 %v3887_v12, %v1914_v11 }
 0xf42   :  { %v1915_v13 = vmul.f32 %v3886_v49, %v1907_v10 }
 0xf44   :  { %v1923_v15 = vadd.f32 %v3887_v12, %v1915_v13 }
 0xf46   :  { %v1924_v16 = vpack.c.bf16 %v1923_v15, %v1922_v14 }
 0xf48   :  { %3905 = vmatmul.mubr.msk.bf16.vlgmr.msra.gmra.mxu1 %vm224_vm0, %v1924_v16 }
 0xf49   :  { %4266 = vmatprep.mubr.msk.bf16.mxu1 %vm4713_vm5, %v4712_v33 }
0x1008   :  { %v2024_v19 = vpop.f32.mrf.mxu1 }
0x1009   :  { %v2025_v20 = vadd.f32 %v2024_v19, %v1940_v18 }
0x100a   :  { %v2026_v21 = vpop.f32.mrf.mxu1 }
0x100b   :  { %v2033_v22 = vpack.c.bf16 %v2025_v20, %v2025_v20  ;;  %v2027_v27 = vadd.f32 %v2026_v21, %v1944_v23 }
0x100c   :  { %v2028_v24 = vpop.f32.mrf.mxu1 }
0x100d   :  { %v2029_v25 = vadd.f32 %v2028_v24, %v1940_v18  ;;  %2145 = vrot.lane.b32.xlu1 %v2033_v22, %s4718_s17  ;;  %2035 = vrot.lane.b32.xlu0 %v2033_v22, %s4714_s0  ;;  %v5239_v46 = vpack.c.bf16 %v2027_v27, %v2027_v27 }
0x100e   :  { %v2030_v26 = vpop.f32.mrf.mxu1 }
0x100f   :  { %v2489_v28 = vpack.c.bf16 %v2029_v25, %v2025_v20  ;;  %v2031_v29 = vadd.f32 %v2030_v26, %v1944_v23  ;;  %v2100_v47 = vand.u32 %v5239_v46, %v4974_v62 }
0x1011   :  { %v2491_v30 = vshrl.u32 %v2489_v28, 16  ;;  %v2494_v32 = vshll.u32 %v2489_v28, 16  ;;  %v5221_v35 = vpack.c.bf16 %v2031_v29, %v2027_v27  ;;  %2143 = vrot.lane.b32.xlu1 %v2033_v22, %s4715_s5  ;;  %2259 = vrot.lane.b32.xlu0 %v2033_v22, %s4716_s9 }
0x1013   :  { %v2493_v36 = vrot.slane %v2491_v30, 2  ;;  %v2496_v40 = vrot.slane %v2494_v32, 3 }
0x1015   :  { %2261 = vrot.lane.b32.xlu1 %v2033_v22, %s4719_s21  ;;  %2374 = vrot.lane.b32.xlu0 %v2033_v22, %s4717_s13  ;;  %v2497_v41 = vor.u32 %v2496_v40, %v2493_v36 }
0x1019   :  { %2376 = vrot.lane.b32.xlu1 %v2033_v22, %s4720_s25  ;;  %2616 = vrot.lane.b32.xlu0 %v2497_v41, %s4718_s17 }
0x101d   :  { %2498 = vrot.lane.b32.xlu1 %v2497_v41, %s4714_s0  ;;  %2731 = vrot.lane.b32.xlu0 %v2497_v41, %s4719_s21 }
0x1021   :  { %2614 = vrot.lane.b32.xlu1 %v2497_v41, %s4715_s5  ;;  %2846 = vrot.lane.b32.xlu0 %v2497_v41, %s4720_s25 }
0x1025   :  { %2729 = vrot.lane.b32.xlu1 %v2497_v41, %s4716_s9 }
0x1029   :  { %2844 = vrot.lane.b32.xlu1 %v2497_v41, %s4717_s13 }
0x107f   :  { %v2146_v42 = vpop.permute.xlu1 %2145  ;;  %v2036_v53 = vpop.permute.xlu0 %2035 }
0x1080   :  { %v2151_v45 = vsel %vm486_vm6, %v2146_v42, 0  ;;  %v2041_v38 = vsel %vm486_vm6, %v2036_v53, 0 }
0x1081   :  { %4265 = vmatpush3.bf16.xpose.msra.mxu1 %v2041_v38  ;;  %4277 = vmatpush3.bf16.xpose.msra.mxu0 %v2151_v45 }
0x1082   :  { %4270 = vmatprep.subr.bf16.mxu1 %v4712_v33  ;;  %4288 = vmatprep.subr.bf16.mxu0 %v4712_v33 }
0x1083   :  { %v2144_v57 = vpop.permute.xlu1 %2143  ;;  %v2260_v51 = vpop.permute.xlu0 %2259 }
0x1087   :  { %v2262_v43 = vpop.permute.xlu1 %2261  ;;  %v2375_v55 = vpop.permute.xlu0 %2374 }
0x1088   :  { %v2267_v48 = vsel %vm486_vm6, %v2262_v43, 0  ;;  %4267 = vmatmul.mubr.msk.bf16.vlgmr.msra.gmra.mxu1 %vm486_vm6, %v2033_v22  ;;  %4279 = vmatmul.mubr.msk.bf16.vlgmr.msra.gmra.mxu0 %vm486_vm6, %v2144_v57 }
0x1089   :  { %4271 = vmatpush3.bf16.msra.mxu1 %v2100_v47  ;;  %4289 = vmatpush3.bf16.xpose.msra.mxu0 %v2267_v48 }
0x108a   :  { %4290 = vmatprep.mubr.msk.bf16.mxu0 %vm4713_vm5, %v4712_v33  ;;  %4300 = vmatprep.subr.bf16.mxu0 %v4712_v33 }
0x108b   :  { %4272 = vmatprep.mubr.msk.bf16.mxu1 %vm4713_vm5, %v4712_v33  ;;  %4282 = vmatprep.subr.bf16.mxu1 %v4712_v33  ;;  %v2377_v50 = vpop.permute.xlu1 %2376  ;;  %v2617_v58 = vpop.permute.xlu0 %2616 }
0x108c   :  { %v2382_v52 = vsel %vm486_vm6, %v2377_v50, 0  ;;  %v2622_v59 = vsel %vm486_vm6, %v2617_v58, 0 }
0x108f   :  { %v2499_v54 = vpop.permute.xlu1 %2498  ;;  %v2732_v60 = vpop.permute.xlu0 %2731 }
0x1090   :  { %4291 = vmatmul.mubr.msk.bf16.vlgmr.msra.gmra.mxu0 %vm486_vm6, %v2260_v51  ;;  %v2504_v56 = vsel %vm486_vm6, %v2499_v54, 0  ;;  %v2737_v0 = vsel %vm486_vm6, %v2732_v60, 0 }
0x1091   :  { %4301 = vmatpush3.bf16.xpose.msra.mxu0 %v2382_v52  ;;  %4302 = vmatprep.mubr.msk.bf16.mxu0 %vm4713_vm5, %v4712_v33 }
0x1092   :  { %4312 = vmatprep.subr.bf16.mxu0 %v4712_v33 }
0x1093   :  { %v2615_v63 = vpop.permute.xlu1 %2614  ;;  %v2847_v61 = vpop.permute.xlu0 %2846 }
0x1094   :  { %v2852_v3 = vsel %vm486_vm6, %v2847_v61, 0 }
0x1097   :  { %v2730_v2 = vpop.permute.xlu1 %2729 }
0x1098   :  { %4303 = vmatmul.mubr.msk.bf16.vlgmr.msra.gmra.mxu0 %vm486_vm6, %v2375_v55 }
0x1099   :  { %4313 = vmatpush3.bf16.xpose.msra.mxu0 %v2504_v56  ;;  %4314 = vmatprep.mubr.msk.bf16.mxu0 %vm4713_vm5, %v4712_v33 }
0x109a   :  { %4324 = vmatprep.subr.bf16.mxu0 %v4712_v33 }
0x109b   :  { %v2845_v4 = vpop.permute.xlu1 %2844 }
0x10a0   :  { %4315 = vmatmul.mubr.msk.bf16.vlgmr.msra.gmra.mxu0 %vm486_vm6, %v2497_v41 }
0x10a1   :  { %4325 = vmatpush3.bf16.xpose.msra.mxu0 %v2622_v59  ;;  %4326 = vmatprep.mubr.msk.bf16.mxu0 %vm4713_vm5, %v4712_v33 }
0x10a2   :  { %4336 = vmatprep.subr.bf16.mxu0 %v4712_v33 }
0x10a8   :  { %4327 = vmatmul.mubr.msk.bf16.vlgmr.msra.gmra.mxu0 %vm486_vm6, %v2615_v63 }
0x10a9   :  { %4337 = vmatpush3.bf16.xpose.msra.mxu0 %v2737_v0  ;;  %4338 = vmatprep.mubr.msk.bf16.mxu0 %vm4713_vm5, %v4712_v33 }
0x10aa   :  { %4348 = vmatprep.subr.bf16.mxu0 %v4712_v33 }
0x10b0   :  { %4339 = vmatmul.mubr.msk.bf16.vlgmr.msra.gmra.mxu0 %vm486_vm6, %v2730_v2 }
0x10b1   :  { %4349 = vmatpush3.bf16.xpose.msra.mxu0 %v2852_v3  ;;  %4350 = vmatprep.mubr.msk.bf16.mxu0 %vm4713_vm5, %v4712_v33 }
0x10b2   :  { %4360 = vmatprep.subr.bf16.mxu0 %v4712_v33 }
0x10b8   :  { %4351 = vmatmul.mubr.msk.bf16.vlgmr.msra.gmra.mxu0 %vm486_vm6, %v2845_v4  ;;  %vm3763_vm6 = vcmask 123904  }
0x10b9   :  { %4368 = vmatprep.mubr.msk.bf16.mxu0 %vm4713_vm5, %v4712_v33 }
0x1148   :  { %v2077_v5 = vpop.f32.mrf.mxu1  ;;  %v2187_v6 = vpop.f32.mrf.mxu0 }
0x1149   :  { %v2193_v7 = vsel %vm533_vm9, %v2187_v6, -inf  ;;  %v2083_v8 = vsel %vm533_vm9, %v2077_v5, -inf }
0x114a   :  { %2194 = vmax.xlane.f32.xlu1 %v2193_v7  ;;  %v4280_v49 = vpop.f32.mrf.mxu0  ;;  %2084 = vmax.xlane.f32.xlu0 %v2083_v8  ;;  %v4268_v9 = vpop.f32.mrf.mxu1 }
0x114c   :  { %v2080_v10 = vpop.f32.mrf.mxu1  ;;  %v2190_v11 = vpop.f32.mrf.mxu0 }
0x114e   :  { %v4269_v12 = vpop.f32.mrf.mxu1  ;;  %v4281_v13 = vpop.f32.mrf.mxu0 }
0x1150   :  { %v2303_v14 = vpop.f32.mrf.mxu0 }
0x1151   :  { %v2309_v15 = vsel %vm533_vm9, %v2303_v14, -inf }
0x1152   :  { %2310 = vmax.xlane.f32.xlu0 %v2309_v15  ;;  %v4292_v16 = vpop.f32.mrf.mxu0  ;;  %v2563_v15 = vshll.u32 %v5221_v35, 16 }
0x1154   :  { %v2306_v17 = vpop.f32.mrf.mxu0 }
0x1156   :  { %v4293_v18 = vpop.f32.mrf.mxu0 }
0x1157   :  { %v2565_v18 = vrot.slane %v2563_v15, 3 }
0x1158   :  { %v2418_v19 = vpop.f32.mrf.mxu0 }
0x1159   :  { %v2424_v20 = vsel %vm533_vm9, %v2418_v19, -inf }
0x115a   :  { %2425 = vmax.xlane.f32.xlu0 %v2424_v20  ;;  %v4304_v21 = vpop.f32.mrf.mxu0 }
0x115c   :  { %v2421_v22 = vpop.f32.mrf.mxu0 }
0x115e   :  { %v4305_v23 = vpop.f32.mrf.mxu0 }
0x1160   :  { %v2540_v24 = vpop.f32.mrf.mxu0 }
0x1161   :  { %v2546_v25 = vsel %vm533_vm9, %v2540_v24, -inf }
0x1162   :  { %2547 = vmax.xlane.f32.xlu0 %v2546_v25  ;;  %v4316_v26 = vpop.f32.mrf.mxu0 }
0x1164   :  { %v2543_v27 = vpop.f32.mrf.mxu0 }
0x1166   :  { %v4317_v28 = vpop.f32.mrf.mxu0 }
0x1168   :  { %v5285_v29 = vpop.f32.mrf.mxu0 }
0x1169   :  { %v2664_v30 = vsel %vm533_vm9, %v5285_v29, -inf }
0x116a   :  { %2665 = vmax.xlane.f32.xlu1 %v2664_v30  ;;  %v4328_v32 = vpop.f32.mrf.mxu0 }
0x116c   :  { %v2661_v36 = vpop.f32.mrf.mxu0 }
0x116e   :  { %v4329_v40 = vpop.f32.mrf.mxu0 }
0x1170   :  { %v2773_v41 = vpop.f32.mrf.mxu0 }
0x1171   :  { %v2779_v42 = vsel %vm533_vm9, %v2773_v41, -inf }
0x1172   :  { %2780 = vmax.xlane.f32.xlu0 %v2779_v42  ;;  %v4340_v53 = vpop.f32.mrf.mxu0 }
0x1174   :  { %v2776_v45 = vpop.f32.mrf.mxu0 }
0x1176   :  { %v4341_v38 = vpop.f32.mrf.mxu0 }
0x1178   :  { %v2888_v57 = vpop.f32.mrf.mxu0 }
0x1179   :  { %v2894_v43 = vsel %vm533_vm9, %v2888_v57, -inf }
0x117a   :  { %2895 = vmax.xlane.f32.xlu1 %v2894_v43  ;;  %v4352_v47 = vpop.f32.mrf.mxu0 }
0x117c   :  { %v2891_v48 = vpop.f32.mrf.mxu0 }
0x117e   :  { %v4353_v50 = vpop.f32.mrf.mxu0 }
0x1188   :  { %2321 = vrot.lane.b32.xlu0 %v5239_v46, %s4716_s9 }
0x118b   :  { %2206 = vrot.lane.b32.xlu1 %v5239_v46, %s4715_s5 }
0x11d3   :  { %v2195_v51 = vpop.xlane.xlu1 %2194  ;;  %v2085_v52 = vpop.xlane.xlu0 %2084 }
0x11d4   :  { %v2196_v54 = vsub.f32 %v2187_v6, %v2195_v51  ;;  %v2086_v55 = vsub.f32 %v2077_v5, %v2085_v52 }
0x11d6   :  { %v2197_v56 = vmul.f32 1.442695, %v2196_v54  ;;  %v2087_v58 = vmul.f32 1.442695, %v2086_v55 }
0x11d8   :  { %4604 = vpow2.f32 %v2197_v56 }
0x11d9   :  { %4606 = vpow2.f32 %v2087_v58 }
0x11db   :  { %v2311_v59 = vpop.xlane.xlu0 %2310 }
0x11dc   :  { %v2312_v60 = vsub.f32 %v2303_v14, %v2311_v59  ;;  %v2560_v14 = vshrl.u32 %v5221_v35, 16 }
0x11de   :  { %v2313_v63 = vmul.f32 1.442695, %v2312_v60  ;;  %v2562_v17 = vrot.slane %v2560_v14, 2 }
0x11e0   :  { %4608 = vpow2.f32 %v2313_v63 }
0x11e3   :  { %v2426_v0 = vpop.xlane.xlu0 %2425 }
0x11e4   :  { %v2427_v61 = vsub.f32 %v2418_v19, %v2426_v0  ;;  %v5314_v19 = vor.u32 %v2565_v18, %v2562_v17 }
0x11e5   :  { %v5295_v2 = vpop.eup %4604 }
0x11e6   :  { %v4607_v3 = vpop.eup %4606  ;;  %v2428_v4 = vmul.f32 1.442695, %v2427_v61  ;;  %v2199_v7 = vsel %vm533_vm9, %v5295_v2, 0.0 }
0x11e7   :  { %2200 = vadd.xlane.f32.xlu1 %v2199_v7  ;;  %v2089_v5 = vsel %vm533_vm9, %v4607_v3, 0.0 }
0x11e8   :  { %4610 = vpow2.f32 %v2428_v4  ;;  %2090 = vadd.xlane.f32.xlu0 %v2089_v5  ;;  %v2571_v4 = vand.u32 %v5314_v19, %v4974_v62 }
0x11eb   :  { %v2548_v6 = vpop.xlane.xlu0 %2547 }
0x11ec   :  { %v2549_v8 = vsub.f32 %v2540_v24, %v2548_v6 }
0x11ed   :  { %v5300_v49 = vpop.eup %4608 }
0x11ee   :  { %v2550_v9 = vmul.f32 1.442695, %v2549_v8  ;;  %v2315_v10 = vsel %vm533_vm9, %v5300_v49, 0.0 }
0x11ef   :  { %2316 = vadd.xlane.f32.xlu0 %v2315_v10 }
0x11f0   :  { %4612 = vpow2.f32 %v2550_v9 }
0x11f3   :  { %v2666_v23 = vpop.xlane.xlu1 %2665 }
0x11f4   :  { %v2667_v35 = vsub.f32 %v5285_v29, %v2666_v23 }
0x11f5   :  { %v5304_v11 = vpop.eup %4610 }
0x11f6   :  { %v2430_v12 = vsel %vm533_vm9, %v5304_v11, 0.0  ;;  %v2668_v25 = vmul.f32 1.442695, %v2667_v35 }
0x11f7   :  { %2431 = vadd.xlane.f32.xlu1 %v2430_v12 }
0x11fb   :  { %v2781_v20 = vpop.xlane.xlu0 %2780 }
0x11fc   :  { %v2782_v21 = vsub.f32 %v2773_v41, %v2781_v20 }
0x11fd   :  { %v5308_v13 = vpop.eup %4612 }
0x11fe   :  { %v2552_v16 = vsel %vm533_vm9, %v5308_v13, 0.0  ;;  %v2783_v22 = vmul.f32 1.442695, %v2782_v21 }
0x11ff   :  { %2553 = vadd.xlane.f32.xlu0 %v2552_v16  ;;  %v2322_v40 = vpop.permute.xlu0 %2321 }
0x1200   :  { %4614 = vpow2.f32 %v2783_v22  ;;  %v2327_v56 = vand.u32 %v2322_v40, %v4974_v62 }
0x1201   :  { %4616 = vpow2.f32 %v2668_v25 }
0x1203   :  { %v2896_v24 = vpop.xlane.xlu1 %2895 }
0x1204   :  { %v2897_v26 = vsub.f32 %v2888_v57, %v2896_v24 }
0x1206   :  { %v2898_v27 = vmul.f32 1.442695, %v2897_v26 }
0x1207   :  { %v2207_v41 = vpop.permute.xlu1 %2206 }
0x1208   :  { %2676 = vrot.lane.b32.xlu1 %v5314_v19, %s4715_s5  ;;  %4618 = vpow2.f32 %v2898_v27  ;;  %v2212_v48 = vand.u32 %v2207_v41, %v4974_v62 }
0x120d   :  { %v5321_v28 = vpop.eup %4614 }
0x120e   :  { %v2785_v30 = vsel %vm533_vm9, %v5321_v28, 0.0  ;;  %v5325_v32 = vpop.eup %4616 }
0x1215   :  { %2436 = vrot.lane.b32.xlu0 %v5239_v46, %s4717_s13  ;;  %v2670_v46 = vsel %vm533_vm9, %v5325_v32, 0.0  ;;  %v5329_v36 = vpop.eup %4618 }
0x1216   :  { %v2900_v29 = vsel %vm533_vm9, %v5329_v36, 0.0 }
0x122c   :  { %2786 = vadd.xlane.f32.xlu1 %v2785_v30 }
0x1234   :  { %2671 = vadd.xlane.f32.xlu0 %v2670_v46 }
0x1238   :  { %2901 = vadd.xlane.f32.xlu0 %v2900_v29 }
0x123d   :  { %2906 = vrot.lane.b32.xlu1 %v5314_v19, %s4717_s13 }
0x124e   :  { %2791 = vrot.lane.b32.xlu0 %v5314_v19, %s4716_s9 }
0x1270   :  { %v2201_v53 = vpop.xlane.xlu1 %2200 }
0x1271   :  { %v2091_v42 = vpop.xlane.xlu0 %2090 }
0x1272   :  { %4620 = vrcp.f32 %v2091_v42 }
0x1273   :  { %4622 = vrcp.f32 %v2201_v53 }
0x1278   :  { %v2317_v45 = vpop.xlane.xlu0 %2316 }
0x1279   :  { %4624 = vrcp.f32 %v2317_v45 }
0x127f   :  { %v4621_v38 = vpop.eup %4620 }
0x1280   :  { %v2093_v57 = vmul.f32 %v4621_v38, %v4607_v3  ;;  %v4623_v47 = vpop.eup %4622  ;;  %v2432_v50 = vpop.xlane.xlu1 %2431 }
0x1281   :  { %4626 = vrcp.f32 %v2432_v50  ;;  %v2203_v51 = vmul.f32 %v4623_v47, %v5295_v2  ;;  %v4511_v47 = vld [vmem:[%s4781_s19 + $0x30] sm:$0xff]  }
0x1282   :  { %v2094_v43 = vpack.c.bf16 %v2093_v57, %v2093_v57 }
0x1283   :  { %v2204_v54 = vpack.c.bf16 %v2203_v51, %v2203_v51 }
0x1284   :  { %4273 = vmatmul.mubr.msk.bf16.vlgmr.msra.gmra.mxu1 %vm547_vm10, %v2094_v43  ;;  %v2677_v5 = vpop.permute.xlu1 %2676  ;;  %v4510_v43 = vld [vmem:[%s4781_s19 + $0x38] sm:$0xff]  }
0x1285   :  { %4283 = vmatpush3.bf16.msra.mxu1 %v2212_v48  ;;  %4284 = vmatprep.mubr.msk.bf16.mxu1 %vm4713_vm5, %v4712_v33  ;;  %v2682_v8 = vand.u32 %v2677_v5, %v4974_v62 }
0x1286   :  { %4294 = vmatprep.subr.bf16.mxu1 %v4712_v33  ;;  %v4625_v55 = vpop.eup %4624  ;;  %4361 = vmatpush3.bf16.msra.mxu0 %v4510_v43 }
0x1287   :  { %v2319_v58 = vmul.f32 %v4625_v55, %v5300_v49  ;;  %4362 = vmatprep.subr.bf16.mxu0 %v4712_v33  ;;  %v4513_v55 = vld [vmem:[%s4781_s19 + $0x20] sm:$0xff]  }
0x1288   :  { %v2554_v52 = vpop.xlane.xlu0 %2553 }
0x1289   :  { %4628 = vrcp.f32 %v2554_v52  ;;  %v2320_v60 = vpack.c.bf16 %v2319_v58, %v2319_v58  ;;  %v4512_v52 = vld [vmem:[%s4781_s19 + $0x28] sm:$0xff]   ;;  %s5516_s19 = sld [smem:[#allocation17_spill]] }
0x128a   :  { %4363 = vmatpush3.bf16.msra.mxu0 %v4511_v47 }
0x128b   :  { %4364 = vmatprep.subr.bf16.mxu0 %v4712_v33 }
0x128c   :  { %4285 = vmatmul.mubr.msk.bf16.vlgmr.msra.gmra.mxu1 %vm547_vm10, %v2204_v54  ;;  %v2437_v59 = vpop.permute.xlu0 %2436 }
0x128d   :  { %4295 = vmatpush3.bf16.msra.mxu1 %v2327_v56  ;;  %4296 = vmatprep.mubr.msk.bf16.mxu1 %vm4713_vm5, %v4712_v33  ;;  %v2442_v0 = vand.u32 %v2437_v59, %v4974_v62 }
0x128e   :  { %4306 = vmatprep.subr.bf16.mxu1 %v4712_v33  ;;  %v4627_v63 = vpop.eup %4626  ;;  %4365 = vmatpush3.bf16.msra.mxu0 %v4512_v52 }
0x128f   :  { %v2434_v61 = vmul.f32 %v4627_v63, %v5304_v11  ;;  %4366 = vmatprep.subr.bf16.mxu0 %v4712_v33 }
0x1291   :  { %v2435_v2 = vpack.c.bf16 %v2434_v61, %v2434_v61 }
0x1292   :  { %4367 = vmatpush3.bf16.msra.mxu0 %v4513_v55 }
0x1294   :  { %4297 = vmatmul.mubr.msk.bf16.vlgmr.msra.gmra.mxu1 %vm547_vm10, %v2320_v60 }
0x1295   :  { %4307 = vmatpush3.bf16.msra.mxu1 %v2442_v0  ;;  %4308 = vmatprep.mubr.msk.bf16.mxu1 %vm4713_vm5, %v4712_v33 }
0x1296   :  { %4318 = vmatprep.subr.bf16.mxu1 %v4712_v33  ;;  %v4629_v3 = vpop.eup %4628 }
0x1297   :  { %v2556_v7 = vmul.f32 %v4629_v3, %v5308_v13 }
0x1299   :  { %v2557_v6 = vpack.c.bf16 %v2556_v7, %v2556_v7 }
0x129c   :  { %4309 = vmatmul.mubr.msk.bf16.vlgmr.msra.gmra.mxu1 %vm547_vm10, %v2435_v2 }
0x129d   :  { %4319 = vmatpush3.bf16.msra.mxu1 %v2571_v4  ;;  %4320 = vmatprep.mubr.msk.bf16.mxu1 %vm4713_vm5, %v4712_v33 }
0x129e   :  { %4330 = vmatprep.subr.bf16.mxu1 %v4712_v33 }
0x12a4   :  { %4321 = vmatmul.mubr.msk.bf16.vlgmr.msra.gmra.mxu1 %vm547_vm10, %v2557_v6 }
0x12a5   :  { %4331 = vmatpush3.bf16.msra.mxu1 %v2682_v8  ;;  %4332 = vmatprep.mubr.msk.bf16.mxu1 %vm4713_vm5, %v4712_v33 }
0x12a6   :  { %4342 = vmatprep.subr.bf16.mxu1 %v4712_v33 }
0x12b5   :  { %v2787_v9 = vpop.xlane.xlu1 %2786 }
0x12b9   :  { %v2907_v18 = vpop.permute.xlu1 %2906 }
0x12ba   :  { %v2912_v21 = vand.u32 %v2907_v18, %v4974_v62 }
0x12bd   :  { %v2672_v49 = vpop.xlane.xlu0 %2671 }
0x12be   :  { %4630 = vrcp.f32 %v2672_v49 }
0x12bf   :  { %4632 = vrcp.f32 %v2787_v9 }
0x12c1   :  { %v2902_v10 = vpop.xlane.xlu0 %2901 }
0x12c2   :  { %4634 = vrcp.f32 %v2902_v10 }
0x12c5   :  { %v2792_v12 = vpop.permute.xlu0 %2791 }
0x12c6   :  { %v2797_v16 = vand.u32 %v2792_v12, %v4974_v62  ;;  %v3936_v12 = vld [vmem:[%s4786_s24 + $0x1] ss:$0 sm:$0xff]  ;;  %s5517_s24 = sld [smem:[#allocation15_spill]] }
0x12cb   :  { %v4631_v11 = vpop.eup %4630 }
0x12cc   :  { %v2674_v13 = vmul.f32 %v4631_v11, %v5325_v32  ;;  %v4633_v15 = vpop.eup %4632 }
0x12cd   :  { %v2789_v17 = vmul.f32 %v4633_v15, %v5321_v28 }
0x12ce   :  { %v2675_v14 = vpack.c.bf16 %v2674_v13, %v2674_v13 }
0x12cf   :  { %v2790_v19 = vpack.c.bf16 %v2789_v17, %v2789_v17  ;;  %v4635_v20 = vpop.eup %4634 }
0x12d0   :  { %4333 = vmatmul.mubr.msk.bf16.vlgmr.msra.gmra.mxu1 %vm547_vm10, %v2675_v14  ;;  %v2904_v22 = vmul.f32 %v4635_v20, %v5329_v36 }
0x12d1   :  { %4343 = vmatpush3.bf16.msra.mxu1 %v2797_v16  ;;  %4344 = vmatprep.mubr.msk.bf16.mxu1 %vm4713_vm5, %v4712_v33 }
0x12d2   :  { %4354 = vmatprep.subr.bf16.mxu1 %v4712_v33  ;;  %v2905_v23 = vpack.c.bf16 %v2904_v22, %v2904_v22 }
0x12d8   :  { %4345 = vmatmul.mubr.msk.bf16.vlgmr.msra.gmra.mxu1 %vm547_vm10, %v2790_v19 }
0x12d9   :  { %4355 = vmatpush3.bf16.msra.mxu1 %v2912_v21  ;;  %4356 = vmatprep.mubr.msk.bf16.mxu1 %vm4713_vm5, %v4712_v33 }
0x12e0   :  { %4357 = vmatmul.mubr.msk.bf16.vlgmr.msra.gmra.mxu1 %vm547_vm10, %v2905_v23 }
0x12e1   :  { %3195 = vmatprep.mubr.bf16.mxu1 %v4711_v1 }
0x1344   :  { %v2136_v35 = vpop.f32.mrf.mxu1 }
0x1345   :  { %2142 = vst.msk [vmem:[#allocation2] sm:$0x1f] %vm598_vm11, %v2136_v35 }
0x1346   :  { %v4274_v24 = vpop.f32.mrf.mxu1 }
0x1348   :  { %v2139_v25 = vpop.f32.mrf.mxu1 }
0x134a   :  { %v4275_v26 = vpop.f32.mrf.mxu1 }
0x134c   :  { %v2248_v62 = vpop.f32.mrf.mxu1 }
0x134d   :  { %2255 = vrot.lane.b32.xlu1 %v2248_v62, %s4720_s25 }
0x134e   :  { %v4286_v27 = vpop.f32.mrf.mxu1 }
0x1350   :  { %v2251_v28 = vpop.f32.mrf.mxu1 }
0x1351   :  { %v4516_v28 = vld [vmem:[%s4801_s12 + $0x74] ss:$8 sps:$4 sm:$0xff]  }
0x1352   :  { %v4287_v30 = vpop.f32.mrf.mxu1  ;;  %3171 = vmatprep.subr.bf16.mxu1 %v4516_v28 }
0x1353   :  { %v4514_v30 = vld [vmem:[%s4801_s12 + $0x70] ss:$8 sps:$4 sm:$0xff]  }
0x1354   :  { %v2363_v32 = vpop.f32.mrf.mxu1  ;;  %3172 = vmatpush1.bf16.msra.mxu1 %v4514_v30 }
0x1355   :  { %2370 = vrot.lane.b32.xlu1 %v2363_v32, %s4719_s21  ;;  %v4519_v32 = vld [vmem:[%s4801_s12 + $0x64] ss:$8 sps:$4 sm:$0xff]  }
0x1356   :  { %v4298_v46 = vpop.f32.mrf.mxu1  ;;  %3173 = vmatprep.subr.bf16.mxu1 %v4519_v32 }
0x1357   :  { %v4517_v46 = vld [vmem:[%s4801_s12 + $0x60] ss:$8 sps:$4 sm:$0xff]  }
0x1358   :  { %v2366_v36 = vpop.f32.mrf.mxu1  ;;  %3174 = vmatpush1.bf16.msra.mxu1 %v4517_v46 }
0x1359   :  { %v4520_v36 = vld [vmem:[%s4801_s12 + $0x50] ss:$8 sps:$4 sm:$0xff]  }
0x135a   :  { %v4299_v1 = vpop.f32.mrf.mxu1 }
0x135b   :  { %v4522_v1 = vld [vmem:[%s4801_s12 + $0x54] ss:$8 sps:$4 sm:$0xff]  }
0x135c   :  { %v2478_v29 = vpop.f32.mrf.mxu1  ;;  %3175 = vmatprep.subr.bf16.mxu1 %v4522_v1 }
0x135d   :  { %2485 = vrot.lane.b32.xlu0 %v2478_v29, %s4718_s17  ;;  %v4525_v29 = vld [vmem:[%s4801_s12 + $0x44] ss:$8 sps:$4 sm:$0xff]   ;;  %3176 = vmatpush1.bf16.msra.mxu1 %v4520_v36 }
0x135e   :  { %v4310_v40 = vpop.f32.mrf.mxu1  ;;  %3177 = vmatprep.subr.bf16.mxu1 %v4525_v29 }
0x135f   :  { %v4523_v40 = vld [vmem:[%s4801_s12 + $0x40] ss:$8 sps:$4 sm:$0xff]   ;;  %s5519_s12 = sld [smem:[#allocation18_spill]] }
0x1360   :  { %v2481_v41 = vpop.f32.mrf.mxu1 }
0x1361   :  { %3178 = vmatpush1.bf16.msra.mxu1 %v4523_v40 }
0x1362   :  { %v4311_v42 = vpop.f32.mrf.mxu1  ;;  %4372 = vmatprep.subr.bf16.mxu1 %v4712_v33 }
0x1364   :  { %v2607_v53 = vpop.f32.mrf.mxu1 }
0x1365   :  { %2613 = vst.msk [vmem:[#allocation2 + $0x5] sm:$0x1f] %vm598_vm11, %v2607_v53 }
0x1366   :  { %v4322_v45 = vpop.f32.mrf.mxu1 }
0x1368   :  { %v2610_v38 = vpop.f32.mrf.mxu1 }
0x136a   :  { %v4323_v57 = vpop.f32.mrf.mxu1 }
0x1390   :  { %v2718_v48 = vpop.f32.mrf.mxu1 }
0x1391   :  { %2725 = vrot.lane.b32.xlu1 %v2718_v48, %s4720_s25  ;;  %v3939_v48 = vld [vmem:[%s4791_s30 + $0x1] ss:$0 sm:$0xff]  ;;  %s5518_s30 = sld [smem:[#allocation16_spill]] }
0x1392   :  { %v4334_v50 = vpop.f32.mrf.mxu1 }
0x1394   :  { %v2721_v51 = vpop.f32.mrf.mxu1 }
0x1396   :  { %v4335_v54 = vpop.f32.mrf.mxu1 }
0x1397   :  { %v3940_v54 = vld [vmem:[%s5508_s7 + $0x1] ss:$0 sm:$0xff] }
0x1398   :  { %v2833_v56 = vpop.f32.mrf.mxu1 }
0x1399   :  { %2840 = vrot.lane.b32.xlu1 %v2833_v56, %s4719_s21 }
0x139a   :  { %v4346_v58 = vpop.f32.mrf.mxu1 }
0x139c   :  { %v2836_v59 = vpop.f32.mrf.mxu1 }
0x139e   :  { %v4347_v60 = vpop.f32.mrf.mxu1 }
0x139f   :  { %v4526_v60 = vld [vmem:[%s5509_s10 + $0xf8] sm:$0xff]  }
0x13a0   :  { %v2948_v63 = vpop.f32.mrf.mxu1  ;;  %4123 = vmatprep.subr.bf16.mxu0 %v4526_v60 }
0x13a1   :  { %2955 = vrot.lane.b32.xlu1 %v2948_v63, %s4718_s17  ;;  %v4527_v63 = vld [vmem:[%s5509_s10 + $0xb8] sm:$0xff]  }
0x13a2   :  { %v4358_v0 = vpop.f32.mrf.mxu1 }
0x13a3   :  { %v4528_v0 = vld [vmem:[%s5509_s10 + $0xf0] sm:$0xff]  }
0x13a4   :  { %v2951_v61 = vpop.f32.mrf.mxu1 }
0x13a5   :  { %v4529_v61 = vld [vmem:[%s5509_s10 + $0xb0] sm:$0xff]  }
0x13a6   :  { %v4359_v2 = vpop.f32.mrf.mxu1 }
0x13a7   :  { %v4530_v2 = vld [vmem:[%s5509_s10 + $0xe8] sm:$0xff]  }
0x13bf   :  { %v2256_v3 = vpop.permute.xlu1 %2255 }
0x13c0   :  { %2258 = vst.msk [vmem:[#allocation2] sm:$0x1f] %vm715_vm12, %v2256_v3  ;;  %v4531_v3 = vld [vmem:[%s5509_s10 + $0xa8] sm:$0xff]  }
0x13c7   :  { %v2371_v4 = vpop.permute.xlu1 %2370 }
0x13c8   :  { %2373 = vst.msk [vmem:[#allocation2] sm:$0x1f] %vm831_vm13, %v2371_v4  ;;  %v4532_v4 = vld [vmem:[%s5509_s10 + $0xe0] sm:$0xff]  }
0x13cf   :  { %v2486_v7 = vpop.permute.xlu0 %2485 }
0x13d0   :  { %2488 = vst.msk [vmem:[#allocation2] sm:$0x1f] %vm947_vm14, %v2486_v7  ;;  %v4533_v7 = vld [vmem:[%s5509_s10 + $0xa0] sm:$0xff]  }
0x1403   :  { %v2726_v5 = vpop.permute.xlu1 %2725 }
0x1404   :  { %2728 = vst.msk [vmem:[#allocation2 + $0x5] sm:$0x1f] %vm715_vm12, %v2726_v5  ;;  %v4534_v5 = vld [vmem:[%s5509_s10 + $0xd8] sm:$0xff]  }
0x140b   :  { %v2841_v6 = vpop.permute.xlu1 %2840 }
0x140c   :  { %2843 = vst.msk [vmem:[#allocation2 + $0x5] sm:$0x1f] %vm831_vm13, %v2841_v6  ;;  %v4535_v6 = vld [vmem:[%s5509_s10 + $0x98] sm:$0xff]  }
0x1413   :  { %v2956_v8 = vpop.permute.xlu1 %2955 }
0x1414   :  { %2958 = vst.msk [vmem:[#allocation2 + $0x5] sm:$0x1f] %vm947_vm14, %v2956_v8  ;;  %v4536_v8 = vld [vmem:[%s5509_s10 + $0xd0] sm:$0xff]  }
0x141b   :  { %v2959_v49 = vld [vmem:[#allocation2] sm:$0xff]  ;;  %v2960_v9 = vld [vmem:[#allocation2 + $0x8] sm:$0x3] }
0x141c   :  { %v2961_v10 = vpack.c.bf16 %v2960_v9, %v2959_v49  ;;  %v4537_v49 = vld [vmem:[%s5509_s10 + $0x90] sm:$0xff]   ;;  %v4538_v9 = vld [vmem:[%s5509_s10 + $0xc8] sm:$0xff]  }
0x141e   :  { %4369 = vmatmul.mubr.msk.bf16.vlgmr.msra.gmra.mxu0 %vm224_vm0, %v2961_v10  ;;  %v4539_v10 = vld [vmem:[%s5509_s10 + $0x88] sm:$0xff]  }
0x141f   :  { %4124 = vmatpush3.bf16.msra.mxu0 %v4527_v63 }
0x1420   :  { %4125 = vmatprep.subr.bf16.mxu0 %v4528_v0 }
0x1423   :  { %4126 = vmatpush3.bf16.msra.mxu0 %v4529_v61 }
0x1424   :  { %4127 = vmatprep.subr.bf16.mxu0 %v4530_v2 }
0x1427   :  { %4128 = vmatpush3.bf16.msra.mxu0 %v4531_v3 }
0x1428   :  { %4129 = vmatprep.subr.bf16.mxu0 %v4532_v4 }
0x142b   :  { %4130 = vmatpush3.bf16.msra.mxu0 %v4533_v7 }
0x142c   :  { %4131 = vmatprep.subr.bf16.mxu0 %v4534_v5  ;;  %v4008_v5 = vld [vmem:[%s5511_s15 + $0x1] ss:$0 sm:$0xff] }
0x142f   :  { %4132 = vmatpush3.bf16.msra.mxu0 %v4535_v6 }
0x1430   :  { %4133 = vmatprep.subr.bf16.mxu0 %v4536_v8 }
0x1433   :  { %4134 = vmatpush3.bf16.msra.mxu0 %v4537_v49 }
0x1434   :  { %4135 = vmatprep.subr.bf16.mxu0 %v4538_v9 }
0x1437   :  { %4136 = vmatpush3.bf16.msra.mxu0 %v4539_v10 }
0x14de   :  { %v3032_v11 = vpop.f32.mrf.mxu0 }
0x14df   :  { %v3039_v13 = vadd.f32 %v3032_v11, %v5189_v39  ;;  %v4540_v11 = vld [vmem:[%s5509_s10 + $0xc0] sm:$0xff]  }
0x14e0   :  { %v4370_v14 = vpop.f32.mrf.mxu0  ;;  %4137 = vmatprep.subr.bf16.mxu0 %v4540_v11 }
0x14e1   :  { %v5405_v15 = vadd.f32 %v3936_v12, %v3039_v13  ;;  %v3949_v13 = vld [vmem:[%s5510_s11 + $0x2] sm:$0x3] }
0x14e2   :  { %v3035_v16 = vpop.f32.mrf.mxu0  ;;  %v3113_v14 = vrot.slane %v3949_v13, %v4945_v34 }
0x14e3   :  { %v3040_v17 = vadd.f32 %v3035_v16, %v5194_v44  ;;  %v3055_v18 = vsel %vm224_vm0, %v5405_v15, 0.0  ;;  %v3117_v16 = vrot.slane %v3949_v13, %v4953_v37 }
0x14e4   :  { %3056 = vadd.xlane.f32.xlu0 %v3055_v18  ;;  %v4371_v19 = vpop.f32.mrf.mxu0 }
0x14e5   :  { %v3050_v20 = vadd.f32 %v3936_v12, %v3040_v17  ;;  %v4541_v12 = vld [vmem:[%s5509_s10 + $0x80] sm:$0xff]  }
0x14e6   :  { %4138 = vmatpush3.bf16.msra.mxu0 %v4541_v12 }
0x14e7   :  { %v3058_v21 = vsel %vm290_vm4, %v3050_v20, 0.0 }
0x14e8   :  { %3059 = vadd.xlane.f32.xlu1 %v3058_v21 }
0x156d   :  { %v3057_v22 = vpop.xlane.xlu0 %3056 }
0x156e   :  { %v3061_v39 = vmul.f32 0.015625, %v3057_v22 }
0x1570   :  { %v3063_v23 = vsub.f32 %v5405_v15, %v3061_v39 }
0x1571   :  { %v3060_v35 = vpop.xlane.xlu1 %3059 }
0x1572   :  { %v3062_v24 = vmul.f32 0.015625, %v3060_v35  ;;  %v3065_v44 = vmul.f32 %v3063_v23, %v3063_v23 }
0x1574   :  { %v3064_v25 = vsub.f32 %v3050_v20, %v3062_v24  ;;  %v3067_v26 = vsel %vm224_vm0, %v3065_v44, 0.0 }
0x1575   :  { %3068 = vadd.xlane.f32.xlu0 %v3067_v26 }
0x1576   :  { %v3066_v62 = vmul.f32 %v3064_v25, %v3064_v25 }
0x1578   :  { %v3070_v27 = vsel %vm290_vm4, %v3066_v62, 0.0 }
0x1579   :  { %3071 = vadd.xlane.f32.xlu0 %v3070_v27 }
0x15fe   :  { %v3069_v41 = vpop.xlane.xlu0 %3068 }
0x15ff   :  { %v3073_v42 = vmul.f32 0.015625, %v3069_v41 }
0x1601   :  { %v3075_v53 = vadd.f32 1e-05, %v3073_v42 }
0x1602   :  { %v3072_v45 = vpop.xlane.xlu0 %3071 }
0x1603   :  { %4636 = vrsqrt.f32 %v3075_v53  ;;  %v3074_v38 = vmul.f32 0.015625, %v3072_v45 }
0x1605   :  { %v3076_v57 = vadd.f32 1e-05, %v3074_v38 }
0x1607   :  { %4638 = vrsqrt.f32 %v3076_v57 }
0x1610   :  { %v4637_v43 = vpop.eup %4636 }
0x1611   :  { %v3079_v47 = vmul.f32 %v4637_v43, %v3063_v23 }
0x1613   :  { %v3087_v52 = vmul.f32 %v3939_v48, %v3079_v47 }
0x1614   :  { %v4639_v50 = vpop.eup %4638 }
0x1615   :  { %v3080_v51 = vmul.f32 %v4639_v50, %v3064_v25  ;;  %v3095_v56 = vadd.f32 %v3940_v54, %v3087_v52 }
0x1617   :  { %v3088_v55 = vmul.f32 %v3939_v48, %v3080_v51 }
0x1619   :  { %v3096_v58 = vadd.f32 %v3940_v54, %v3088_v55 }
0x161b   :  { %v3097_v59 = vpack.c.bf16 %v3096_v58, %v3095_v56 }
0x161d   :  { %3958 = vmatmul.mubr.msk.bf16.vlgmr.msra.gmra.mxu1 %vm224_vm0, %v3097_v59 }
0x161e   :  { %4380 = vmatprep.mubr.msk.bf16.mxu1 %vm4713_vm5, %v4712_v33 }
0x16dd   :  { %v3197_v17 = vpop.f32.mrf.mxu1 }
0x16de   :  { %v3198_v18 = vadd.f32 %v3197_v17, %v3113_v14 }
0x16df   :  { %v3199_v19 = vpop.f32.mrf.mxu1 }
0x16e0   :  { %v3206_v20 = vmul.f32 %v3198_v18, %v3198_v18  ;;  %v3200_v21 = vadd.f32 %v3199_v19, %v3117_v16  ;;  %v4544_v19 = vld [vmem:[%s5512_s29 + $0x8] sm:$0xff]  }
0x16e1   :  { %v3201_v22 = vpop.f32.mrf.mxu1 }
0x16e2   :  { %v3210_v39 = vmul.f32 %v3206_v20, %v3198_v18  ;;  %v3207_v23 = vmul.f32 %v3200_v21, %v3200_v21  ;;  %v3202_v35 = vadd.f32 %v3201_v22, %v3113_v14  ;;  %v4545_v20 = vld [vmem:[%s5512_s29] sm:$0xff]  }
0x16e3   :  { %v3203_v24 = vpop.f32.mrf.mxu1 }
0x16e4   :  { %v3214_v44 = vmul.f32 0.044715, %v3210_v39  ;;  %v3211_v25 = vmul.f32 %v3207_v23, %v3200_v21  ;;  %v3208_v26 = vmul.f32 %v3202_v35, %v3202_v35  ;;  %v3204_v62 = vadd.f32 %v3203_v24, %v3117_v16 }
0x16e6   :  { %v3218_v27 = vadd.f32 %v3214_v44, %v3198_v18  ;;  %v3215_v28 = vmul.f32 0.044715, %v3211_v25  ;;  %v3212_v30 = vmul.f32 %v3208_v26, %v3202_v35  ;;  %v3209_v32 = vmul.f32 %v3204_v62, %v3204_v62  ;;  %v4010_v44 = vld [vmem:[%s5514_s8] ss:$0 sm:$0xff] }
0x16e8   :  { %v3222_v46 = vmul.f32 0.7978846, %v3218_v27  ;;  %v3219_v37 = vadd.f32 %v3215_v28, %v3200_v21  ;;  %v3216_v36 = vmul.f32 0.044715, %v3212_v30  ;;  %v3213_v1 = vmul.f32 %v3209_v32, %v3204_v62  ;;  %v4547_v28 = vld [vmem:[%s5515_s14] sm:$0xff]  }
0x16ea   :  { %v3223_v29 = vmul.f32 0.7978846, %v3219_v37  ;;  %v3220_v40 = vadd.f32 %v3216_v36, %v3202_v35  ;;  %v3217_v41 = vmul.f32 0.044715, %v3213_v1  ;;  %4640 = vtanh.f32 %v3222_v46  ;;  %v3643_v1 = vld [vmem:[%s4866_s20 + $0x8] sm:$0xff] }
0x16ec   :  { %4642 = vtanh.f32 %v3223_v29  ;;  %v3224_v42 = vmul.f32 0.7978846, %v3220_v40  ;;  %v3221_v53 = vadd.f32 %v3217_v41, %v3204_v62  ;;  %v3645_v29 = vmul.f32 %v3643_v1, %v3643_v1  ;;  %v3642_v40 = vld [vmem:[%s4866_s20] sm:$0xff] }
0x16ee   :  { %4644 = vtanh.f32 %v3224_v42  ;;  %v3225_v45 = vmul.f32 0.7978846, %v3221_v53  ;;  %v3644_v42 = vmul.f32 %v3642_v40, %v3642_v40 }
0x16f0   :  { %4646 = vtanh.f32 %v3225_v45  ;;  %v3608_v45 = vld [vmem:[%s5516_s19] sm:$0x1] }
0x16f7   :  { %v4641_v38 = vpop.eup %4640 }
0x16f8   :  { %v3230_v48 = vadd.f32 1.0, %v4641_v38  ;;  %v3609_v38 = vadd.f32 1e-05, %v3608_v45 }
0x16f9   :  { %v4643_v57 = vpop.eup %4642 }
0x16fa   :  { %v3231_v43 = vadd.f32 1.0, %v4643_v57  ;;  %v3234_v56 = vmul.f32 0.5, %v3230_v48  ;;  %v4020_v48 = vld [vmem:[%s5518_s30] ss:$0 sm:$0xff] }
0x16fb   :  { %v4645_v47 = vpop.eup %4644 }
0x16fc   :  { %v3232_v50 = vadd.f32 1.0, %v4645_v47  ;;  %v3235_v55 = vmul.f32 0.5, %v3231_v43  ;;  %v3238_v0 = vmul.f32 %v3234_v56, %v3198_v18  ;;  %v4543_v18 = vld [vmem:[%s5512_s29 + $0x10] sm:$0xff]   ;;  %v4016_v43 = vld [vmem:[%s5517_s24] ss:$0 sm:$0xff] }
0x16fd   :  { %v4647_v51 = vpop.eup %4646 }
0x16fe   :  { %v3236_v52 = vmul.f32 0.5, %v3232_v50  ;;  %v3233_v54 = vadd.f32 1.0, %v4647_v51  ;;  %v3239_v60 = vmul.f32 %v3235_v55, %v3200_v21  ;;  %v4021_v55 = vld [vmem:[%s5519_s12] ss:$0 sm:$0xff] }
0x1700   :  { %v3237_v58 = vmul.f32 0.5, %v3233_v54  ;;  %v3240_v59 = vmul.f32 %v3236_v52, %v3202_v35  ;;  %v4009_v35 = vld [vmem:[%s5513_s3] ss:$0 sm:$0xff] }
0x1702   :  { %v3241_v63 = vmul.f32 %v3237_v58, %v3204_v62  ;;  %v3242_v2 = vpack.c.bf16 %v3240_v59, %v3238_v0  ;;  %v4546_v62 = vld [vmem:[%s5515_s14 + $0x8] sm:$0xff]  }
0x1704   :  { %v3243_v61 = vpack.c.bf16 %v3241_v63, %v3239_v60  ;;  %v4022_v60 = vld [vmem:[%s4861_s6] ss:$0 sm:$0xff]  ;;  %s4722_s6 = smov [#allocation4]  }
0x1705   :  { %s3771_s20 = sshll.u32 %s4722_s6, 4  ;;  %s3772_s20 = int_to_ptr.vmem [resolvable:$true] %s3771_s20 }
0x1706   :  { %3405 = vmatprep.mubr.bf16.mxu0 %v3243_v61  ;;  %p4665_p1 = scmp.lt.s32.totalorder %s3772_s20, %s3772_s20 }
0x1707   :  { %3406 = vmatmul.mubr.bf16.vlgmr.msra.gmra.mxu0 %v3242_v2 }
0x17c7   :  { %v4139_v3 = vpop.f32.mrf.mxu0 }
0x17c9   :  { %v4140_v4 = vpop.f32.mrf.mxu0 }
0x17ca   :  { %v4141_v7 = vadd.f32 %v4140_v4, %v4139_v3 }
0x17cb   :  { %v4142_v6 = vpop.f32.mrf.mxu0 }
0x17cc   :  { %v3413_v8 = vadd.f32 %v4141_v7, %v5405_v15  ;;  %v4542_v15 = vld [vmem:[%s5512_s29 + $0x18] sm:$0xff]  }
0x17cd   :  { %v4143_v49 = vpop.f32.mrf.mxu0  ;;  %4373 = vmatpush3.bf16.msra.mxu1 %v4542_v15 }
0x17ce   :  { %v3422_v9 = vadd.f32 %v4008_v5, %v3413_v8  ;;  %4374 = vmatprep.subr.bf16.mxu1 %v4712_v33 }
0x17d0   :  { %3423 = vst.msk [vmem:[#allocation3] sm:$0x1] %vm270_vm1, %v3422_v9  ;;  %vm3556_vm1 = vcmask 261120  }
0x17d1   :  { %3425 = vst.msk [vmem:[#allocation3 - $0x4] sm:$0x20] %vm3424_vm15, %v3422_v9  ;;  %4375 = vmatpush3.bf16.msra.mxu1 %v4543_v18  ;;  %v3649_v41 = vsel %vm3556_vm1, %v3645_v29, 0.0  ;;  %v3646_v53 = vsel %vm3556_vm1, %v3644_v42, 0.0  ;;  %v3756_v9 = vld [vmem:[%s4871_s27] sm:$0x3] }
0x17d2   :  { %4376 = vmatprep.subr.bf16.mxu1 %v4712_v33  ;;  %s4660_s27 = scalar_lea.vmem %s3772_s20, 32 }
0x17d3   :  { %p4661_p0 = scmp.ne.s32.totalorder %s3772_s20, %s4660_s27  ;;  %p4666_p2 = scmp.lt.s32.totalorder %s4660_s27, %s4660_s27 }
0x17d5   :  { %4377 = vmatpush3.bf16.msra.mxu1 %v4544_v19  ;;  %p4667_p3 = por %p4666_p2, %p4665_p1 }
0x17d6   :  { %4378 = vmatprep.subr.bf16.mxu1 %v4712_v33 }
0x17d7   :  { %p4668_p4 = pnand %p4667_p3, %p4661_p0 }
0x17d8   :  { %v3426_v10 = vld [vmem:[#allocation3] sm:$0x3] }
0x17d9   :  { %v3429_v11 = vsel %vm290_vm4, %v3426_v10, 0.0  ;;  %4379 = vmatpush3.bf16.msra.mxu1 %v4545_v20 }
0x17da   :  { %3430 = vadd.xlane.f32.xlu0 %v3429_v11  ;;  %4384 = vmatprep.subr.bf16.mxu1 %v4712_v33 }
0x17de   :  { %3650 = vadd.xlane.f32.xlu0 %v3649_v41 }
0x1863   :  { %v3431_v12 = vpop.xlane.xlu0 %3430 }
0x1864   :  { %v3432_v13 = vmul.f32 0.015625, %v3431_v12 }
0x1866   :  { %v3433_v14 = vsub.f32 %v3426_v10, %v3432_v13 }
0x1867   :  { %v3651_v3 = vpop.xlane.xlu0 %3650 }
0x1868   :  { %v3434_v16 = vmul.f32 %v3433_v14, %v3433_v14  ;;  %v3653_v4 = vadd.f32 1e-12, %v3651_v3 }
0x186a   :  { %v3435_v17 = vsel %vm290_vm4, %v3434_v16, 0.0 }
0x186b   :  { %3436 = vadd.xlane.f32.xlu1 %v3435_v17 }
0x186f   :  { %3647 = vadd.xlane.f32.xlu1 %v3646_v53 }
0x1880   :  { %3758 = vperm.xlu1 %4440, %v3756_v9  }
0x18f4   :  { %v3437_v21 = vpop.xlane.xlu1 %3436 }
0x18f5   :  { %v3438_v22 = vmul.f32 0.015625, %v3437_v21 }
0x18f7   :  { %v3439_v39 = vadd.f32 1e-05, %v3438_v22  ;;  %v3755_v22 = vand.u32 127, %v386_v31 }
0x18f8   :  { %v3648_v7 = vpop.xlane.xlu1 %3647 }
0x18f9   :  { %4648 = vrsqrt.f32 %v3439_v39  ;;  %v3652_v5 = vadd.f32 1e-12, %v3648_v7 }
0x18fa   :  { %4650 = vrsqrt.f32 %v3609_v38 }
0x18fb   :  { %4652 = vrsqrt.f32 %v3653_v4 }
0x18fc   :  { %4654 = vrsqrt.f32 %v3652_v5 }
0x1906   :  { %v4649_v23 = vpop.eup %4648 }
0x1907   :  { %v3441_v24 = vmul.f32 %v4649_v23, %v3433_v14  ;;  %v4651_v57 = vpop.eup %4650  ;;  %v3759_v23 = vpop.permute.xlu1 %3758 }
0x1908   :  { %v3615_v51 = vrot.slane %v4651_v57, %v4945_v34  ;;  %v4653_v34 = vpop.eup %4652  ;;  %vm3760_vm4 = vcmp.eq.s32.totalorder %v3755_v22, %v3759_v23 }
0x1909   :  { %v3448_v25 = vmul.f32 %v4009_v35, %v3441_v24  ;;  %v3657_v6 = vmul.f32 %v4653_v34, %v3643_v1  ;;  %v4655_v8 = vpop.eup %4654 }
0x190a   :  { %v3656_v49 = vmul.f32 %v4655_v8, %v3642_v40 }
0x190b   :  { %v3455_v26 = vadd.f32 %v4010_v44, %v3448_v25 }
0x190d   :  { %v3456_v27 = vpack.c.bf16 %v3455_v26, %v3455_v26 }
0x190f   :  { %4381 = vmatmul.mubr.msk.bf16.vlgmr.msra.gmra.mxu1 %vm224_vm0, %v3456_v27  ;;  %vm3635_vm0 = vcmask 254976  }
0x1910   :  { %4385 = vmatpush3.bf16.msra.mxu1 %v4546_v62  ;;  %4388 = vmatprep.mubr.msk.bf16.mxu1 %vm4713_vm5, %v4712_v33 }
0x1911   :  { %4386 = vmatprep.subr.bf16.mxu1 %v4712_v33 }
0x1914   :  { %4387 = vmatpush3.bf16.msra.mxu1 %v4547_v28 }
0x1915   :  { %4392 = vmatprep.subr.mxu1 %v4712_v33 }
0x19cf   :  { %v3526_v30 = vpop.f32.mrf.mxu1 }
0x19d0   :  { %v3532_v32 = vpack.c.bf16 %v3526_v30, %v3526_v30 }
0x19d1   :  { %v4382_v46 = vpop.f32.mrf.mxu1 }
0x19d2   :  { %4389 = vmatmul.mubr.msk.bf16.vlgmr.msra.gmra.mxu1 %vm3556_vm1, %v3532_v32 }
0x19d3   :  { %v3529_v37 = vpop.f32.mrf.mxu1  ;;  %4396 = vmatprep.mubr.msk.f32.mxu1 %vm4713_vm5, %v4712_v33  ;;  %4393 = vmatpush3.xpose.msk.msra.mxu1 %vm3556_vm1, %v3657_v6 }
0x19d4   :  { %4394 = vmatprep.subr.mxu1 %v4712_v33 }
0x19d5   :  { %v4383_v36 = vpop.f32.mrf.mxu1 }
0x19d7   :  { %4395 = vmatpush3.xpose.msk.msra.mxu1 %vm3556_vm1, %v3656_v49 }
0x1a92   :  { %v3594_v47 = vpop.f32.mrf.mxu1 }
0x1a93   :  { %v3595_v50 = vadd.f32 %v4016_v43, %v3594_v47 }
0x1a94   :  { %v4390_v52 = vpop.f32.mrf.mxu1 }
0x1a95   :  { %v3607_v54 = vsub.f32 %v3595_v50, %v4020_v48 }
0x1a96   :  { %v3597_v56 = vpop.f32.mrf.mxu1 }
0x1a97   :  { %v3617_v58 = vmul.f32 %v3615_v51, %v3607_v54 }
0x1a98   :  { %v4391_v59 = vpop.f32.mrf.mxu1 }
0x1a99   :  { %v3625_v63 = vmul.f32 %v4021_v55, %v3617_v58 }
0x1a9b   :  { %v3633_v0 = vadd.f32 %v4022_v60, %v3625_v63 }
0x1a9d   :  { %v3634_v61 = vmul.f32 %v3633_v0, %v3633_v0 }
0x1a9f   :  { %v3636_v2 = vsel %vm3635_vm0, %v3634_v61, 0.0 }
0x1aa0   :  { %3637 = vadd.xlane.f32.xlu0 %v3636_v2 }
0x1b29   :  { %v3638_v10 = vpop.xlane.xlu0 %3637 }
0x1b2a   :  { %v3639_v11 = vadd.f32 1e-12, %v3638_v10 }
0x1b2c   :  { %4656 = vrsqrt.f32 %v3639_v11 }
0x1b39   :  { %v4657_v12 = vpop.eup %4656 }
0x1b3a   :  { %v3641_v13 = vmul.f32 %v4657_v12, %v3633_v0 }
0x1b3c   :  { %4397 = vmatmul.mubr.msk.f32.vlgmr.msra.gmra.mxu1 %vm3556_vm1, %v3641_v13 }
0x1bfc   :  { %v3733_v14 = vpop.f32.mrf.mxu1 }
0x1bfd   :  { %v3737_v16 = vmul.f32 %v3733_v14, %v3733_v14  ;;  %v3749_v24 = vmul.f32 0.87758255, %v3733_v14  ;;  %v4026_v25 = vadd.f32 -0.23971277, %v3733_v14  ;;  %vm3748_vm5 = vcmp.gt.f32.partialorder %v3733_v14, -0.87758255 }
0x1bfe   :  { %v4398_v17 = vpop.f32.mrf.mxu1 }
0x1bff   :  { %v3738_v15 = vsub.f32 1.0, %v3737_v16 }
0x1c01   :  { %v3739_v18 = vmax.f32 %v3738_v15, 0.0 }
0x1c03   :  { %v3740_v19 = vmin.f32 %v3739_v18, 1.0 }
0x1c05   :  { %4658 = vrsqrt.f32 %v3740_v19  ;;  %vm3743_vm2 = vcmp.eq.f32.partialorder %v3740_v19, inf  ;;  %v3746_v21 = vand.u32 2147483648, %v3740_v19  ;;  %vm3745_vm3 = vcmp.eq.f32.partialorder %v3740_v19, 0.0 }
0x1c12   :  { %v4659_v20 = vpop.eup %4658 }
0x1c13   :  { %v3742_v33 = vmul.f32 %v4659_v20, %v3740_v19 }
0x1c15   :  { %v3744_v39 = vsel %vm3743_vm2, %v3740_v19, %v3742_v33 }
0x1c16   :  { %v3747_v35 = vsel %vm3745_vm3, %v3746_v21, %v3744_v39 }
0x1c17   :  { %v3750_v44 = vmul.f32 0.47942555, %v3747_v35 }
0x1c19   :  { %v3751_v26 = vsub.f32 %v3749_v24, %v3750_v44 }
0x1c1b   :  { %v3753_v62 = vsel %vm3748_vm5, %v3751_v26, %v4026_v25 }
0x1c1c   :  { %v3761_v27 = vsel %vm3760_vm4, %v3753_v62, %v3733_v14 }
0x1c1d   :  { %v3762_v28 = vmul.f32 30.0, %v3761_v27 }
0x1c1f   :  { %3764 = vst.msk [vmem:[#allocation4] sm:$0x3] %vm3763_vm6, %v3762_v28 }
0x1c20   :  { %4671 = shalt.err (!%p4668_p4)
}
0x1c21   :  { %3774 = dma.vmem_to_hbm [thread:$0]  %s3772_s20, 32, %s4876_s4, [#allocation5]  }
0x1c22   :  { %4680 = dma.done.wait [#allocation5], 32  }
0x1c23   :  { %4681 = vsyncadd [#allocation5], 4294967264 }
0x1c24   :  { %3778 = vsyncpa [#allocation5], 1 }

</bundles_post_ra>
